<compile_context>
chip_gen: v7x
topology: tpu7x:2x2x1
jax: 0.10.0
libtpu: 0.0.40
codegen_flags: <defaults>
</compile_context>

<pallas_src>
import functools

import numpy as np
import jax
import jax.numpy as jnp
from jax.experimental import pallas as pl
from jax.experimental.pallas import tpu as pltpu


# ----------------------------------------------------------------------------
# Fused Pallas kernel: conv1..conv3 (+BN+ReLU), conv4 (+sigmoid), x16 upsample
# ----------------------------------------------------------------------------
def _fused_head_kernel(xpad_ref, w1_ref, b1_ref, w2_ref, b2_ref, w3_ref,
                       b3_ref, w4_ref, b4_ref, rh_ref, rwt_ref, o_ref,
                       apad_ref, *, H, W):
    """Whole Mask_Predictor_coarse head for one image (grid step = one image).

    xpad_ref : (H+2, W+2, Cin) f32   zero-padded NHWC input image
    w{1,2,3} : (9*Cin_l, C)    bf16  BN-folded conv weights, taps packed on K
    b{1,2,3} : (1, C)          f32   BN-folded biases
    w4_ref   : (9, 1, C)       f32   conv4 weights, one (1, C) row per tap
    b4_ref   : (1, 1)          f32   conv4 bias
    rh_ref   : (16H, H)        f32   bilinear row-interp matrix
    rwt_ref  : (W, 16W)        f32   bilinear col-interp matrix (transposed)
    o_ref    : (16H, 16W)      f32   upsampled mask (lane-dense store)
    apad_ref : (H+2, W+2, C)   f32   VMEM scratch: zero-padded activations
    """
    HW = H * W

    def im2col(src_ref, cin):
        # (HW, 9*cin) patch matrix from a zero-padded VMEM buffer, tap order
        # k = dy*3 + dx, channels innermost (matches packed weight layout).
        taps = []
        for dy in range(3):
            for dx in range(3):
                taps.append(src_ref[dy:dy + H, dx:dx + W, :].reshape(HW, cin))
        return jnp.concatenate(taps, axis=-1)

    def conv_bn_relu(src_ref, cin, w_ref, b_ref):
        patches = im2col(src_ref, cin).astype(jnp.bfloat16)       # (HW, 9*cin)
        acc = jnp.dot(patches, w_ref[...],
                      preferred_element_type=jnp.float32)          # (HW, C)
        acc = jnp.maximum(acc + b_ref[...], 0.0)
        # Write into the interior of the padded scratch for the next layer.
        apad_ref[1:1 + H, 1:1 + W, :] = acc.reshape(H, W, -1)

    # Border of the activation scratch is the conv zero-padding; the interior
    # is rewritten by every layer, so zero the whole (tiny) buffer once.
    apad_ref[...] = jnp.zeros_like(apad_ref)

    cin0 = xpad_ref.shape[-1]
    C = w1_ref.shape[-1]

    conv_bn_relu(xpad_ref, cin0, w1_ref, b1_ref)   # conv1 + BN + ReLU
    conv_bn_relu(apad_ref, C, w2_ref, b2_ref)      # conv2 + BN + ReLU
    conv_bn_relu(apad_ref, C, w3_ref, b3_ref)      # conv3 + BN + ReLU

    # conv4 (Cout=1) + sigmoid on the VPU: per-tap multiply + lane reduce so
    # no lane-width-1 tensor ever hits the MXU or HBM.
    acc = jnp.zeros((H, W), jnp.float32)
    for dy in range(3):
        for dx in range(3):
            k = dy * 3 + dx
            t = apad_ref[dy:dy + H, dx:dx + W, :]                # (H, W, C)
            acc = acc + jnp.sum(t * w4_ref[k], axis=-1)          # (H, W)
    mask = jax.nn.sigmoid(acc + b4_ref[...])                     # (H, W)

    # Exact x16 bilinear upsample (align_corners=False): Rh @ mask @ RwT.
    tmp = jnp.dot(rh_ref[...], mask, preferred_element_type=jnp.float32)
    o_ref[...] = jnp.dot(tmp, rwt_ref[...],
                         preferred_element_type=jnp.float32)


# ----------------------------------------------------------------------------
# Wrapper
# ----------------------------------------------------------------------------
def _bilinear_matrix(in_size, out_size):
    """Row-interp matrix matching PyTorch bilinear, align_corners=False."""
    scale = in_size / out_size
    i = np.arange(out_size)
    src = (i + 0.5) * scale - 0.5
    src = np.maximum(src, 0.0)                 # PyTorch clamps negative src
    i0 = np.minimum(np.floor(src).astype(np.int64), in_size - 1)
    i1 = np.minimum(i0 + 1, in_size - 1)
    frac = (src - i0).astype(np.float32)
    R = np.zeros((out_size, in_size), np.float32)
    R[i, i0] += (1.0 - frac)
    R[i, i1] += frac
    return jnp.asarray(R)


def mask_predictor_coarse(x_nchw, params):
    """Forward pass matching Mask_Predictor_coarse (eval-mode BN)."""
    N, Cin, H, W = x_nchw.shape
    (w1, b1), (w2, b2), (w3, b3) = params["convs"]
    w4, b4 = params["conv4"]
    C = w1.shape[-1]
    Ho, Wo = 16 * H, 16 * W

    x = jnp.transpose(x_nchw, (0, 2, 3, 1))                 # NCHW -> NHWC
    xpad = jnp.pad(x, ((0, 0), (1, 1), (1, 1), (0, 0)))     # (N, H+2, W+2, Cin)
    Rh = _bilinear_matrix(H, Ho)                            # (Ho, H)
    RwT = _bilinear_matrix(W, Wo).T                         # (W, Wo)

    kernel = functools.partial(_fused_head_kernel, H=H, W=W)
    out = pl.pallas_call(
        kernel,
        out_shape=jax.ShapeDtypeStruct((N, Ho, Wo), jnp.float32),
        grid=(N,),
        in_specs=[
            pl.BlockSpec((None, H + 2, W + 2, Cin), lambda n: (n, 0, 0, 0)),
            pl.BlockSpec((9 * Cin, C), lambda n: (0, 0)),
            pl.BlockSpec((1, C), lambda n: (0, 0)),
            pl.BlockSpec((9 * C, C), lambda n: (0, 0)),
            pl.BlockSpec((1, C), lambda n: (0, 0)),
            pl.BlockSpec((9 * C, C), lambda n: (0, 0)),
            pl.BlockSpec((1, C), lambda n: (0, 0)),
            pl.BlockSpec((9, 1, C), lambda n: (0, 0, 0)),
            pl.BlockSpec((1, 1), lambda n: (0, 0)),
            pl.BlockSpec((Ho, H), lambda n: (0, 0)),
            pl.BlockSpec((W, Wo), lambda n: (0, 0)),
        ],
        out_specs=pl.BlockSpec((None, Ho, Wo), lambda n: (n, 0, 0)),
        scratch_shapes=[pltpu.VMEM((H + 2, W + 2, C), jnp.float32)],
        compiler_params=pltpu.CompilerParams(
            dimension_semantics=("parallel",)),
    )(xpad, w1, b1, w2, b2, w3, b3, w4, b4, Rh, RwT)
    return out[:, None, :, :]                                # (N, 1, 16H, 16W)


# ----------------------------------------------------------------------------
# Parameter construction (deterministic, synthetic; BN folded, eval mode)
# ----------------------------------------------------------------------------
# TODO(synk): training-mode BatchNorm (batch statistics) is not modeled; only
# eval-mode (running-stats) BN folded into the conv weight/bias.
def _fold_bn(w, b, gamma, beta, mean, var, eps=1e-5):
    scale = gamma / jnp.sqrt(var + eps)
    w_eff = w * scale[:, None, None, None]
    b_eff = (b - mean) * scale + beta
    return w_eff, b_eff


def _pack_taps(w_ochw):
    # (Cout, Cin, 3, 3) -> (9*Cin, Cout), row index = (dy*3 + dx)*Cin + cin
    co, ci = w_ochw.shape[0], w_ochw.shape[1]
    return jnp.transpose(w_ochw, (2, 3, 1, 0)).reshape(9 * ci, co)


def _conv_bn_params(key, cin, cout):
    ks = jax.random.split(key, 6)
    w = 0.05 * jax.random.normal(ks[0], (cout, cin, 3, 3), jnp.float32)
    b = 0.05 * jax.random.normal(ks[1], (cout,), jnp.float32)
    gamma = 1.0 + 0.1 * jax.random.normal(ks[2], (cout,), jnp.float32)
    beta = 0.1 * jax.random.normal(ks[3], (cout,), jnp.float32)
    mean = 0.1 * jax.random.normal(ks[4], (cout,), jnp.float32)
    var = 0.5 + jnp.abs(jax.random.normal(ks[5], (cout,), jnp.float32))
    w_eff, b_eff = _fold_bn(w, b, gamma, beta, mean, var)
    return (_pack_taps(w_eff).astype(jnp.bfloat16),
            b_eff.reshape(1, cout).astype(jnp.float32))


def make_params(key, inplanes, channel):
    k1, k2, k3, k4a, k4b = jax.random.split(key, 5)
    convs = [
        _conv_bn_params(k1, inplanes, channel),
        _conv_bn_params(k2, channel, channel),
        _conv_bn_params(k3, channel, channel),
    ]
    w4 = 0.05 * jax.random.normal(k4a, (1, channel, 3, 3), jnp.float32)
    b4 = 0.05 * jax.random.normal(k4b, (1,), jnp.float32)
    # (1, C, 3, 3) -> (9, 1, C), tap index k = dy*3 + dx.
    w4_tap = jnp.transpose(w4, (2, 3, 0, 1)).reshape(9, 1, channel)
    return {"convs": convs, "conv4": (w4_tap, b4.reshape(1, 1))}


if __name__ == "__main__":
    N, inplanes, channel, H, W = 2, 8, 32, 8, 8
    key = jax.random.PRNGKey(0)
    kx, kp = jax.random.split(key)
    x = jax.random.normal(kx, (N, inplanes, H, W), jnp.float32)
    params = make_params(kp, inplanes, channel)

    out = mask_predictor_coarse(x, params)
    out = jax.block_until_ready(out)
    assert out.shape == (N, 1, 16 * H, 16 * W), out.shape
    print("KERNEL_OK")
</pallas_src>

<mosaic_0001>
module attributes {stable_mosaic.version = 11 : i64} {
  func.func @_fused_head_kernel(%arg0: i32, %arg1: memref<1x10x10x8xf32, #tpu.memory_space<vmem>>, %arg2: memref<72x32xbf16, #tpu.memory_space<vmem>>, %arg3: memref<1x32xf32, #tpu.memory_space<vmem>>, %arg4: memref<288x32xbf16, #tpu.memory_space<vmem>>, %arg5: memref<1x32xf32, #tpu.memory_space<vmem>>, %arg6: memref<288x32xbf16, #tpu.memory_space<vmem>>, %arg7: memref<1x32xf32, #tpu.memory_space<vmem>>, %arg8: memref<9x1x32xf32, #tpu.memory_space<vmem>>, %arg9: memref<1x1xf32, #tpu.memory_space<vmem>>, %arg10: memref<128x8xf32, #tpu.memory_space<vmem>>, %arg11: memref<8x128xf32, #tpu.memory_space<vmem>>, %arg12: memref<1x128x128xf32, #tpu.memory_space<vmem>>, %arg13: memref<10x10x32xf32, #tpu.memory_space<vmem>>) attributes {dimension_semantics = [#tpu.dimension_semantics<parallel>], iteration_bounds = array<i64: 2>, scalar_prefetch = 0 : i64, scratch_operands = 1 : i64, tpu.core_type = #tpu.core_type<tc>, window_params = [{transform_indices = @transform_0, window_bounds = array<i64: 1, 10, 10, 8>}, {pipeline_mode = #tpu.pipeline_mode<synchronous>, transform_indices = @transform_1, window_bounds = array<i64: 72, 32>}, {pipeline_mode = #tpu.pipeline_mode<synchronous>, transform_indices = @transform_2, window_bounds = array<i64: 1, 32>}, {pipeline_mode = #tpu.pipeline_mode<synchronous>, transform_indices = @transform_3, window_bounds = array<i64: 288, 32>}, {pipeline_mode = #tpu.pipeline_mode<synchronous>, transform_indices = @transform_4, window_bounds = array<i64: 1, 32>}, {pipeline_mode = #tpu.pipeline_mode<synchronous>, transform_indices = @transform_5, window_bounds = array<i64: 288, 32>}, {pipeline_mode = #tpu.pipeline_mode<synchronous>, transform_indices = @transform_6, window_bounds = array<i64: 1, 32>}, {pipeline_mode = #tpu.pipeline_mode<synchronous>, transform_indices = @transform_7, window_bounds = array<i64: 9, 1, 32>}, {pipeline_mode = #tpu.pipeline_mode<synchronous>, transform_indices = @transform_8, window_bounds = array<i64: 1, 1>}, {pipeline_mode = #tpu.pipeline_mode<synchronous>, transform_indices = @transform_9, window_bounds = array<i64: 128, 8>}, {pipeline_mode = #tpu.pipeline_mode<synchronous>, transform_indices = @transform_10, window_bounds = array<i64: 8, 128>}, {transform_indices = @transform_11, window_bounds = array<i64: 1, 128, 128>}]} {
    %cst = arith.constant 0.000000e+00 : f32
    %0 = vector.broadcast %cst : f32 to vector<10x10x32xf32>
    %c0 = arith.constant 0 : index
    %c0_0 = arith.constant 0 : index
    %c0_1 = arith.constant 0 : index
    %1 = vector.load %arg13[%c0, %c0_0, %c0_1] : memref<10x10x32xf32, #tpu.memory_space<vmem>>, vector<10x10x32xf32>
    tpu.vector_store %arg13[%c0, %c0_0, %c0_1], %0 {strides = array<i32>} : memref<10x10x32xf32, #tpu.memory_space<vmem>>, vector<10x10x32xf32>,
    %c0_2 = arith.constant 0 : index
    %c0_3 = arith.constant 0 : index
    %c0_4 = arith.constant 0 : index
    %c0_5 = arith.constant 0 : index
    %2 = vector.load %arg1[%c0_2, %c0_3, %c0_4, %c0_5] : memref<1x10x10x8xf32, #tpu.memory_space<vmem>>, vector<1x8x8x8xf32>
    %3 = vector.shape_cast %2 : vector<1x8x8x8xf32> to vector<8x8x8xf32>
    %4 = vector.shape_cast %3 : vector<8x8x8xf32> to vector<64x8xf32>
    %c0_6 = arith.constant 0 : index
    %c0_7 = arith.constant 0 : index
    %c1 = arith.constant 1 : index
    %c0_8 = arith.constant 0 : index
    %5 = vector.load %arg1[%c0_6, %c0_7, %c1, %c0_8] : memref<1x10x10x8xf32, #tpu.memory_space<vmem>>, vector<1x8x8x8xf32>
    %6 = vector.shape_cast %5 : vector<1x8x8x8xf32> to vector<8x8x8xf32>
    %7 = vector.shape_cast %6 : vector<8x8x8xf32> to vector<64x8xf32>
    %c0_9 = arith.constant 0 : index
    %c0_10 = arith.constant 0 : index
    %c2 = arith.constant 2 : index
    %c0_11 = arith.constant 0 : index
    %8 = vector.load %arg1[%c0_9, %c0_10, %c2, %c0_11] : memref<1x10x10x8xf32, #tpu.memory_space<vmem>>, vector<1x8x8x8xf32>
    %9 = vector.shape_cast %8 : vector<1x8x8x8xf32> to vector<8x8x8xf32>
    %10 = vector.shape_cast %9 : vector<8x8x8xf32> to vector<64x8xf32>
    %c0_12 = arith.constant 0 : index
    %c1_13 = arith.constant 1 : index
    %c0_14 = arith.constant 0 : index
    %c0_15 = arith.constant 0 : index
    %11 = vector.load %arg1[%c0_12, %c1_13, %c0_14, %c0_15] : memref<1x10x10x8xf32, #tpu.memory_space<vmem>>, vector<1x8x8x8xf32>
    %12 = vector.shape_cast %11 : vector<1x8x8x8xf32> to vector<8x8x8xf32>
    %13 = vector.shape_cast %12 : vector<8x8x8xf32> to vector<64x8xf32>
    %c0_16 = arith.constant 0 : index
    %c1_17 = arith.constant 1 : index
    %c1_18 = arith.constant 1 : index
    %c0_19 = arith.constant 0 : index
    %14 = vector.load %arg1[%c0_16, %c1_17, %c1_18, %c0_19] : memref<1x10x10x8xf32, #tpu.memory_space<vmem>>, vector<1x8x8x8xf32>
    %15 = vector.shape_cast %14 : vector<1x8x8x8xf32> to vector<8x8x8xf32>
    %16 = vector.shape_cast %15 : vector<8x8x8xf32> to vector<64x8xf32>
    %c0_20 = arith.constant 0 : index
    %c1_21 = arith.constant 1 : index
    %c2_22 = arith.constant 2 : index
    %c0_23 = arith.constant 0 : index
    %17 = vector.load %arg1[%c0_20, %c1_21, %c2_22, %c0_23] : memref<1x10x10x8xf32, #tpu.memory_space<vmem>>, vector<1x8x8x8xf32>
    %18 = vector.shape_cast %17 : vector<1x8x8x8xf32> to vector<8x8x8xf32>
    %19 = vector.shape_cast %18 : vector<8x8x8xf32> to vector<64x8xf32>
    %c0_24 = arith.constant 0 : index
    %c2_25 = arith.constant 2 : index
    %c0_26 = arith.constant 0 : index
    %c0_27 = arith.constant 0 : index
    %20 = vector.load %arg1[%c0_24, %c2_25, %c0_26, %c0_27] : memref<1x10x10x8xf32, #tpu.memory_space<vmem>>, vector<1x8x8x8xf32>
    %21 = vector.shape_cast %20 : vector<1x8x8x8xf32> to vector<8x8x8xf32>
    %22 = vector.shape_cast %21 : vector<8x8x8xf32> to vector<64x8xf32>
    %c0_28 = arith.constant 0 : index
    %c2_29 = arith.constant 2 : index
    %c1_30 = arith.constant 1 : index
    %c0_31 = arith.constant 0 : index
    %23 = vector.load %arg1[%c0_28, %c2_29, %c1_30, %c0_31] : memref<1x10x10x8xf32, #tpu.memory_space<vmem>>, vector<1x8x8x8xf32>
    %24 = vector.shape_cast %23 : vector<1x8x8x8xf32> to vector<8x8x8xf32>
    %25 = vector.shape_cast %24 : vector<8x8x8xf32> to vector<64x8xf32>
    %c0_32 = arith.constant 0 : index
    %c2_33 = arith.constant 2 : index
    %c2_34 = arith.constant 2 : index
    %c0_35 = arith.constant 0 : index
    %26 = vector.load %arg1[%c0_32, %c2_33, %c2_34, %c0_35] : memref<1x10x10x8xf32, #tpu.memory_space<vmem>>, vector<1x8x8x8xf32>
    %27 = vector.shape_cast %26 : vector<1x8x8x8xf32> to vector<8x8x8xf32>
    %28 = vector.shape_cast %27 : vector<8x8x8xf32> to vector<64x8xf32>
    %29 = tpu.concatenate %4, %7, %10, %13, %16, %19, %22, %25, %28 in 1 : vector<64x8xf32>, vector<64x8xf32>, vector<64x8xf32>, vector<64x8xf32>, vector<64x8xf32>, vector<64x8xf32>, vector<64x8xf32>, vector<64x8xf32>, vector<64x8xf32> -> vector<64x72xf32>
    %30 = arith.truncf %29 : vector<64x72xf32> to vector<64x72xbf16>
    %c0_36 = arith.constant 0 : index
    %c0_37 = arith.constant 0 : index
    %31 = vector.load %arg2[%c0_36, %c0_37] : memref<72x32xbf16, #tpu.memory_space<vmem>>, vector<72x32xbf16>
    %cst_38 = arith.constant dense<0.000000e+00> : vector<64x32xf32>
    %32 = tpu.matmul %30, %31, %cst_38 {dimension_numbers = #tpu.dot_dimension_numbers<[1], [0], [0], [1], [0, 0, 1, 1], [], []>} : vector<64x72xbf16>, vector<72x32xbf16>, vector<64x32xf32> -> vector<64x32xf32>
    %c0_39 = arith.constant 0 : index
    %c0_40 = arith.constant 0 : index
    %33 = vector.load %arg3[%c0_39, %c0_40] : memref<1x32xf32, #tpu.memory_space<vmem>>, vector<1x32xf32>
    %34 = vector.broadcast %33 : vector<1x32xf32> to vector<64x32xf32>
    %35 = arith.addf %32, %34 : vector<64x32xf32>
    %cst_41 = arith.constant 0.000000e+00 : f32
    %36 = vector.broadcast %cst_41 : f32 to vector<64x32xf32>
    %37 = arith.maximumf %35, %36 : vector<64x32xf32>
    %38 = vector.shape_cast %37 : vector<64x32xf32> to vector<8x8x32xf32>
    %c1_42 = arith.constant 1 : index
    %c1_43 = arith.constant 1 : index
    %c0_44 = arith.constant 0 : index
    %39 = vector.load %arg13[%c1_42, %c1_43, %c0_44] : memref<10x10x32xf32, #tpu.memory_space<vmem>>, vector<8x8x32xf32>
    tpu.vector_store %arg13[%c1_42, %c1_43, %c0_44], %38 {strides = array<i32>} : memref<10x10x32xf32, #tpu.memory_space<vmem>>, vector<8x8x32xf32>,
    %c0_45 = arith.constant 0 : index
    %c0_46 = arith.constant 0 : index
    %c0_47 = arith.constant 0 : index
    %40 = vector.load %arg13[%c0_45, %c0_46, %c0_47] : memref<10x10x32xf32, #tpu.memory_space<vmem>>, vector<8x8x32xf32>
    %41 = vector.shape_cast %40 : vector<8x8x32xf32> to vector<64x32xf32>
    %c0_48 = arith.constant 0 : index
    %c1_49 = arith.constant 1 : index
    %c0_50 = arith.constant 0 : index
    %42 = vector.load %arg13[%c0_48, %c1_49, %c0_50] : memref<10x10x32xf32, #tpu.memory_space<vmem>>, vector<8x8x32xf32>
    %43 = vector.shape_cast %42 : vector<8x8x32xf32> to vector<64x32xf32>
    %c0_51 = arith.constant 0 : index
    %c2_52 = arith.constant 2 : index
    %c0_53 = arith.constant 0 : index
    %44 = vector.load %arg13[%c0_51, %c2_52, %c0_53] : memref<10x10x32xf32, #tpu.memory_space<vmem>>, vector<8x8x32xf32>
    %45 = vector.shape_cast %44 : vector<8x8x32xf32> to vector<64x32xf32>
    %c1_54 = arith.constant 1 : index
    %c0_55 = arith.constant 0 : index
    %c0_56 = arith.constant 0 : index
    %46 = vector.load %arg13[%c1_54, %c0_55, %c0_56] : memref<10x10x32xf32, #tpu.memory_space<vmem>>, vector<8x8x32xf32>
    %47 = vector.shape_cast %46 : vector<8x8x32xf32> to vector<64x32xf32>
    %c1_57 = arith.constant 1 : index
    %c1_58 = arith.constant 1 : index
    %c0_59 = arith.constant 0 : index
    %48 = vector.load %arg13[%c1_57, %c1_58, %c0_59] : memref<10x10x32xf32, #tpu.memory_space<vmem>>, vector<8x8x32xf32>
    %49 = vector.shape_cast %48 : vector<8x8x32xf32> to vector<64x32xf32>
    %c1_60 = arith.constant 1 : index
    %c2_61 = arith.constant 2 : index
    %c0_62 = arith.constant 0 : index
    %50 = vector.load %arg13[%c1_60, %c2_61, %c0_62] : memref<10x10x32xf32, #tpu.memory_space<vmem>>, vector<8x8x32xf32>
    %51 = vector.shape_cast %50 : vector<8x8x32xf32> to vector<64x32xf32>
    %c2_63 = arith.constant 2 : index
    %c0_64 = arith.constant 0 : index
    %c0_65 = arith.constant 0 : index
    %52 = vector.load %arg13[%c2_63, %c0_64, %c0_65] : memref<10x10x32xf32, #tpu.memory_space<vmem>>, vector<8x8x32xf32>
    %53 = vector.shape_cast %52 : vector<8x8x32xf32> to vector<64x32xf32>
    %c2_66 = arith.constant 2 : index
    %c1_67 = arith.constant 1 : index
    %c0_68 = arith.constant 0 : index
    %54 = vector.load %arg13[%c2_66, %c1_67, %c0_68] : memref<10x10x32xf32, #tpu.memory_space<vmem>>, vector<8x8x32xf32>
    %55 = vector.shape_cast %54 : vector<8x8x32xf32> to vector<64x32xf32>
    %c2_69 = arith.constant 2 : index
    %c2_70 = arith.constant 2 : index
    %c0_71 = arith.constant 0 : index
    %56 = vector.load %arg13[%c2_69, %c2_70, %c0_71] : memref<10x10x32xf32, #tpu.memory_space<vmem>>, vector<8x8x32xf32>
    %57 = vector.shape_cast %56 : vector<8x8x32xf32> to vector<64x32xf32>
    %58 = tpu.concatenate %41, %43, %45, %47, %49, %51, %53, %55, %57 in 1 : vector<64x32xf32>, vector<64x32xf32>, vector<64x32xf32>, vector<64x32xf32>, vector<64x32xf32>, vector<64x32xf32>, vector<64x32xf32>, vector<64x32xf32>, vector<64x32xf32> -> vector<64x288xf32>
    %59 = arith.truncf %58 : vector<64x288xf32> to vector<64x288xbf16>
    %c0_72 = arith.constant 0 : index
    %c0_73 = arith.constant 0 : index
    %60 = vector.load %arg4[%c0_72, %c0_73] : memref<288x32xbf16, #tpu.memory_space<vmem>>, vector<288x32xbf16>
    %cst_74 = arith.constant dense<0.000000e+00> : vector<64x32xf32>
    %61 = tpu.matmul %59, %60, %cst_74 {dimension_numbers = #tpu.dot_dimension_numbers<[1], [0], [0], [1], [0, 0, 1, 1], [], []>} : vector<64x288xbf16>, vector<288x32xbf16>, vector<64x32xf32> -> vector<64x32xf32>
    %c0_75 = arith.constant 0 : index
    %c0_76 = arith.constant 0 : index
    %62 = vector.load %arg5[%c0_75, %c0_76] : memref<1x32xf32, #tpu.memory_space<vmem>>, vector<1x32xf32>
    %63 = vector.broadcast %62 : vector<1x32xf32> to vector<64x32xf32>
    %64 = arith.addf %61, %63 : vector<64x32xf32>
    %cst_77 = arith.constant 0.000000e+00 : f32
    %65 = vector.broadcast %cst_77 : f32 to vector<64x32xf32>
    %66 = arith.maximumf %64, %65 : vector<64x32xf32>
    %67 = vector.shape_cast %66 : vector<64x32xf32> to vector<8x8x32xf32>
    %c1_78 = arith.constant 1 : index
    %c1_79 = arith.constant 1 : index
    %c0_80 = arith.constant 0 : index
    %68 = vector.load %arg13[%c1_78, %c1_79, %c0_80] : memref<10x10x32xf32, #tpu.memory_space<vmem>>, vector<8x8x32xf32>
    tpu.vector_store %arg13[%c1_78, %c1_79, %c0_80], %67 {strides = array<i32>} : memref<10x10x32xf32, #tpu.memory_space<vmem>>, vector<8x8x32xf32>,
    %c0_81 = arith.constant 0 : index
    %c0_82 = arith.constant 0 : index
    %c0_83 = arith.constant 0 : index
    %69 = vector.load %arg13[%c0_81, %c0_82, %c0_83] : memref<10x10x32xf32, #tpu.memory_space<vmem>>, vector<8x8x32xf32>
    %70 = vector.shape_cast %69 : vector<8x8x32xf32> to vector<64x32xf32>
    %c0_84 = arith.constant 0 : index
    %c1_85 = arith.constant 1 : index
    %c0_86 = arith.constant 0 : index
    %71 = vector.load %arg13[%c0_84, %c1_85, %c0_86] : memref<10x10x32xf32, #tpu.memory_space<vmem>>, vector<8x8x32xf32>
    %72 = vector.shape_cast %71 : vector<8x8x32xf32> to vector<64x32xf32>
    %c0_87 = arith.constant 0 : index
    %c2_88 = arith.constant 2 : index
    %c0_89 = arith.constant 0 : index
    %73 = vector.load %arg13[%c0_87, %c2_88, %c0_89] : memref<10x10x32xf32, #tpu.memory_space<vmem>>, vector<8x8x32xf32>
    %74 = vector.shape_cast %73 : vector<8x8x32xf32> to vector<64x32xf32>
    %c1_90 = arith.constant 1 : index
    %c0_91 = arith.constant 0 : index
    %c0_92 = arith.constant 0 : index
    %75 = vector.load %arg13[%c1_90, %c0_91, %c0_92] : memref<10x10x32xf32, #tpu.memory_space<vmem>>, vector<8x8x32xf32>
    %76 = vector.shape_cast %75 : vector<8x8x32xf32> to vector<64x32xf32>
    %c1_93 = arith.constant 1 : index
    %c1_94 = arith.constant 1 : index
    %c0_95 = arith.constant 0 : index
    %77 = vector.load %arg13[%c1_93, %c1_94, %c0_95] : memref<10x10x32xf32, #tpu.memory_space<vmem>>, vector<8x8x32xf32>
    %78 = vector.shape_cast %77 : vector<8x8x32xf32> to vector<64x32xf32>
    %c1_96 = arith.constant 1 : index
    %c2_97 = arith.constant 2 : index
    %c0_98 = arith.constant 0 : index
    %79 = vector.load %arg13[%c1_96, %c2_97, %c0_98] : memref<10x10x32xf32, #tpu.memory_space<vmem>>, vector<8x8x32xf32>
    %80 = vector.shape_cast %79 : vector<8x8x32xf32> to vector<64x32xf32>
    %c2_99 = arith.constant 2 : index
    %c0_100 = arith.constant 0 : index
    %c0_101 = arith.constant 0 : index
    %81 = vector.load %arg13[%c2_99, %c0_100, %c0_101] : memref<10x10x32xf32, #tpu.memory_space<vmem>>, vector<8x8x32xf32>
    %82 = vector.shape_cast %81 : vector<8x8x32xf32> to vector<64x32xf32>
    %c2_102 = arith.constant 2 : index
    %c1_103 = arith.constant 1 : index
    %c0_104 = arith.constant 0 : index
    %83 = vector.load %arg13[%c2_102, %c1_103, %c0_104] : memref<10x10x32xf32, #tpu.memory_space<vmem>>, vector<8x8x32xf32>
    %84 = vector.shape_cast %83 : vector<8x8x32xf32> to vector<64x32xf32>
    %c2_105 = arith.constant 2 : index
    %c2_106 = arith.constant 2 : index
    %c0_107 = arith.constant 0 : index
    %85 = vector.load %arg13[%c2_105, %c2_106, %c0_107] : memref<10x10x32xf32, #tpu.memory_space<vmem>>, vector<8x8x32xf32>
    %86 = vector.shape_cast %85 : vector<8x8x32xf32> to vector<64x32xf32>
    %87 = tpu.concatenate %70, %72, %74, %76, %78, %80, %82, %84, %86 in 1 : vector<64x32xf32>, vector<64x32xf32>, vector<64x32xf32>, vector<64x32xf32>, vector<64x32xf32>, vector<64x32xf32>, vector<64x32xf32>, vector<64x32xf32>, vector<64x32xf32> -> vector<64x288xf32>
    %88 = arith.truncf %87 : vector<64x288xf32> to vector<64x288xbf16>
    %c0_108 = arith.constant 0 : index
    %c0_109 = arith.constant 0 : index
    %89 = vector.load %arg6[%c0_108, %c0_109] : memref<288x32xbf16, #tpu.memory_space<vmem>>, vector<288x32xbf16>
    %cst_110 = arith.constant dense<0.000000e+00> : vector<64x32xf32>
    %90 = tpu.matmul %88, %89, %cst_110 {dimension_numbers = #tpu.dot_dimension_numbers<[1], [0], [0], [1], [0, 0, 1, 1], [], []>} : vector<64x288xbf16>, vector<288x32xbf16>, vector<64x32xf32> -> vector<64x32xf32>
    %c0_111 = arith.constant 0 : index
    %c0_112 = arith.constant 0 : index
    %91 = vector.load %arg7[%c0_111, %c0_112] : memref<1x32xf32, #tpu.memory_space<vmem>>, vector<1x32xf32>
    %92 = vector.broadcast %91 : vector<1x32xf32> to vector<64x32xf32>
    %93 = arith.addf %90, %92 : vector<64x32xf32>
    %cst_113 = arith.constant 0.000000e+00 : f32
    %94 = vector.broadcast %cst_113 : f32 to vector<64x32xf32>
    %95 = arith.maximumf %93, %94 : vector<64x32xf32>
    %96 = vector.shape_cast %95 : vector<64x32xf32> to vector<8x8x32xf32>
    %c1_114 = arith.constant 1 : index
    %c1_115 = arith.constant 1 : index
    %c0_116 = arith.constant 0 : index
    %97 = vector.load %arg13[%c1_114, %c1_115, %c0_116] : memref<10x10x32xf32, #tpu.memory_space<vmem>>, vector<8x8x32xf32>
    tpu.vector_store %arg13[%c1_114, %c1_115, %c0_116], %96 {strides = array<i32>} : memref<10x10x32xf32, #tpu.memory_space<vmem>>, vector<8x8x32xf32>,
    %cst_117 = arith.constant 0.000000e+00 : f32
    %98 = vector.broadcast %cst_117 : f32 to vector<8x8xf32>
    %c0_118 = arith.constant 0 : index
    %c0_119 = arith.constant 0 : index
    %c0_120 = arith.constant 0 : index
    %99 = vector.load %arg13[%c0_118, %c0_119, %c0_120] : memref<10x10x32xf32, #tpu.memory_space<vmem>>, vector<8x8x32xf32>
    %c0_121 = arith.constant 0 : index
    %c0_122 = arith.constant 0 : index
    %c0_123 = arith.constant 0 : index
    %100 = vector.load %arg8[%c0_121, %c0_122, %c0_123] : memref<9x1x32xf32, #tpu.memory_space<vmem>>, vector<1x1x32xf32>
    %101 = vector.shape_cast %100 : vector<1x1x32xf32> to vector<1x32xf32>
    %102 = vector.shape_cast %101 : vector<1x32xf32> to vector<1x1x32xf32>
    %103 = vector.broadcast %102 : vector<1x1x32xf32> to vector<8x8x32xf32>
    %104 = arith.mulf %99, %103 : vector<8x8x32xf32>
    %cst_124 = arith.constant dense<0.000000e+00> : vector<8x8xf32>
    %105 = vector.multi_reduction <add>, %104, %cst_124 [2] : vector<8x8x32xf32> to vector<8x8xf32>
    %106 = arith.addf %98, %105 : vector<8x8xf32>
    %c0_125 = arith.constant 0 : index
    %c1_126 = arith.constant 1 : index
    %c0_127 = arith.constant 0 : index
    %107 = vector.load %arg13[%c0_125, %c1_126, %c0_127] : memref<10x10x32xf32, #tpu.memory_space<vmem>>, vector<8x8x32xf32>
    %c1_128 = arith.constant 1 : index
    %c0_129 = arith.constant 0 : index
    %c0_130 = arith.constant 0 : index
    %108 = vector.load %arg8[%c1_128, %c0_129, %c0_130] : memref<9x1x32xf32, #tpu.memory_space<vmem>>, vector<1x1x32xf32>
    %109 = vector.shape_cast %108 : vector<1x1x32xf32> to vector<1x32xf32>
    %110 = vector.shape_cast %109 : vector<1x32xf32> to vector<1x1x32xf32>
    %111 = vector.broadcast %110 : vector<1x1x32xf32> to vector<8x8x32xf32>
    %112 = arith.mulf %107, %111 : vector<8x8x32xf32>
    %cst_131 = arith.constant dense<0.000000e+00> : vector<8x8xf32>
    %113 = vector.multi_reduction <add>, %112, %cst_131 [2] : vector<8x8x32xf32> to vector<8x8xf32>
    %114 = arith.addf %106, %113 : vector<8x8xf32>
    %c0_132 = arith.constant 0 : index
    %c2_133 = arith.constant 2 : index
    %c0_134 = arith.constant 0 : index
    %115 = vector.load %arg13[%c0_132, %c2_133, %c0_134] : memref<10x10x32xf32, #tpu.memory_space<vmem>>, vector<8x8x32xf32>
    %c2_135 = arith.constant 2 : index
    %c0_136 = arith.constant 0 : index
    %c0_137 = arith.constant 0 : index
    %116 = vector.load %arg8[%c2_135, %c0_136, %c0_137] : memref<9x1x32xf32, #tpu.memory_space<vmem>>, vector<1x1x32xf32>
    %117 = vector.shape_cast %116 : vector<1x1x32xf32> to vector<1x32xf32>
    %118 = vector.shape_cast %117 : vector<1x32xf32> to vector<1x1x32xf32>
    %119 = vector.broadcast %118 : vector<1x1x32xf32> to vector<8x8x32xf32>
    %120 = arith.mulf %115, %119 : vector<8x8x32xf32>
    %cst_138 = arith.constant dense<0.000000e+00> : vector<8x8xf32>
    %121 = vector.multi_reduction <add>, %120, %cst_138 [2] : vector<8x8x32xf32> to vector<8x8xf32>
    %122 = arith.addf %114, %121 : vector<8x8xf32>
    %c1_139 = arith.constant 1 : index
    %c0_140 = arith.constant 0 : index
    %c0_141 = arith.constant 0 : index
    %123 = vector.load %arg13[%c1_139, %c0_140, %c0_141] : memref<10x10x32xf32, #tpu.memory_space<vmem>>, vector<8x8x32xf32>
    %c3 = arith.constant 3 : index
    %c0_142 = arith.constant 0 : index
    %c0_143 = arith.constant 0 : index
    %124 = vector.load %arg8[%c3, %c0_142, %c0_143] : memref<9x1x32xf32, #tpu.memory_space<vmem>>, vector<1x1x32xf32>
    %125 = vector.shape_cast %124 : vector<1x1x32xf32> to vector<1x32xf32>
    %126 = vector.shape_cast %125 : vector<1x32xf32> to vector<1x1x32xf32>
    %127 = vector.broadcast %126 : vector<1x1x32xf32> to vector<8x8x32xf32>
    %128 = arith.mulf %123, %127 : vector<8x8x32xf32>
    %cst_144 = arith.constant dense<0.000000e+00> : vector<8x8xf32>
    %129 = vector.multi_reduction <add>, %128, %cst_144 [2] : vector<8x8x32xf32> to vector<8x8xf32>
    %130 = arith.addf %122, %129 : vector<8x8xf32>
    %c1_145 = arith.constant 1 : index
    %c1_146 = arith.constant 1 : index
    %c0_147 = arith.constant 0 : index
    %131 = vector.load %arg13[%c1_145, %c1_146, %c0_147] : memref<10x10x32xf32, #tpu.memory_space<vmem>>, vector<8x8x32xf32>
    %c4 = arith.constant 4 : index
    %c0_148 = arith.constant 0 : index
    %c0_149 = arith.constant 0 : index
    %132 = vector.load %arg8[%c4, %c0_148, %c0_149] : memref<9x1x32xf32, #tpu.memory_space<vmem>>, vector<1x1x32xf32>
    %133 = vector.shape_cast %132 : vector<1x1x32xf32> to vector<1x32xf32>
    %134 = vector.shape_cast %133 : vector<1x32xf32> to vector<1x1x32xf32>
    %135 = vector.broadcast %134 : vector<1x1x32xf32> to vector<8x8x32xf32>
    %136 = arith.mulf %131, %135 : vector<8x8x32xf32>
    %cst_150 = arith.constant dense<0.000000e+00> : vector<8x8xf32>
    %137 = vector.multi_reduction <add>, %136, %cst_150 [2] : vector<8x8x32xf32> to vector<8x8xf32>
    %138 = arith.addf %130, %137 : vector<8x8xf32>
    %c1_151 = arith.constant 1 : index
    %c2_152 = arith.constant 2 : index
    %c0_153 = arith.constant 0 : index
    %139 = vector.load %arg13[%c1_151, %c2_152, %c0_153] : memref<10x10x32xf32, #tpu.memory_space<vmem>>, vector<8x8x32xf32>
    %c5 = arith.constant 5 : index
    %c0_154 = arith.constant 0 : index
    %c0_155 = arith.constant 0 : index
    %140 = vector.load %arg8[%c5, %c0_154, %c0_155] : memref<9x1x32xf32, #tpu.memory_space<vmem>>, vector<1x1x32xf32>
    %141 = vector.shape_cast %140 : vector<1x1x32xf32> to vector<1x32xf32>
    %142 = vector.shape_cast %141 : vector<1x32xf32> to vector<1x1x32xf32>
    %143 = vector.broadcast %142 : vector<1x1x32xf32> to vector<8x8x32xf32>
    %144 = arith.mulf %139, %143 : vector<8x8x32xf32>
    %cst_156 = arith.constant dense<0.000000e+00> : vector<8x8xf32>
    %145 = vector.multi_reduction <add>, %144, %cst_156 [2] : vector<8x8x32xf32> to vector<8x8xf32>
    %146 = arith.addf %138, %145 : vector<8x8xf32>
    %c2_157 = arith.constant 2 : index
    %c0_158 = arith.constant 0 : index
    %c0_159 = arith.constant 0 : index
    %147 = vector.load %arg13[%c2_157, %c0_158, %c0_159] : memref<10x10x32xf32, #tpu.memory_space<vmem>>, vector<8x8x32xf32>
    %c6 = arith.constant 6 : index
    %c0_160 = arith.constant 0 : index
    %c0_161 = arith.constant 0 : index
    %148 = vector.load %arg8[%c6, %c0_160, %c0_161] : memref<9x1x32xf32, #tpu.memory_space<vmem>>, vector<1x1x32xf32>
    %149 = vector.shape_cast %148 : vector<1x1x32xf32> to vector<1x32xf32>
    %150 = vector.shape_cast %149 : vector<1x32xf32> to vector<1x1x32xf32>
    %151 = vector.broadcast %150 : vector<1x1x32xf32> to vector<8x8x32xf32>
    %152 = arith.mulf %147, %151 : vector<8x8x32xf32>
    %cst_162 = arith.constant dense<0.000000e+00> : vector<8x8xf32>
    %153 = vector.multi_reduction <add>, %152, %cst_162 [2] : vector<8x8x32xf32> to vector<8x8xf32>
    %154 = arith.addf %146, %153 : vector<8x8xf32>
    %c2_163 = arith.constant 2 : index
    %c1_164 = arith.constant 1 : index
    %c0_165 = arith.constant 0 : index
    %155 = vector.load %arg13[%c2_163, %c1_164, %c0_165] : memref<10x10x32xf32, #tpu.memory_space<vmem>>, vector<8x8x32xf32>
    %c7 = arith.constant 7 : index
    %c0_166 = arith.constant 0 : index
    %c0_167 = arith.constant 0 : index
    %156 = vector.load %arg8[%c7, %c0_166, %c0_167] : memref<9x1x32xf32, #tpu.memory_space<vmem>>, vector<1x1x32xf32>
    %157 = vector.shape_cast %156 : vector<1x1x32xf32> to vector<1x32xf32>
    %158 = vector.shape_cast %157 : vector<1x32xf32> to vector<1x1x32xf32>
    %159 = vector.broadcast %158 : vector<1x1x32xf32> to vector<8x8x32xf32>
    %160 = arith.mulf %155, %159 : vector<8x8x32xf32>
    %cst_168 = arith.constant dense<0.000000e+00> : vector<8x8xf32>
    %161 = vector.multi_reduction <add>, %160, %cst_168 [2] : vector<8x8x32xf32> to vector<8x8xf32>
    %162 = arith.addf %154, %161 : vector<8x8xf32>
    %c2_169 = arith.constant 2 : index
    %c2_170 = arith.constant 2 : index
    %c0_171 = arith.constant 0 : index
    %163 = vector.load %arg13[%c2_169, %c2_170, %c0_171] : memref<10x10x32xf32, #tpu.memory_space<vmem>>, vector<8x8x32xf32>
    %c8 = arith.constant 8 : index
    %c0_172 = arith.constant 0 : index
    %c0_173 = arith.constant 0 : index
    %164 = vector.load %arg8[%c8, %c0_172, %c0_173] : memref<9x1x32xf32, #tpu.memory_space<vmem>>, vector<1x1x32xf32>
    %165 = vector.shape_cast %164 : vector<1x1x32xf32> to vector<1x32xf32>
    %166 = vector.shape_cast %165 : vector<1x32xf32> to vector<1x1x32xf32>
    %167 = vector.broadcast %166 : vector<1x1x32xf32> to vector<8x8x32xf32>
    %168 = arith.mulf %163, %167 : vector<8x8x32xf32>
    %cst_174 = arith.constant dense<0.000000e+00> : vector<8x8xf32>
    %169 = vector.multi_reduction <add>, %168, %cst_174 [2] : vector<8x8x32xf32> to vector<8x8xf32>
    %170 = arith.addf %162, %169 : vector<8x8xf32>
    %c0_175 = arith.constant 0 : index
    %c0_176 = arith.constant 0 : index
    %171 = vector.load %arg9[%c0_175, %c0_176] : memref<1x1xf32, #tpu.memory_space<vmem>>, vector<1x1xf32>
    %172 = vector.broadcast %171 : vector<1x1xf32> to vector<8x8xf32>
    %173 = arith.addf %170, %172 : vector<8x8xf32>
    %174 = arith.negf %173 : vector<8x8xf32>
    %175 = math.exp %174 : vector<8x8xf32>
    %cst_177 = arith.constant 1.000000e+00 : f32
    %176 = vector.broadcast %cst_177 : f32 to vector<8x8xf32>
    %177 = arith.addf %176, %175 : vector<8x8xf32>
    %178 = arith.divf %176, %177 : vector<8x8xf32>
    %c0_178 = arith.constant 0 : index
    %c0_179 = arith.constant 0 : index
    %179 = vector.load %arg10[%c0_178, %c0_179] : memref<128x8xf32, #tpu.memory_space<vmem>>, vector<128x8xf32>
    %cst_180 = arith.constant dense<0.000000e+00> : vector<128x8xf32>
    %180 = tpu.matmul %179, %178, %cst_180 {dimension_numbers = #tpu.dot_dimension_numbers<[1], [0], [0], [1], [0, 0, 1, 1], [], []>} : vector<128x8xf32>, vector<8x8xf32>, vector<128x8xf32> -> vector<128x8xf32>
    %c0_181 = arith.constant 0 : index
    %c0_182 = arith.constant 0 : index
    %181 = vector.load %arg11[%c0_181, %c0_182] : memref<8x128xf32, #tpu.memory_space<vmem>>, vector<8x128xf32>
    %cst_183 = arith.constant dense<0.000000e+00> : vector<128x128xf32>
    %182 = tpu.matmul %180, %181, %cst_183 {dimension_numbers = #tpu.dot_dimension_numbers<[1], [0], [0], [1], [0, 0, 1, 1], [], []>} : vector<128x8xf32>, vector<8x128xf32>, vector<128x128xf32> -> vector<128x128xf32>
    %c0_184 = arith.constant 0 : index
    %c0_185 = arith.constant 0 : index
    %c0_186 = arith.constant 0 : index
    %183 = vector.load %arg12[%c0_184, %c0_185, %c0_186] : memref<1x128x128xf32, #tpu.memory_space<vmem>>, vector<1x128x128xf32>
    %184 = vector.shape_cast %183 : vector<1x128x128xf32> to vector<128x128xf32>
    %185 = vector.shape_cast %182 : vector<128x128xf32> to vector<1x128x128xf32>
    tpu.vector_store %arg12[%c0_184, %c0_185, %c0_186], %185 {strides = array<i32>} : memref<1x128x128xf32, #tpu.memory_space<vmem>>, vector<1x128x128xf32>,
    return
  }
  func.func @transform_0(%arg0: i32) -> (i32, i32, i32, i32) {
    %c0_i32 = arith.constant 0 : i32
    %c0_i32_0 = arith.constant 0 : i32
    %c0_i32_1 = arith.constant 0 : i32
    %c0_i32_2 = arith.constant 0 : i32
    return %arg0, %c0_i32, %c0_i32_0, %c0_i32_1 : i32, i32, i32, i32
  }
  func.func @transform_1(%arg0: i32) -> (i32, i32) {
    %c0_i32 = arith.constant 0 : i32
    %c0_i32_0 = arith.constant 0 : i32
    %c0_i32_1 = arith.constant 0 : i32
    return %c0_i32, %c0_i32_0 : i32, i32
  }
  func.func @transform_2(%arg0: i32) -> (i32, i32) {
    %c0_i32 = arith.constant 0 : i32
    %c0_i32_0 = arith.constant 0 : i32
    %c0_i32_1 = arith.constant 0 : i32
    return %c0_i32, %c0_i32_0 : i32, i32
  }
  func.func @transform_3(%arg0: i32) -> (i32, i32) {
    %c0_i32 = arith.constant 0 : i32
    %c0_i32_0 = arith.constant 0 : i32
    %c0_i32_1 = arith.constant 0 : i32
    return %c0_i32, %c0_i32_0 : i32, i32
  }
  func.func @transform_4(%arg0: i32) -> (i32, i32) {
    %c0_i32 = arith.constant 0 : i32
    %c0_i32_0 = arith.constant 0 : i32
    %c0_i32_1 = arith.constant 0 : i32
    return %c0_i32, %c0_i32_0 : i32, i32
  }
  func.func @transform_5(%arg0: i32) -> (i32, i32) {
    %c0_i32 = arith.constant 0 : i32
    %c0_i32_0 = arith.constant 0 : i32
    %c0_i32_1 = arith.constant 0 : i32
    return %c0_i32, %c0_i32_0 : i32, i32
  }
  func.func @transform_6(%arg0: i32) -> (i32, i32) {
    %c0_i32 = arith.constant 0 : i32
    %c0_i32_0 = arith.constant 0 : i32
    %c0_i32_1 = arith.constant 0 : i32
    return %c0_i32, %c0_i32_0 : i32, i32
  }
  func.func @transform_7(%arg0: i32) -> (i32, i32, i32) {
    %c0_i32 = arith.constant 0 : i32
    %c0_i32_0 = arith.constant 0 : i32
    %c0_i32_1 = arith.constant 0 : i32
    %c0_i32_2 = arith.constant 0 : i32
    return %c0_i32, %c0_i32_0, %c0_i32_1 : i32, i32, i32
  }
  func.func @transform_8(%arg0: i32) -> (i32, i32) {
    %c0_i32 = arith.constant 0 : i32
    %c0_i32_0 = arith.constant 0 : i32
    %c0_i32_1 = arith.constant 0 : i32
    return %c0_i32, %c0_i32_0 : i32, i32
  }
  func.func @transform_9(%arg0: i32) -> (i32, i32) {
    %c0_i32 = arith.constant 0 : i32
    %c0_i32_0 = arith.constant 0 : i32
    %c0_i32_1 = arith.constant 0 : i32
    return %c0_i32, %c0_i32_0 : i32, i32
  }
  func.func @transform_10(%arg0: i32) -> (i32, i32) {
    %c0_i32 = arith.constant 0 : i32
    %c0_i32_0 = arith.constant 0 : i32
    %c0_i32_1 = arith.constant 0 : i32
    return %c0_i32, %c0_i32_0 : i32, i32
  }
  func.func @transform_11(%arg0: i32) -> (i32, i32, i32) {
    %c0_i32 = arith.constant 0 : i32
    %c0_i32_0 = arith.constant 0 : i32
    %c0_i32_1 = arith.constant 0 : i32
    return %arg0, %c0_i32, %c0_i32_0 : i32, i32, i32
  }
}

</mosaic_0001>

<bundles_post_ra>
// kernel: tpu_custom_call.1
= control target key start
LH: loop header
LB: loop body
LE: loop exit
PB: predicated region body
PF: predicated region fallthrough
CT: control target
= control target key end

     0   :  { %s5571_s0 = inlined_call_operand.vmem [shape: f32[2,10,10,8], index: 0, kind: input, shape index: {}]   ;;  %s5572_s1 = inlined_call_operand.vmem [shape: bf16[72,32], index: 1, kind: input, shape index: {}]   ;;  %s5573_s2 = inlined_call_operand.vmem [shape: f32[1,32], index: 2, kind: input, shape index: {}]   ;;  %s5574_s3 = inlined_call_operand.vmem [shape: bf16[288,32], index: 3, kind: input, shape index: {}]   ;;  %s5575_s4 = inlined_call_operand.vmem [shape: f32[1,32], index: 4, kind: input, shape index: {}]   ;;  %s5576_s5 = inlined_call_operand.vmem [shape: bf16[288,32], index: 5, kind: input, shape index: {}]   ;;  %s5577_s6 = inlined_call_operand.vmem [shape: f32[1,32], index: 6, kind: input, shape index: {}]   ;;  %s5578_s7 = inlined_call_operand.vmem [shape: f32[9,1,32], index: 7, kind: input, shape index: {}]   ;;  %s5579_s8 = inlined_call_operand.<no memory space> [shape: f32[1,1], index: 8, kind: input, shape index: {}]   ;;  %s5580_s9 = inlined_call_operand.vmem [shape: f32[128,8], index: 9, kind: input, shape index: {}]   ;;  %s5581_s10 = inlined_call_operand.vmem [shape: f32[8,128], index: 10, kind: input, shape index: {}]   ;;  %s5582_s11 = inlined_call_operand.hbm [shape: f32[2,128,128], index: 11, kind: output, shape index: {}]  }
   0x1   :  { %v16_v0 = vstv %s5579_s8 }
   0x2   :  { %17 = vst [vmem:[#allocation3] sm:$0x1] %v16_v0 }
   0x3   :  { %18 = vsyncpa [#allocation5], 0 }
   0x4   :  { %20 = vsyncpa [#allocation5 + $0x1], 0  ;;  %s4419_s19 = smov 0   ;;  %s4421_s20 = smov 0  }
   0x5   :  { %s4423_s21 = smov 0   ;;  %s4425_s22 = smov 0  }
   0x6 LB: > { %s4440_s8 = sadd.s32 4294967295, %s4341_s22   ;;  %s3346_s23 = sadd.s32 4294967294, %s4341_s22   ;;  %s4341_s22 = sphi %s4425_s22, %s5593_s22   ;;  %s4337_s21 = sphi %s4423_s21, %s5592_s21   ;;  %s4333_s20 = sphi %s4421_s20, %s5591_s20   ;;  %s4329_s19 = sphi %s4419_s19, %s5590_s19  }
   0x7   : > { %s4444_s24 = sadd.s32 1, %s4341_s22   ;;  %s269_s25 = sadd.s32 1, %s4337_s21 }
   0x8   : > { %s266_s26 = ssub.s32 %s4341_s22, %s4444_s24  ;;  %p279_p0 = scmp.ne.s32.totalorder %s4337_s21, %s4333_s20 }
   0x9   : > { %p267_p1 = scmp.eq.s32.totalorder %s266_s26, 0  ;;  %p280_p2 = scmp.eq.s32.totalorder %s4440_s8, 1 }
   0xa   : > { %p285_p3 = scmp.ne.s32.totalorder %s4333_s20, %s4329_s19  ;;  %p286_p4 = scmp.eq.s32.totalorder %s3346_s23, 1 }
   0xb   : > { %s4455_s27 = scalar_select %p267_p1, %s4337_s21, %s269_s25  }
   0xc   : > { %p4457_p5 = por %p280_p2, %p279_p0  ;;  %p4461_p6 = por %p286_p4, %p285_p3 }
   0xd   : > { %p3349_p7 = scmp.ge.s32.totalorder %s4341_s22, 1  ;;  %p342_p8 = scmp.lt.s32.totalorder %s4341_s22, 3 }
   0xf   : > { %p343_p9 = pnand %p3349_p7, %p342_p8 }
  0x10   : > { %p382_p10 = scmp.lt.s32.totalorder (!%p343_p9), %s4440_s8, 1  ;;  %s4343_s16 = smov (!%p343_p9), 16   ;;  %v4206_v20 = vld [vmem:[%s5572_s1] sm:$0xff] (!%p343_p9)   ;;  %v4207_v21 = vld [vmem:[%s5572_s1 + $0x8] sm:$0xff] (!%p343_p9)   ;;  %v4208_v25 = vld [vmem:[%s5572_s1 + $0x10] sm:$0xff] (!%p343_p9)   ;;  %vm871_vm0 = vcmask (!%p343_p9), 1043456  }
  0x11   : > { %346 = sbr.rel (%p343_p9) target bundleno = 1941 (0x795), region = 64  ;;  %s5583_s17 = smov (!%p343_p9), 8   ;;  %3655 = vmatprep.subr.bf16.mxu0 (!%p343_p9), %v4206_v20  ;;  %v4209_v29 = vld [vmem:[%s5572_s1 + $0x18] sm:$0xff] (!%p343_p9)   ;;  %v4210_v31 = vld [vmem:[%s5572_s1 + $0x20] ss:$0 sps:$4 sm:$0xff] (!%p343_p9)   ;;  %vm388_vm1 = vcmask (!%p343_p9), 261120  }
  0x12   : > { %3656 = vmatpush3.bf16.msra.mxu0 (!%p343_p9), %v4206_v20  ;;  %s4346_s14 = smov (!%p343_p9), 32   ;;  %s4347_s25 = smov (!%p343_p9), 40   ;;  %v873_v36 = vsel (!%p343_p9), %vm871_vm0, %v4210_v31, 0  ;;  %vm390_vm2 = vcmask (!%p343_p9), 254976   ;;  %v4351_v61 = vmov (!%p343_p9), 0.0   ;;  %vm740_vm3 = vcmask (!%p343_p9), 64512  }
  0x13   : > { %3657 = vmatprep.subr.bf16.mxu0 (!%p343_p9), %v4207_v21  ;;  %s4348_s13 = smov (!%p343_p9), 48   ;;  %s4349_s18 = smov (!%p343_p9), 56   ;;  %396 = vst.msk [vmem:[#allocation2 + $0x30] sm:$0xff] (!%p343_p9), %vm388_vm1, %v4351_v61  ;;  %389 = vst.msk [vmem:[#allocation2] sm:$0xff] (!%p343_p9), %vm388_vm1, %v4351_v61  ;;  %vm749_vm4 = vcmask (!%p343_p9), 130048   ;;  %vm758_vm5 = vcmask (!%p343_p9), 195584  }
  0x14   : > { %s5584_s23 = smov (!%p343_p9), 64   ;;  %397 = vst.msk [vmem:[#allocation2 + $0x38] sm:$0x3] (!%p343_p9), %vm390_vm2, %v4351_v61  ;;  %391 = vst.msk [vmem:[#allocation2 + $0x8] sm:$0x3] (!%p343_p9), %vm390_vm2, %v4351_v61  ;;  %vm775_vm6 = vcmask (!%p343_p9), 326656  }
  0x15   : > { %392 = vst.msk [vmem:[#allocation2 + $0x10] sm:$0xff] (!%p343_p9), %vm388_vm1, %v4351_v61  ;;  %394 = vst.msk [vmem:[#allocation2 + $0x20] sm:$0xff] (!%p343_p9), %vm388_vm1, %v4351_v61  ;;  %vm784_vm7 = vcmask (!%p343_p9), 392192   ;;  %vm793_vm8 = vcmask (!%p343_p9), 457728   ;;  %vm802_vm9 = vcmask (!%p343_p9), 523264   ;;  %vm858_vm10 = vcmask (!%p343_p9), 588800  }
  0x16   : > { %3658 = vmatpush3.bf16.msra.mxu0 (!%p343_p9), %v4207_v21  ;;  %393 = vst.msk [vmem:[#allocation2 + $0x18] sm:$0x3] (!%p343_p9), %vm390_vm2, %v4351_v61  ;;  %395 = vst.msk [vmem:[#allocation2 + $0x28] sm:$0x3] (!%p343_p9), %vm390_vm2, %v4351_v61  ;;  %vm1238_vm11 = vcmask (!%p343_p9), 785408   ;;  %vm2852_vm12 = vcmask (!%p343_p9), 1041409  }
  0x17   : > { %3659 = vmatprep.subr.bf16.mxu0 (!%p343_p9), %v4208_v25  ;;  %398 = vst.msk [vmem:[#allocation2 + $0x40] sm:$0xff] (!%p343_p9), %vm388_vm1, %v4351_v61  ;;  %400 = vst.msk [vmem:[#allocation2 + $0x50] sm:$0xff] (!%p343_p9), %vm388_vm1, %v4351_v61  ;;  %vm2854_vm13 = vcmask (!%p343_p9), 1042434   ;;  %vm2856_vm14 = vcmask (!%p343_p9), 1043459   ;;  %vm2858_vm15 = vcmask (!%p343_p9), 1044484  }
  0x18   : > { %s383_s30 = scalar_select %p382_p10, %s4440_s8, 1  ;;  %399 = vst.msk [vmem:[#allocation2 + $0x48] sm:$0x3] %vm390_vm2, %v4351_v61  ;;  %401 = vst.msk [vmem:[#allocation2 + $0x58] sm:$0x3] %vm390_vm2, %v4351_v61 }
  0x19   : > { %402 = vst.msk [vmem:[#allocation2 + $0x60] sm:$0xff] %vm388_vm1, %v4351_v61  ;;  %404 = vst.msk [vmem:[#allocation2 + $0x70] sm:$0xff] %vm388_vm1, %v4351_v61 }
  0x1a   : > { %s3752_s12 = smul.u32 160, %s383_s30  ;;  %s4345_s30 = smov 24   ;;  %3660 = vmatpush3.bf16.msra.mxu0 %v4208_v25  ;;  %403 = vst.msk [vmem:[#allocation2 + $0x68] sm:$0x3] %vm390_vm2, %v4351_v61  ;;  %405 = vst.msk [vmem:[#allocation2 + $0x78] sm:$0x3] %vm390_vm2, %v4351_v61 }
  0x1b   : > { %3661 = vmatprep.subr.bf16.mxu0 %v4209_v29  ;;  %406 = vst.msk [vmem:[#allocation2 + $0x80] sm:$0xff] %vm388_vm1, %v4351_v61  ;;  %408 = vst.msk [vmem:[#allocation2 + $0x90] sm:$0xff] %vm388_vm1, %v4351_v61 }
  0x1c   : > { %s4472_s15 = scalar_lea.vmem %s5571_s0, %s3752_s12  ;;  %407 = vst.msk [vmem:[#allocation2 + $0x88] sm:$0x3] %vm390_vm2, %v4351_v61  ;;  %409 = vst.msk [vmem:[#allocation2 + $0x98] sm:$0x3] %vm390_vm2, %v4351_v61  ;;  %vm2864_vm2 = vcmask 1047559   ;;  %s379_s12 = sand.u32 1, %s4333_s20  }
  0x1d   : > { %v426_v1 = vld [vmem:[%s4472_s15 + $0x2] sm:$0xff]  ;;  %v427_v2 = vld [vmem:[%s4472_s15 + $0x12] sm:$0xff] }
  0x1e   : > { %v418_v3 = vld [vmem:[%s4472_s15 + $0x1] sm:$0xff]  ;;  %v3814_v4 = vpack.i.bf16 %v427_v2, %v426_v1  ;;  %v419_v5 = vld [vmem:[%s4472_s15 + $0x11] sm:$0xff]  ;;  %3662 = vmatpush3.bf16.msra.mxu0 %v4209_v29 }
  0x1f   : > { %v428_v6 = vld [vmem:[%s4472_s15 + $0x22] sm:$0xff]  ;;  %v429_v7 = vld [vmem:[%s4472_s15 + $0x32] sm:$0xff]  ;;  %v3804_v8 = vpack.i.bf16 %v419_v5, %v418_v3  ;;  %3751 = vmatprep.subr.msk.bf16.mxu0 %vm871_vm0, %v4210_v31  ;;  %vm2860_vm0 = vcmask 1045509  }
  0x20   : > { %v420_v9 = vld [vmem:[%s4472_s15 + $0x21] sm:$0xff]  ;;  %v421_v10 = vld [vmem:[%s4472_s15 + $0x31] sm:$0xff]  ;;  %3815 = vrot.lane.b32.xlu1 %v3814_v4, %s4343_s16  ;;  %v4483_v11 = vpack.i.bf16 %v429_v7, %v428_v6  ;;  %v3844_v28 = vpack.i.bf16 %v428_v6, %v427_v2 }
  0x21   : > { %3805 = vrot.lane.b32.xlu0 %v3804_v8, %s5583_s17  ;;  %v3809_v12 = vpack.i.bf16 %v421_v10, %v420_v9  ;;  %v4487_v13 = vld [vmem:[%s4472_s15 + $0x30] sm:$0xff]  ;;  %v4490_v14 = vld [vmem:[%s4472_s15 + $0x40] sm:$0xff]  ;;  %v3834_v24 = vpack.i.bf16 %v420_v9, %v419_v5 }
  0x22   : > { %v4493_v15 = vld [vmem:[%s4472_s15 + $0x10] sm:$0xff]  ;;  %v4496_v16 = vld [vmem:[%s4472_s15 + $0x20] sm:$0xff]  ;;  %v3829_v17 = vpack.i.bf16 %v4490_v14, %v4487_v13  ;;  %3664 = vmatpush3.bf16.msra.mxu0 %v873_v36 }
  0x23   : > { %v3824_v18 = vpack.i.bf16 %v4496_v16, %v4493_v15  ;;  %v3363_v19 = vld [vmem:[%s4472_s15 + $0x41] sm:$0xff]  ;;  %v4520_v27 = vld [vmem:[%s4472_s15 + $0x50] sm:$0xff]  ;;  %v3854_v32 = vpack.i.bf16 %v4487_v13, %v4496_v16 }
  0x24   : > { %3820 = vrot.lane.b32.xlu1 %v4483_v11, %s4343_s16  ;;  %v3839_v22 = vpack.i.bf16 %v3363_v19, %v421_v10  ;;  %v3371_v23 = vld [vmem:[%s4472_s15 + $0x42] sm:$0xff]  ;;  %v3859_v30 = vpack.i.bf16 %v4520_v27, %v4490_v14  ;;  %v3387_v33 = vld [vmem:[%s4472_s15 + $0x51] sm:$0xff] }
  0x25   : > { %3810 = vrot.lane.b32.xlu0 %v3809_v12, %s5583_s17  ;;  %v3849_v26 = vpack.i.bf16 %v3371_v23, %v429_v7  ;;  %v3869_v34 = vpack.i.bf16 %v3387_v33, %v3363_v19  ;;  %v3395_v35 = vld [vmem:[%s4472_s15 + $0x52] sm:$0xff]  ;;  %v424_v37 = vld [vmem:[%s4472_s15 + $0x61] sm:$0xff] }
  0x26   : > { %v425_v38 = vld [vmem:[%s4472_s15 + $0x71] sm:$0xff]  ;;  %v3879_v39 = vpack.i.bf16 %v3395_v35, %v3371_v23  ;;  %v432_v40 = vld [vmem:[%s4472_s15 + $0x62] sm:$0xff]  ;;  %v3914_v51 = vpack.i.bf16 %v424_v37, %v3387_v33 }
  0x27   : > { %v433_v41 = vld [vmem:[%s4472_s15 + $0x72] sm:$0xff]  ;;  %v3889_v42 = vpack.i.bf16 %v425_v38, %v424_v37  ;;  %v3359_v45 = vld [vmem:[%s4472_s15 + $0x80] sm:$0xff]  ;;  %v3924_v54 = vpack.i.bf16 %v432_v40, %v3395_v35 }
  0x28   : > { %3830 = vrot.lane.b32.xlu1 %v3829_v17, %s4345_s30  ;;  %v3899_v43 = vpack.i.bf16 %v433_v41, %v432_v40  ;;  %v4551_v44 = vld [vmem:[%s4472_s15 + $0x70] sm:$0xff]  ;;  %v4555_v46 = vld [vmem:[%s4472_s15 + $0x60] sm:$0xff] }
  0x29   : > { %3825 = vrot.lane.b32.xlu0 %v3824_v18, %s4345_s30  ;;  %v3909_v47 = vpack.i.bf16 %v3359_v45, %v4551_v44  ;;  %v3904_v48 = vpack.i.bf16 %v4555_v46, %v4520_v27  ;;  %v3367_v49 = vld [vmem:[%s4472_s15 + $0x81] sm:$0xff]  ;;  %v3383_v55 = vld [vmem:[%s4472_s15 + $0x90] sm:$0xff]  ;;  %v3934_v57 = vpack.i.bf16 %v4551_v44, %v4555_v46 }
  0x2a   : > { %v3919_v50 = vpack.i.bf16 %v3367_v49, %v425_v38  ;;  %v3375_v52 = vld [vmem:[%s4472_s15 + $0x82] sm:$0xff]  ;;  %v3939_v56 = vpack.i.bf16 %v3383_v55, %v3359_v45  ;;  %v3391_v58 = vld [vmem:[%s4472_s15 + $0x91] sm:$0xff] }
  0x2b   : > { %v3929_v53 = vpack.i.bf16 %v3375_v52, %v433_v41  ;;  %v3949_v59 = vpack.i.bf16 %v3391_v58, %v3367_v49  ;;  %v3399_v60 = vld [vmem:[%s4472_s15 + $0x92] sm:$0xff]  ;;  %v410_v9 = vld [vmem:[%s4472_s15] sm:$0xff] }
  0x2c   : > { %3840 = vrot.lane.b32.xlu1 %v3839_v22, %s4346_s14  ;;  %v3959_v62 = vpack.i.bf16 %v3399_v60, %v3375_v52 }
  0x2d   : > { %3835 = vrot.lane.b32.xlu0 %v3834_v24, %s4346_s14 }
  0x30   : > { %3850 = vrot.lane.b32.xlu1 %v3849_v26, %s4347_s25 }
  0x31   : > { %3845 = vrot.lane.b32.xlu0 %v3844_v28, %s4347_s25 }
  0x34   : > { %3860 = vrot.lane.b32.xlu1 %v3859_v30, %s4348_s13 }
  0x35   : > { %3855 = vrot.lane.b32.xlu0 %v3854_v32, %s4348_s13 }
  0x38   : > { %3870 = vrot.lane.b32.xlu1 %v3869_v34, %s4349_s18 }
  0x39   : > { %3865 = vrot.lane.b32.xlu0 %v3809_v12, %s4349_s18 }
  0x3c   : > { %3880 = vrot.lane.b32.xlu1 %v3879_v39, %s5584_s23 }
  0x3d   : > { %3875 = vrot.lane.b32.xlu0 %v4483_v11, %s5584_s23 }
  0x40   : > { %3890 = vrot.lane.b32.xlu1 %v3889_v42, %s5583_s17 }
  0x41   : > { %3885 = vrot.lane.b32.xlu0 %v3869_v34, %s5583_s17 }
  0x44   : > { %3900 = vrot.lane.b32.xlu1 %v3899_v43, %s4343_s16 }
  0x45   : > { %3895 = vrot.lane.b32.xlu0 %v3879_v39, %s4343_s16 }
  0x48   : > { %3910 = vrot.lane.b32.xlu1 %v3909_v47, %s4345_s30 }
  0x49   : > { %3905 = vrot.lane.b32.xlu0 %v3904_v48, %s4345_s30 }
  0x4c   : > { %3920 = vrot.lane.b32.xlu1 %v3919_v50, %s4346_s14 }
  0x4d   : > { %3915 = vrot.lane.b32.xlu0 %v3914_v51, %s4346_s14 }
  0x50   : > { %3930 = vrot.lane.b32.xlu1 %v3929_v53, %s4347_s25 }
  0x51   : > { %3925 = vrot.lane.b32.xlu0 %v3924_v54, %s4347_s25  ;;  %s4354_s25 = smov [#allocation4]  }
  0x52   : > { %s4283_s26 = sshll.u32 %s4354_s25, 4  ;;  %s4284_s26 = int_to_ptr.vmem [resolvable:$false] %s4283_s26 }
  0x54   : > { %3940 = vrot.lane.b32.xlu1 %v3939_v56, %s4348_s13 }
  0x55   : > { %3935 = vrot.lane.b32.xlu0 %v3934_v57, %s4348_s13 }
  0x58   : > { %3950 = vrot.lane.b32.xlu1 %v3949_v59, %s4349_s18 }
  0x59   : > { %3945 = vrot.lane.b32.xlu0 %v3889_v42, %s4349_s18  ;;  %s4352_s18 = smov 96  }
  0x5c   : > { %3960 = vrot.lane.b32.xlu1 %v3959_v62, %s5584_s23 }
  0x5d   : > { %3955 = vrot.lane.b32.xlu0 %v3899_v43, %s5584_s23  ;;  %s5588_s23 = smov 64  }
  0x92   : > { %v3816_v63 = vpop.permute.xlu1 %3815 }
  0x93   : > { %v3806_v0 = vpop.permute.xlu0 %3805  ;;  %v3818_v12 = vunpack.i.h.bf16 %v3816_v63  ;;  %v3817_v17 = vunpack.i.l.bf16 %v3816_v63 }
  0x94   : > { %v3808_v6 = vunpack.i.h.bf16 %v3806_v0  ;;  %v3807_v7 = vunpack.i.l.bf16 %v3806_v0 }
  0x96   : > { %v3821_v1 = vpop.permute.xlu1 %3820  ;;  %v741_v19 = vsel %vm740_vm3, %v410_v9, %v3807_v7  ;;  %v742_v20 = vsel %vm740_vm3, %v4493_v15, %v3808_v6 }
  0x97   : > { %v3811_v2 = vpop.permute.xlu0 %3810  ;;  %v3823_v21 = vunpack.i.h.bf16 %v3821_v1  ;;  %v3822_v22 = vunpack.i.l.bf16 %v3821_v1  ;;  %v750_v31 = vsel %vm749_vm4, %v741_v19, %v3817_v17  ;;  %v751_v32 = vsel %vm749_vm4, %v742_v20, %v3818_v12 }
  0x98   : > { %v3813_v10 = vunpack.i.h.bf16 %v3811_v2  ;;  %v3812_v11 = vunpack.i.l.bf16 %v3811_v2 }
  0x9a   : > { %v3831_v3 = vpop.permute.xlu1 %3830  ;;  %v743_v24 = vsel %vm740_vm3, %v4496_v16, %v3812_v11  ;;  %v744_v25 = vsel %vm740_vm3, %v4487_v13, %v3813_v10 }
  0x9b   : > { %v3826_v4 = vpop.permute.xlu0 %3825  ;;  %v3833_v26 = vunpack.i.h.bf16 %v3831_v3  ;;  %v3832_v28 = vunpack.i.l.bf16 %v3831_v3  ;;  %v752_v33 = vsel %vm749_vm4, %v743_v24, %v3822_v22  ;;  %v753_v16 = vsel %vm749_vm4, %v744_v25, %v3823_v21 }
  0x9c   : > { %v3828_v29 = vunpack.i.h.bf16 %v3826_v4  ;;  %v3827_v30 = vunpack.i.l.bf16 %v3826_v4 }
  0x9d   : > { %v761_v36 = vsel %vm758_vm5, %v752_v33, %v3832_v28  ;;  %v762_v37 = vsel %vm758_vm5, %v753_v16, %v3833_v26 }
  0x9e   : > { %v3841_v5 = vpop.permute.xlu1 %3840  ;;  %v759_v40 = vsel %vm758_vm5, %v750_v31, %v3827_v30  ;;  %v760_v41 = vsel %vm758_vm5, %v751_v32, %v3828_v29 }
  0x9f   : > { %v3836_v8 = vpop.permute.xlu0 %3835  ;;  %v3843_v34 = vunpack.i.h.bf16 %v3841_v5  ;;  %v3842_v35 = vunpack.i.l.bf16 %v3841_v5 }
  0xa0   : > { %v3838_v38 = vunpack.i.h.bf16 %v3836_v8  ;;  %v3837_v39 = vunpack.i.l.bf16 %v3836_v8 }
  0xa1   : > { %v769_v51 = vsel %vm388_vm1, %v761_v36, %v3842_v35  ;;  %v770_v52 = vsel %vm388_vm1, %v762_v37, %v3843_v34 }
  0xa2   : > { %v3851_v18 = vpop.permute.xlu1 %3850  ;;  %v767_v56 = vsel %vm388_vm1, %v759_v40, %v3837_v39  ;;  %v768_v57 = vsel %vm388_vm1, %v760_v41, %v3838_v38 }
  0xa3   : > { %v3846_v23 = vpop.permute.xlu0 %3845  ;;  %v3853_v42 = vunpack.i.h.bf16 %v3851_v18  ;;  %v3852_v43 = vunpack.i.l.bf16 %v3851_v18 }
  0xa4   : > { %v3848_v45 = vunpack.i.h.bf16 %v3846_v23  ;;  %v3847_v47 = vunpack.i.l.bf16 %v3846_v23 }
  0xa5   : > { %v778_v60 = vsel %vm775_vm6, %v769_v51, %v3852_v43  ;;  %v779_v61 = vsel %vm775_vm6, %v770_v52, %v3853_v42 }
  0xa6   : > { %v3861_v15 = vpop.permute.xlu1 %3860  ;;  %v776_v0 = vsel %vm775_vm6, %v767_v56, %v3847_v47  ;;  %v777_v1 = vsel %vm775_vm6, %v768_v57, %v3848_v45 }
  0xa7   : > { %v3856_v13 = vpop.permute.xlu0 %3855  ;;  %v3863_v48 = vunpack.i.h.bf16 %v3861_v15  ;;  %v3862_v49 = vunpack.i.l.bf16 %v3861_v15 }
  0xa8   : > { %v3858_v53 = vunpack.i.h.bf16 %v3856_v13  ;;  %v3857_v54 = vunpack.i.l.bf16 %v3856_v13 }
  0xa9   : > { %v787_v2 = vsel %vm784_vm7, %v778_v60, %v3862_v49  ;;  %v788_v3 = vsel %vm784_vm7, %v779_v61, %v3863_v48 }
  0xaa   : > { %v3871_v50 = vpop.permute.xlu1 %3870  ;;  %v785_v8 = vsel %vm784_vm7, %v776_v0, %v3857_v54  ;;  %v786_v9 = vsel %vm784_vm7, %v777_v1, %v3858_v53 }
  0xab   : > { %v3866_v55 = vpop.permute.xlu0 %3865  ;;  %v3873_v58 = vunpack.i.h.bf16 %v3871_v50  ;;  %v3872_v59 = vunpack.i.l.bf16 %v3871_v50 }
  0xac   : > { %v3868_v62 = vunpack.i.h.bf16 %v3866_v55  ;;  %v3867_v63 = vunpack.i.l.bf16 %v3866_v55 }
  0xad   : > { %v796_v10 = vsel %vm793_vm8, %v787_v2, %v3872_v59  ;;  %v797_v11 = vsel %vm793_vm8, %v788_v3, %v3873_v58 }
  0xae   : > { %v3881_v4 = vpop.permute.xlu1 %3880  ;;  %v794_v20 = vsel %vm793_vm8, %v785_v8, %v3867_v63  ;;  %v795_v21 = vsel %vm793_vm8, %v786_v9, %v3868_v62 }
  0xaf   : > { %v3883_v5 = vunpack.i.h.bf16 %v3881_v4  ;;  %v3882_v6 = vunpack.i.l.bf16 %v3881_v4  ;;  %v3876_v7 = vpop.permute.xlu0 %3875 }
  0xb0   : > { %v3878_v12 = vunpack.i.h.bf16 %v3876_v7  ;;  %v3877_v17 = vunpack.i.l.bf16 %v3876_v7 }
  0xb1   : > { %v805_v18 = vsel %vm802_vm9, %v796_v10, %v3882_v6  ;;  %v806_v19 = vsel %vm802_vm9, %v797_v11, %v3883_v5 }
  0xb2   : > { %v3891_v22 = vpop.permute.xlu1 %3890  ;;  %v803_v23 = vsel %vm802_vm9, %v794_v20, %v3877_v17  ;;  %v804_v24 = vsel %vm802_vm9, %v795_v21, %v3878_v12  ;;  %v812_v25 = vpack.c.bf16 %v806_v19, %v805_v18 }
  0xb3   : > { %v3886_v26 = vpop.permute.xlu0 %3885  ;;  %v811_v28 = vpack.c.bf16 %v804_v24, %v803_v23  ;;  %v3893_v16 = vunpack.i.h.bf16 %v3891_v22  ;;  %v3892_v34 = vunpack.i.l.bf16 %v3891_v22 }
  0xb4   : > { %v3888_v35 = vunpack.i.h.bf16 %v3886_v26  ;;  %v3887_v13 = vunpack.i.l.bf16 %v3886_v26 }
  0xb5   : > { %3665 = vmatprep.mubr.msk.bf16.mxu0 %vm858_vm10, %v811_v28  ;;  %v747_v45 = vsel %vm740_vm3, %v4555_v46, %v3892_v34  ;;  %v748_v47 = vsel %vm740_vm3, %v4551_v44, %v3893_v16 }
  0xb6   : > { %3666 = vmatmul.mubr.msk.bf16.vlgmr.msra.gmra.mrb[0].mxu0 %vm858_vm10, %v812_v25  ;;  %v3901_v29 = vpop.permute.xlu1 %3900  ;;  %v745_v50 = vsel %vm740_vm3, %v4490_v14, %v3887_v13  ;;  %v746_v51 = vsel %vm740_vm3, %v4520_v27, %v3888_v35 }
  0xb7   : > { %v3896_v30 = vpop.permute.xlu0 %3895  ;;  %v3903_v36 = vunpack.i.h.bf16 %v3901_v29  ;;  %v3902_v37 = vunpack.i.l.bf16 %v3901_v29 }
  0xb8   : > { %v3898_v39 = vunpack.i.h.bf16 %v3896_v30  ;;  %v3897_v40 = vunpack.i.l.bf16 %v3896_v30 }
  0xb9   : > { %v756_v52 = vsel %vm749_vm4, %v747_v45, %v3902_v37  ;;  %v757_v53 = vsel %vm749_vm4, %v748_v47, %v3903_v36  ;;  %v4213_v45 = vld [vmem:[%s5574_s3 + $0x40] sm:$0xff]  }
  0xba   : > { %v3911_v31 = vpop.permute.xlu1 %3910  ;;  %v754_v55 = vsel %vm749_vm4, %v745_v50, %v3897_v40  ;;  %v755_v46 = vsel %vm749_vm4, %v746_v51, %v3898_v39  ;;  %v4214_v47 = vld [vmem:[%s5574_s3] sm:$0xff]   ;;  %3529 = vmatprep.subr.bf16.mxu1 %v4213_v45  ;;  %v4217_v50 = vld [vmem:[%s5574_s3 + $0x50] sm:$0xff]  }
  0xbb   : > { %v3906_v32 = vpop.permute.xlu0 %3905  ;;  %v3913_v42 = vunpack.i.h.bf16 %v3911_v31  ;;  %v3912_v43 = vunpack.i.l.bf16 %v3911_v31  ;;  %3530 = vmatpush3.bf16.msra.mxu1 %v4214_v47  ;;  %v4218_v51 = vld [vmem:[%s5574_s3 + $0x10] sm:$0xff]  }
  0xbc   : > { %v3908_v48 = vunpack.i.h.bf16 %v3906_v32  ;;  %v3907_v49 = vunpack.i.l.bf16 %v3906_v32 }
  0xbd   : > { %v765_v58 = vsel %vm758_vm5, %v756_v52, %v3912_v43  ;;  %v766_v59 = vsel %vm758_vm5, %v757_v53, %v3913_v42  ;;  %v4211_v42 = vld [vmem:[%s5574_s3 + $0x80] sm:$0xff]   ;;  %v4212_v43 = vld [vmem:[%s5574_s3 + $0x88] sm:$0xff]   ;;  %v4219_v52 = vld [vmem:[%s5574_s3 + $0x58] sm:$0xff]  }
  0xbe   : > { %v3921_v15 = vpop.permute.xlu1 %3920  ;;  %v763_v27 = vsel %vm758_vm5, %v754_v55, %v3907_v49  ;;  %v764_v61 = vsel %vm758_vm5, %v755_v46, %v3908_v48  ;;  %3673 = vmatprep.subr.bf16.mxu0 %v4211_v42  ;;  %v4215_v48 = vld [vmem:[%s5574_s3 + $0x48] sm:$0xff]   ;;  %v4707_v53 = vld [vmem:[%s5573_s2] ss:$0 sm:$0xff] }
  0xbf   : > { %v3916_v33 = vpop.permute.xlu0 %3915  ;;  %v3923_v56 = vunpack.i.h.bf16 %v3921_v15  ;;  %v3922_v57 = vunpack.i.l.bf16 %v3921_v15  ;;  %3674 = vmatpush3.bf16.msra.mxu0 %v4211_v42  ;;  %v4216_v49 = vld [vmem:[%s5574_s3 + $0x8] sm:$0xff]   ;;  %3531 = vmatprep.subr.bf16.mxu1 %v4215_v48 }
  0xc0   : > { %v3918_v14 = vunpack.i.h.bf16 %v3916_v33  ;;  %v3917_v60 = vunpack.i.l.bf16 %v3916_v33  ;;  %3675 = vmatprep.subr.bf16.mxu0 %v4212_v43  ;;  %3532 = vmatpush3.bf16.msra.mxu1 %v4216_v49 }
  0xc1   : > { %v773_v5 = vsel %vm388_vm1, %v765_v58, %v3922_v57  ;;  %v774_v6 = vsel %vm388_vm1, %v766_v59, %v3923_v56  ;;  %3533 = vmatprep.subr.bf16.mxu1 %v4217_v50 }
  0xc2   : > { %v3931_v38 = vpop.permute.xlu1 %3930  ;;  %v771_v10 = vsel %vm388_vm1, %v763_v27, %v3917_v60  ;;  %v772_v11 = vsel %vm388_vm1, %v764_v61, %v3918_v14  ;;  %v4220_v14 = vld [vmem:[%s5574_s3 + $0x18] sm:$0xff]  }
  0xc3   : > { %v3926_v41 = vpop.permute.xlu0 %3925  ;;  %v3933_v62 = vunpack.i.h.bf16 %v3931_v38  ;;  %v3932_v63 = vunpack.i.l.bf16 %v3931_v38  ;;  %3676 = vmatpush3.bf16.msra.mxu0 %v4212_v43 }
  0xc4   : > { %v3928_v0 = vunpack.i.h.bf16 %v3926_v41  ;;  %v3927_v1 = vunpack.i.l.bf16 %v3926_v41  ;;  %3534 = vmatpush3.bf16.msra.mxu1 %v4218_v51 }
  0xc5   : > { %v782_v18 = vsel %vm775_vm6, %v773_v5, %v3932_v63  ;;  %v783_v19 = vsel %vm775_vm6, %v774_v6, %v3933_v62  ;;  %3535 = vmatprep.subr.bf16.mxu1 %v4219_v52  ;;  %v4221_v63 = vld [vmem:[%s5574_s3 + $0x60] sm:$0xff]  }
  0xc6   : > { %v3941_v54 = vpop.permute.xlu1 %3940  ;;  %v780_v22 = vsel %vm775_vm6, %v771_v10, %v3927_v1  ;;  %v781_v23 = vsel %vm775_vm6, %v772_v11, %v3928_v0  ;;  %v4222_v0 = vld [vmem:[%s5574_s3 + $0x20] sm:$0xff]   ;;  %v4223_v1 = vld [vmem:[%s5574_s3 + $0x68] sm:$0xff]  }
  0xc7   : > { %v3936_v44 = vpop.permute.xlu0 %3935  ;;  %v3943_v2 = vunpack.i.h.bf16 %v3941_v54  ;;  %v3942_v3 = vunpack.i.l.bf16 %v3941_v54  ;;  %v4741_v10 = vld [vmem:[#allocation2 + $0x2] sm:$0xff] }
  0xc8   : > { %v3938_v7 = vunpack.i.h.bf16 %v3936_v44  ;;  %v3937_v8 = vunpack.i.l.bf16 %v3936_v44  ;;  %3536 = vmatpush3.bf16.msra.mxu1 %v4220_v14 }
  0xc9   : > { %v791_v24 = vsel %vm784_vm7, %v782_v18, %v3942_v3  ;;  %v792_v25 = vsel %vm784_vm7, %v783_v19, %v3943_v2  ;;  %3537 = vmatprep.subr.bf16.mxu1 %v4221_v63  ;;  %v4729_v2 = vld [vmem:[#allocation2 + $0x1] sm:$0xff]  ;;  %v4226_v18 = vld [vmem:[%s5574_s3 + $0x30] sm:$0xff]   ;;  %v4227_v19 = vld [vmem:[%s5574_s3 + $0x78] sm:$0xff]  }
  0xca   : > { %v3951_v4 = vpop.permute.xlu1 %3950  ;;  %v789_v28 = vsel %vm784_vm7, %v780_v22, %v3937_v8  ;;  %v790_v29 = vsel %vm784_vm7, %v781_v23, %v3938_v7  ;;  %v4224_v3 = vld [vmem:[%s5574_s3 + $0x28] sm:$0xff]   ;;  %v4228_v23 = vld [vmem:[%s5574_s3 + $0x38] sm:$0xff]  }
  0xcb   : > { %v3946_v9 = vpop.permute.xlu0 %3945  ;;  %v3953_v12 = vunpack.i.h.bf16 %v3951_v4  ;;  %v3952_v17 = vunpack.i.l.bf16 %v3951_v4 }
  0xcc   : > { %v3948_v20 = vunpack.i.h.bf16 %v3946_v9  ;;  %v3947_v21 = vunpack.i.l.bf16 %v3946_v9  ;;  %3538 = vmatpush3.bf16.msra.mxu1 %v4222_v0 }
  0xcd   : > { %v800_v15 = vsel %vm793_vm8, %v791_v24, %v3952_v17  ;;  %v801_v33 = vsel %vm793_vm8, %v792_v25, %v3953_v12  ;;  %3539 = vmatprep.subr.bf16.mxu1 %v4223_v1  ;;  %v4225_v17 = vld [vmem:[%s5574_s3 + $0x70] sm:$0xff]  }
  0xce   : > { %v3961_v26 = vpop.permute.xlu1 %3960  ;;  %v798_v35 = vsel %vm793_vm8, %v789_v28, %v3947_v21  ;;  %v799_v13 = vsel %vm793_vm8, %v790_v29, %v3948_v20 }
  0xcf   : > { %v3963_v30 = vunpack.i.h.bf16 %v3961_v26  ;;  %v3962_v31 = vunpack.i.l.bf16 %v3961_v26  ;;  %v3956_v32 = vpop.permute.xlu0 %3955 }
  0xd0   : > { %v3958_v16 = vunpack.i.h.bf16 %v3956_v32  ;;  %v3957_v34 = vunpack.i.l.bf16 %v3956_v32  ;;  %3540 = vmatpush3.bf16.msra.mxu1 %v4224_v3 }
  0xd1   : > { %v809_v36 = vsel %vm802_vm9, %v800_v15, %v3962_v31  ;;  %v810_v37 = vsel %vm802_vm9, %v801_v33, %v3963_v30  ;;  %3541 = vmatprep.subr.bf16.mxu1 %v4225_v17 }
  0xd2   : > { %v807_v38 = vsel %vm802_vm9, %v798_v35, %v3957_v34  ;;  %v808_v39 = vsel %vm802_vm9, %v799_v13, %v3958_v16  ;;  %v814_v40 = vpack.c.bf16 %v810_v37, %v809_v36 }
  0xd3   : > { %v813_v41 = vpack.c.bf16 %v808_v39, %v807_v38 }
  0xd4   : > { %3542 = vmatpush3.bf16.msra.mxu1 %v4226_v18 }
  0xd5   : > { %3669 = vmatprep.mubr.msk.bf16.mxu0 %vm858_vm10, %v813_v41  ;;  %3543 = vmatprep.subr.bf16.mxu1 %v4227_v19 }
  0xd6   : > { %3670 = vmatmul.mubr.msk.bf16.gmra.mrb[4].mxu0 %vm858_vm10, %v814_v40 }
  0xd8   : > { %3544 = vmatpush3.bf16.msra.mxu1 %v4228_v23 }
 0x189   : > { %v3667_v54 = vpop.f32.mrb[0].mxu0 }
 0x18a   : > { %v918_v55 = vadd.f32 %v3667_v54, %v4707_v53  ;;  %v909_v46 = vpop.f32.mrb[1].mxu0 }
 0x18b   : > { %v910_v56 = vadd.f32 %v4707_v53, %v909_v46  ;;  %v3668_v57 = vpop.f32.mrb[2].mxu0 }
 0x18c   : > { %v942_v44 = vmax.f32 %v918_v55, 0.0  ;;  %v921_v58 = vadd.f32 %v3668_v57, %v4707_v53  ;;  %v912_v59 = vpop.f32.mrb[3].mxu0  ;;  %v4811_v57 = vld [vmem:[#allocation2 + $0x92] sm:$0xff] }
 0x18d   : > { %v940_v60 = vmax.f32 %v910_v56, 0.0  ;;  %v913_v27 = vadd.f32 %v4707_v53, %v912_v59 }
 0x18e   : > { %951 = vst.msk [vmem:[#allocation2 + $0x31] sm:$0xff] %vm388_vm1, %v942_v44  ;;  %v943_v61 = vmax.f32 %v921_v58, 0.0 }
 0x18f   : > { %949 = vst.msk [vmem:[#allocation2 + $0x11] sm:$0xff] %vm388_vm1, %v940_v60  ;;  %v941_v62 = vmax.f32 %v913_v27, 0.0 }
 0x190   : > { %952 = vst.msk [vmem:[#allocation2 + $0x41] sm:$0xff] %vm388_vm1, %v943_v61 }
 0x191   : > { %950 = vst.msk [vmem:[#allocation2 + $0x21] sm:$0xff] %vm388_vm1, %v941_v62 }
 0x195   : > { %v999_v6 = vld [vmem:[#allocation2 + $0x32] sm:$0xff] }
 0x196   : > { %v4734_v4 = vld [vmem:[#allocation2 + $0x11] sm:$0xff] }
 0x197   : > { %v3964_v5 = vpack.i.bf16 %v4734_v4, %v4729_v2  ;;  %v4738_v7 = vld [vmem:[#allocation2 + $0x42] sm:$0xff]  ;;  %v974_v11 = vld [vmem:[#allocation2 + $0x12] sm:$0xff] }
 0x198   : > { %v3974_v8 = vpack.i.bf16 %v4738_v7, %v999_v6  ;;  %v1022_v9 = vld [vmem:[#allocation2 + $0x22] sm:$0xff]  ;;  %v3969_v20 = vpack.i.bf16 %v974_v11, %v4741_v10  ;;  %v4765_v25 = vld [vmem:[#allocation2 + $0x30] sm:$0xff] }
 0x199   : > { %3965 = vrot.lane.b32.xlu1 %v3964_v5, %s4346_s14  ;;  %v1273_v12 = vpack.c.bf16 %v999_v6, %v1022_v9  ;;  %v3984_v21 = vpack.i.bf16 %v1022_v9, %v974_v11  ;;  %v4756_v22 = vld [vmem:[#allocation2 + $0x40] sm:$0xff]  ;;  %v4775_v30 = vld [vmem:[#allocation2 + $0x10] sm:$0xff]  ;;  %v4009_v36 = vpack.i.bf16 %v999_v6, %v1022_v9 }
 0x19a   : > { %3975 = vrot.lane.b32.xlu0 %v3974_v8, %s4346_s14  ;;  %v4762_v24 = vld [vmem:[#allocation2 + $0x20] sm:$0xff]  ;;  %v3979_v26 = vpack.i.bf16 %v4756_v22, %v4765_v25  ;;  %v4779_v32 = vld [vmem:[#allocation2 + $0x31] sm:$0xff] }
 0x19b   : > { %3677 = vmatprep.mubr.msk.bf16.mxu0 %vm388_vm1, %v1273_v12  ;;  %v3989_v28 = vpack.i.bf16 %v4765_v25, %v4762_v24  ;;  %v4772_v29 = vld [vmem:[#allocation2 + $0x21] sm:$0xff]  ;;  %v3999_v31 = vpack.i.bf16 %v4762_v24, %v4775_v30  ;;  %v4838_v6 = vld [vmem:[#allocation2 + $0x90] sm:$0xff] }
 0x19c   : > { %v3994_v15 = vpack.i.bf16 %v4779_v32, %v4772_v29  ;;  %v4795_v45 = vld [vmem:[#allocation2 + $0x41] sm:$0xff]  ;;  %v4845_v9 = vld [vmem:[#allocation2 + $0x91] sm:$0xff] }
 0x19d   : > { %3970 = vrot.lane.b32.xlu1 %v3969_v20, %s5588_s23 }
 0x19e   : > { %3985 = vrot.lane.b32.xlu0 %v3984_v21, %s4346_s14 }
 0x1a1   : > { %3980 = vrot.lane.b32.xlu1 %v3979_v26, %s4352_s18  ;;  %v4851_v26 = vld [vmem:[#allocation2] sm:$0xff] }
 0x1a2   : > { %3990 = vrot.lane.b32.xlu0 %v3989_v28, %s5588_s23 }
 0x1a5   : > { %4000 = vrot.lane.b32.xlu1 %v3999_v31, %s4352_s18 }
 0x1a6   : > { %3995 = vrot.lane.b32.xlu0 %v3994_v15, %s4352_s18 }
 0x1a9   : > { %v3671_v33 = vpop.f32.mrb[4].mxu0  ;;  %4005 = vrot.lane.b32.xlu1 %v3994_v15, %s4346_s14 }
 0x1aa   : > { %v934_v16 = vadd.f32 %v3671_v33, %v4707_v53  ;;  %v925_v34 = vpop.f32.mrb[5].mxu0 }
 0x1ab   : > { %v926_v35 = vadd.f32 %v4707_v53, %v925_v34  ;;  %v3672_v13 = vpop.f32.mrb[6].mxu0 }
 0x1ac   : > { %v946_v37 = vmax.f32 %v934_v16, 0.0  ;;  %v937_v38 = vadd.f32 %v3672_v13, %v4707_v53  ;;  %v928_v39 = vpop.f32.mrb[7].mxu0 }
 0x1ad   : > { %v944_v40 = vmax.f32 %v926_v35, 0.0  ;;  %v929_v41 = vadd.f32 %v4707_v53, %v928_v39  ;;  %4010 = vrot.lane.b32.xlu1 %v4009_v36, %s5588_s23 }
 0x1ae   : > { %955 = vst.msk [vmem:[#allocation2 + $0x71] sm:$0xff] %vm388_vm1, %v946_v37  ;;  %v947_v42 = vmax.f32 %v937_v38, 0.0 }
 0x1af   : > { %953 = vst.msk [vmem:[#allocation2 + $0x51] sm:$0xff] %vm388_vm1, %v944_v40  ;;  %v945_v43 = vmax.f32 %v929_v41, 0.0 }
 0x1b0   : > { %956 = vst.msk [vmem:[#allocation2 + $0x81] sm:$0xff] %vm388_vm1, %v947_v42 }
 0x1b1   : > { %954 = vst.msk [vmem:[#allocation2 + $0x61] sm:$0xff] %vm388_vm1, %v945_v43 }
 0x1b5   : > { %v1027_v54 = vld [vmem:[#allocation2 + $0x72] sm:$0xff] }
 0x1b6   : > { %v1025_v47 = vld [vmem:[#allocation2 + $0x52] sm:$0xff] }
 0x1b7   : > { %v4797_v48 = vld [vmem:[#allocation2 + $0x50] sm:$0xff]  ;;  %v1276_v50 = vpack.c.bf16 %v1025_v47, %v4738_v7  ;;  %v4029_v46 = vpack.i.bf16 %v1025_v47, %v4738_v7  ;;  %v1028_v56 = vld [vmem:[#allocation2 + $0x82] sm:$0xff] }
 0x1b8   : > { %v4799_v49 = vld [vmem:[#allocation2 + $0x51] sm:$0xff]  ;;  %v4014_v51 = vpack.i.bf16 %v4797_v48, %v4756_v22  ;;  %v1026_v53 = vld [vmem:[#allocation2 + $0x62] sm:$0xff]  ;;  %v1282_v58 = vpack.c.bf16 %v4811_v57, %v1028_v56  ;;  %v4034_v59 = vpack.i.bf16 %v1028_v56, %v1027_v54 }
 0x1b9   : > { %v4024_v52 = vpack.i.bf16 %v4799_v49, %v4795_v45  ;;  %3678 = vmatmul.mubr.msk.bf16.vlgmr.msra.gmra.mrb[8].mxu0 %vm388_vm1, %v1276_v50  ;;  %v1279_v55 = vpack.c.bf16 %v1027_v54, %v1026_v53  ;;  %v4814_v44 = vld [vmem:[#allocation2 + $0x60] sm:$0xff]  ;;  %v4039_v27 = vpack.i.bf16 %v1026_v53, %v1025_v47  ;;  %v4825_v61 = vld [vmem:[#allocation2 + $0x71] sm:$0xff]  ;;  %v4074_v1 = vpack.i.bf16 %v1027_v54, %v1026_v53 }
 0x1ba   : > { %4015 = vrot.lane.b32.xlu0 %v4014_v51, %s5588_s23  ;;  %v4064_v14 = vpack.i.bf16 %v4814_v44, %v4797_v48  ;;  %v4822_v60 = vld [vmem:[#allocation2 + $0x61] sm:$0xff]  ;;  %v4831_v63 = vld [vmem:[#allocation2 + $0x70] sm:$0xff] }
 0x1bb   : > { %4025 = vrot.lane.b32.xlu1 %v4024_v52, %s4346_s14  ;;  %3681 = vmatprep.mubr.msk.bf16.mxu0 %vm388_vm1, %v1279_v55  ;;  %v4069_v62 = vpack.i.bf16 %v4825_v61, %v4822_v60  ;;  %v4044_v0 = vpack.i.bf16 %v4831_v63, %v4814_v44  ;;  %v988_v3 = vld [vmem:[#allocation2 + $0x80] sm:$0xff] }
 0x1bc   : > { %v4079_v5 = vpack.i.bf16 %v988_v3, %v4831_v63  ;;  %v4054_v7 = vpack.i.bf16 %v4838_v6, %v988_v3  ;;  %v4843_v8 = vld [vmem:[#allocation2 + $0x81] sm:$0xff] }
 0x1bd   : > { %v4059_v11 = vpack.i.bf16 %v4845_v9, %v4843_v8 }
 0x1be   : > { %4020 = vrot.lane.b32.xlu0 %v4024_v52, %s4352_s18 }
 0x1bf   : > { %4030 = vrot.lane.b32.xlu1 %v4029_v46, %s5588_s23 }
 0x1c1   : > { %3682 = vmatmul.mubr.msk.bf16.gmra.mrb[12].mxu0 %vm388_vm1, %v1282_v58 }
 0x1c2   : > { %4035 = vrot.lane.b32.xlu0 %v4034_v59, %s4346_s14 }
 0x1c3   : > { %4065 = vrot.lane.b32.xlu1 %v4064_v14, %s4352_s18 }
 0x1c6   : > { %4040 = vrot.lane.b32.xlu0 %v4039_v27, %s4346_s14 }
 0x1c7   : > { %4070 = vrot.lane.b32.xlu1 %v4069_v62, %s4346_s14 }
 0x1ca   : > { %4045 = vrot.lane.b32.xlu0 %v4044_v0, %s5588_s23 }
 0x1cb   : > { %4075 = vrot.lane.b32.xlu1 %v4074_v1, %s5588_s23 }
 0x1ce   : > { %4050 = vrot.lane.b32.xlu0 %v4069_v62, %s4352_s18 }
 0x1cf   : > { %4080 = vrot.lane.b32.xlu1 %v4079_v5, %s4352_s18 }
 0x1d2   : > { %4055 = vrot.lane.b32.xlu0 %v4054_v7, %s5588_s23 }
 0x1d6   : > { %4060 = vrot.lane.b32.xlu0 %v4059_v11, %s4352_s18 }
 0x20b   : > { %v3966_v12 = vpop.permute.xlu1 %3965 }
 0x20c   : > { %v3976_v17 = vpop.permute.xlu0 %3975  ;;  %v3968_v20 = vunpack.i.h.bf16 %v3966_v12  ;;  %v3967_v21 = vunpack.i.l.bf16 %v3966_v12 }
 0x20d   : > { %v3978_v1 = vunpack.i.h.bf16 %v3976_v17  ;;  %v3977_v3 = vunpack.i.l.bf16 %v3976_v17 }
 0x20e   : > { %v1222_v13 = vsel %vm388_vm1, %v4851_v26, %v3967_v21  ;;  %v1223_v36 = vsel %vm388_vm1, %v4775_v30, %v3968_v20 }
 0x20f   : > { %v3971_v18 = vpop.permute.xlu1 %3970  ;;  %v1250_v17 = vsel %vm388_vm1, %v4795_v45, %v3978_v1 }
 0x210   : > { %v3986_v19 = vpop.permute.xlu0 %3985  ;;  %v3973_v28 = vunpack.i.h.bf16 %v3971_v18  ;;  %v3972_v31 = vunpack.i.l.bf16 %v3971_v18 }
 0x211   : > { %v3988_v33 = vunpack.i.h.bf16 %v3986_v19  ;;  %v3987_v16 = vunpack.i.l.bf16 %v3986_v19 }
 0x212   : > { %v1230_v41 = vsel %vm802_vm9, %v1222_v13, %v3972_v31  ;;  %v1231_v42 = vsel %vm802_vm9, %v1223_v36, %v3973_v28 }
 0x213   : > { %v3981_v23 = vpop.permute.xlu1 %3980  ;;  %v1247_v50 = vsel %vm388_vm1, %v4734_v4, %v3987_v16  ;;  %v1248_v51 = vsel %vm388_vm1, %v4772_v29, %v3988_v33 }
 0x214   : > { %v3991_v15 = vpop.permute.xlu0 %3990  ;;  %v3983_v21 = vunpack.i.h.bf16 %v3981_v23  ;;  %v3982_v28 = vunpack.i.l.bf16 %v3981_v23 }
 0x215   : > { %v3993_v34 = vunpack.i.h.bf16 %v3991_v15  ;;  %v3992_v35 = vunpack.i.l.bf16 %v3991_v15  ;;  %v1249_v15 = vsel %vm388_vm1, %v4779_v32, %v3977_v3 }
 0x217   : > { %v4001_v37 = vpop.permute.xlu1 %4000  ;;  %v1255_v52 = vsel %vm802_vm9, %v1247_v50, %v3992_v35  ;;  %v1256_v30 = vsel %vm802_vm9, %v1248_v51, %v3993_v34 }
 0x218   : > { %v4003_v38 = vunpack.i.h.bf16 %v4001_v37  ;;  %v4002_v39 = vunpack.i.l.bf16 %v4001_v37  ;;  %v3996_v40 = vpop.permute.xlu0 %3995 }
 0x219   : > { %v3998_v43 = vunpack.i.h.bf16 %v3996_v40  ;;  %v3997_v47 = vunpack.i.l.bf16 %v3996_v40 }
 0x21a   : > { %v1239_v53 = vsel %vm1238_vm11, %v1230_v41, %v4002_v39  ;;  %v1240_v54 = vsel %vm1238_vm11, %v1231_v42, %v4003_v38 }
 0x21b   : > { %v1263_v55 = vsel %vm1238_vm11, %v1255_v52, %v3997_v47  ;;  %v1264_v46 = vsel %vm1238_vm11, %v1256_v30, %v3998_v43  ;;  %v1271_v58 = vpack.c.bf16 %v1240_v54, %v1239_v53  ;;  %v4006_v4 = vpop.permute.xlu1 %4005 }
 0x21c   : > { %v1272_v56 = vpack.c.bf16 %v1264_v46, %v1263_v55  ;;  %v4008_v14 = vunpack.i.h.bf16 %v4006_v4  ;;  %v4007_v29 = vunpack.i.l.bf16 %v4006_v4 }
 0x21e   : > { %1478 = vmatprep.mubr.bf16.mxu1 %v1272_v56  ;;  %v1225_v7 = vsel %vm388_vm1, %v4765_v25, %v4008_v14  ;;  %v1224_v11 = vsel %vm388_vm1, %v4762_v24, %v4007_v29 }
 0x21f   : > { %1479 = vmatmul.mubr.bf16.vlgmr.msra.gmra.mrb[0].mxu1 %v1271_v58  ;;  %v4011_v59 = vpop.permute.xlu1 %4010 }
 0x220   : > { %v4013_v27 = vunpack.i.h.bf16 %v4011_v59  ;;  %v4012_v62 = vunpack.i.l.bf16 %v4011_v59 }
 0x222   : > { %v1232_v19 = vsel %vm802_vm9, %v1224_v11, %v4012_v62  ;;  %v1233_v20 = vsel %vm802_vm9, %v1225_v7, %v4013_v27 }
 0x223   : > { %v1241_v35 = vsel %vm1238_vm11, %v1232_v19, %v3982_v28  ;;  %v1242_v13 = vsel %vm1238_vm11, %v1233_v20, %v3983_v21 }
 0x224   : > { %v1274_v39 = vpack.c.bf16 %v1242_v13, %v1241_v35 }
 0x22c   : > { %v4016_v0 = vpop.permute.xlu0 %4015 }
 0x22d   : > { %v4026_v5 = vpop.permute.xlu1 %4025  ;;  %v4018_v12 = vunpack.i.h.bf16 %v4016_v0  ;;  %v4017_v18 = vunpack.i.l.bf16 %v4016_v0 }
 0x22e   : > { %v4028_v41 = vunpack.i.h.bf16 %v4026_v5  ;;  %v4027_v42 = vunpack.i.l.bf16 %v4026_v5 }
 0x22f   : > { %v1257_v24 = vsel %vm802_vm9, %v1249_v15, %v4017_v18  ;;  %v1258_v34 = vsel %vm802_vm9, %v1250_v17, %v4018_v12 }
 0x230   : > { %v4021_v31 = vpop.permute.xlu0 %4020  ;;  %v1227_v56 = vsel %vm388_vm1, %v4797_v48, %v4028_v41  ;;  %v1226_v58 = vsel %vm388_vm1, %v4756_v22, %v4027_v42 }
 0x231   : > { %v4023_v33 = vunpack.i.h.bf16 %v4021_v31  ;;  %v4022_v25 = vunpack.i.l.bf16 %v4021_v31  ;;  %v4031_v16 = vpop.permute.xlu1 %4030 }
 0x232   : > { %v4033_v43 = vunpack.i.h.bf16 %v4031_v16  ;;  %v4032_v47 = vunpack.i.l.bf16 %v4031_v16 }
 0x233   : > { %v1265_v23 = vsel %vm1238_vm11, %v1257_v24, %v4022_v25  ;;  %v1266_v36 = vsel %vm1238_vm11, %v1258_v34, %v4023_v33 }
 0x234   : > { %v4036_v37 = vpop.permute.xlu0 %4035  ;;  %v1275_v32 = vpack.c.bf16 %v1266_v36, %v1265_v23  ;;  %v1234_v59 = vsel %vm802_vm9, %v1226_v58, %v4032_v47  ;;  %v1235_v14 = vsel %vm802_vm9, %v1227_v56, %v4033_v43 }
 0x235   : > { %v4066_v38 = vpop.permute.xlu1 %4065  ;;  %v4038_v5 = vunpack.i.h.bf16 %v4036_v37 }
 0x236   : > { %1486 = vmatprep.mubr.bf16.mxu1 %v1275_v32  ;;  %v4068_v53 = vunpack.i.h.bf16 %v4066_v38  ;;  %v4067_v54 = vunpack.i.l.bf16 %v4066_v38 }
 0x237   : > { %1487 = vmatmul.mubr.bf16.gmra.mrb[4].mxu1 %v1274_v39  ;;  %v1254_v16 = vsel %vm388_vm1, %v4843_v8, %v4038_v5  ;;  %v4233_v5 = vld [vmem:[%s5576_s5 + $0x48] sm:$0xff]  }
 0x238   : > { %v4041_v45 = vpop.permute.xlu0 %4040  ;;  %v1243_v3 = vsel %vm1238_vm11, %v1234_v59, %v4067_v54  ;;  %v1244_v22 = vsel %vm1238_vm11, %v1235_v14, %v4068_v53  ;;  %v4229_v53 = vld [vmem:[%s5576_s5 + $0x80] sm:$0xff]   ;;  %v4230_v54 = vld [vmem:[%s5576_s5 + $0x88] sm:$0xff]  }
 0x239   : > { %v4071_v40 = vpop.permute.xlu1 %4070  ;;  %v4043_v51 = vunpack.i.h.bf16 %v4041_v45  ;;  %v4042_v52 = vunpack.i.l.bf16 %v4041_v45  ;;  %v1277_v31 = vpack.c.bf16 %v1244_v22, %v1243_v3  ;;  %3685 = vmatprep.subr.bf16.mxu0 %v4229_v53  ;;  %v4232_v3 = vld [vmem:[%s5576_s5] sm:$0xff]  }
 0x23a   : > { %v4073_v18 = vunpack.i.h.bf16 %v4071_v40  ;;  %v4072_v19 = vunpack.i.l.bf16 %v4071_v40  ;;  %3686 = vmatpush3.bf16.msra.mxu0 %v4229_v53 }
 0x23b   : > { %v1252_v29 = vsel %vm388_vm1, %v4822_v60, %v4043_v51  ;;  %v1251_v27 = vsel %vm388_vm1, %v4799_v49, %v4042_v52  ;;  %v4037_v60 = vunpack.i.l.bf16 %v4036_v37  ;;  %3687 = vmatprep.subr.bf16.mxu0 %v4230_v54 }
 0x23c   : > { %v4046_v50 = vpop.permute.xlu0 %4045  ;;  %v1229_v34 = vsel %vm388_vm1, %v4831_v63, %v4073_v18  ;;  %v1228_v35 = vsel %vm388_vm1, %v4814_v44, %v4072_v19  ;;  %v4236_v18 = vld [vmem:[%s5576_s5 + $0x10] sm:$0xff]   ;;  %v4237_v19 = vld [vmem:[%s5576_s5 + $0x58] sm:$0xff]  }
 0x23d   : > { %v4076_v30 = vpop.permute.xlu1 %4075  ;;  %v4048_v55 = vunpack.i.h.bf16 %v4046_v50  ;;  %v4047_v46 = vunpack.i.l.bf16 %v4046_v50  ;;  %v1253_v24 = vsel %vm388_vm1, %v4825_v61, %v4037_v60 }
 0x23e   : > { %v4078_v21 = vunpack.i.h.bf16 %v4076_v30  ;;  %v4077_v28 = vunpack.i.l.bf16 %v4076_v30  ;;  %3688 = vmatpush3.bf16.msra.mxu0 %v4230_v54 }
 0x23f   : > { %v1259_v1 = vsel %vm802_vm9, %v1251_v27, %v4047_v46  ;;  %v1260_v48 = vsel %vm802_vm9, %v1252_v29, %v4048_v55  ;;  %v4938_v46 = vld [vmem:[%s5575_s4] ss:$0 sm:$0xff] }
 0x240   : > { %v4051_v4 = vpop.permute.xlu0 %4050  ;;  %v1236_v37 = vsel %vm802_vm9, %v1228_v35, %v4077_v28  ;;  %v1237_v32 = vsel %vm802_vm9, %v1229_v34, %v4078_v21  ;;  %v4239_v28 = vld [vmem:[%s5576_s5 + $0x60] sm:$0xff]  }
 0x241   : > { %v4053_v62 = vunpack.i.h.bf16 %v4051_v4  ;;  %v4052_v0 = vunpack.i.l.bf16 %v4051_v4  ;;  %v4081_v7 = vpop.permute.xlu1 %4080 }
 0x242   : > { %v4083_v15 = vunpack.i.h.bf16 %v4081_v7  ;;  %v4082_v17 = vunpack.i.l.bf16 %v4081_v7  ;;  %v4234_v7 = vld [vmem:[%s5576_s5 + $0x8] sm:$0xff]  }
 0x243   : > { %v1267_v11 = vsel %vm1238_vm11, %v1259_v1, %v4052_v0  ;;  %v1268_v12 = vsel %vm1238_vm11, %v1260_v48, %v4053_v62  ;;  %v4231_v48 = vld [vmem:[%s5576_s5 + $0x40] sm:$0xff]  }
 0x244   : > { %v4056_v49 = vpop.permute.xlu0 %4055  ;;  %v1278_v20 = vpack.c.bf16 %v1268_v12, %v1267_v11  ;;  %v1245_v39 = vsel %vm1238_vm11, %v1236_v37, %v4082_v17  ;;  %v1246_v61 = vsel %vm1238_vm11, %v1237_v32, %v4083_v15  ;;  %3575 = vmatprep.subr.bf16.mxu1 %v4231_v48  ;;  %v4235_v11 = vld [vmem:[%s5576_s5 + $0x50] sm:$0xff]   ;;  %v4242_v37 = vld [vmem:[%s5576_s5 + $0x28] sm:$0xff]  }
 0x245   : > { %v4058_v33 = vunpack.i.h.bf16 %v4056_v49  ;;  %v4057_v25 = vunpack.i.l.bf16 %v4056_v49  ;;  %v1280_v40 = vpack.c.bf16 %v1246_v61, %v1245_v39  ;;  %3576 = vmatpush3.bf16.msra.mxu1 %v4232_v3  ;;  %v4243_v61 = vld [vmem:[%s5576_s5 + $0x70] sm:$0xff]  }
 0x246   : > { %1494 = vmatprep.mubr.bf16.mxu1 %v1278_v20  ;;  %3577 = vmatprep.subr.bf16.mxu1 %v4233_v5 }
 0x247   : > { %1495 = vmatmul.mubr.bf16.gmra.mrb[8].mxu1 %v1277_v31  ;;  %v1261_v38 = vsel %vm802_vm9, %v1253_v24, %v4057_v25  ;;  %v1262_v8 = vsel %vm802_vm9, %v1254_v16, %v4058_v33  ;;  %v4240_v25 = vld [vmem:[%s5576_s5 + $0x20] sm:$0xff]  }
 0x248   : > { %v4061_v13 = vpop.permute.xlu0 %4060 }
 0x249   : > { %v4063_v23 = vunpack.i.h.bf16 %v4061_v13  ;;  %v4062_v36 = vunpack.i.l.bf16 %v4061_v13  ;;  %3578 = vmatpush3.bf16.msra.mxu1 %v4234_v7 }
 0x24a   : > { %3579 = vmatprep.subr.bf16.mxu1 %v4235_v11 }
 0x24b   : > { %v1269_v63 = vsel %vm1238_vm11, %v1261_v38, %v4062_v36  ;;  %v1270_v45 = vsel %vm1238_vm11, %v1262_v8, %v4063_v23 }
 0x24c   : > { %v1281_v44 = vpack.c.bf16 %v1270_v45, %v1269_v63  ;;  %v4244_v45 = vld [vmem:[%s5576_s5 + $0x30] sm:$0xff]  }
 0x24d   : > { %3580 = vmatpush3.bf16.msra.mxu1 %v4236_v18 }
 0x24e   : > { %1502 = vmatprep.mubr.bf16.mxu1 %v1281_v44  ;;  %3581 = vmatprep.subr.bf16.mxu1 %v4237_v19  ;;  %v4245_v44 = vld [vmem:[%s5576_s5 + $0x78] sm:$0xff]  }
 0x24f   : > { %1503 = vmatmul.mubr.bf16.gmra.mrb[12].mxu1 %v1280_v40  ;;  %v4246_v40 = vld [vmem:[%s5576_s5 + $0x38] sm:$0xff]  }
 0x28c   : > { %v4917_v41 = vpop.f32.mrb[8].mxu0 }
 0x28d   : > { %v1545_v42 = vpop.f32.mrb[9].mxu0 }
 0x28e   : > { %v4919_v43 = vpop.f32.mrb[10].mxu0 }
 0x28f   : > { %v1548_v47 = vpop.f32.mrb[11].mxu0 }
 0x294   : > { %v4921_v50 = vpop.f32.mrb[12].mxu0 }
 0x295   : > { %v4923_v51 = vpop.f32.mrb[13].mxu0 }
 0x296   : > { %v4925_v52 = vpop.f32.mrb[14].mxu0 }
 0x297   : > { %v4927_v30 = vpop.f32.mrb[15].mxu0 }
 0x2f2   : > { %v3545_v55 = vpop.f32.mrb[0].mxu1 }
 0x2f3   : > { %v3546_v56 = vpop.f32.mrb[1].mxu1 }
 0x2f4   : > { %v3547_v58 = vadd.f32 %v3546_v56, %v3545_v55  ;;  %v3548_v4 = vpop.f32.mrb[2].mxu1 }
 0x2f5   : > { %v3549_v59 = vpop.f32.mrb[3].mxu1 }
 0x2f6   : > { %v1481_v14 = vadd.f32 %v3547_v58, %v4938_v46  ;;  %v3550_v29 = vadd.f32 %v3549_v59, %v3548_v4 }
 0x2f8   : > { %v1546_v27 = vadd.f32 %v1545_v42, %v1481_v14  ;;  %v1484_v62 = vadd.f32 %v3550_v29, %v4938_v46 }
 0x2fa   : > { %v1576_v0 = vmax.f32 %v1546_v27, 0.0  ;;  %v1549_v1 = vadd.f32 %v1548_v47, %v1484_v62 }
 0x2fc   : > { %1584 = vst.msk [vmem:[#allocation2 + $0x11] sm:$0xff] %vm388_vm1, %v1576_v0  ;;  %v1577_v22 = vmax.f32 %v1549_v1, 0.0 }
 0x2fe   : > { %1585 = vst.msk [vmem:[#allocation2 + $0x21] sm:$0xff] %vm388_vm1, %v1577_v22 }
 0x303   : > { %v4959_v12 = vld [vmem:[#allocation2 + $0x11] sm:$0xff] }
 0x304   : > { %v4084_v60 = vpack.i.bf16 %v4959_v12, %v4729_v2  ;;  %v1632_v49 = vld [vmem:[#allocation2 + $0x12] sm:$0xff] }
 0x305   : > { %v4969_v20 = vld [vmem:[#allocation2 + $0x22] sm:$0xff]  ;;  %v4238_v2 = vld [vmem:[%s5576_s5 + $0x18] sm:$0xff]   ;;  %v4089_v31 = vpack.i.bf16 %v1632_v49, %v4741_v10  ;;  %v4987_v34 = vld [vmem:[#allocation2 + $0x10] sm:$0xff] }
 0x306   : > { %4085 = vrot.lane.b32.xlu1 %v4084_v60, %s4346_s14  ;;  %v4094_v21 = vpack.i.bf16 %v4969_v20, %v1632_v49  ;;  %v4981_v17 = vld [vmem:[#allocation2 + $0x20] sm:$0xff]  ;;  %3582 = vmatpush3.bf16.msra.mxu1 %v4238_v2  ;;  %v4241_v10 = vld [vmem:[%s5576_s5 + $0x68] sm:$0xff]  }
 0x307   : > { %3583 = vmatprep.subr.bf16.mxu1 %v4239_v28  ;;  %v4099_v13 = vpack.i.bf16 %v4981_v17, %v4987_v34  ;;  %v5016_v42 = vld [vmem:[#allocation2 + $0x21] sm:$0xff] }
 0x308   : > { %4095 = vrot.lane.b32.xlu0 %v4094_v21, %s4346_s14 }
 0x30a   : > { %v3551_v15 = vpop.f32.mrb[4].mxu1  ;;  %4090 = vrot.lane.b32.xlu1 %v4089_v31, %s5588_s23  ;;  %3584 = vmatpush3.bf16.msra.mxu1 %v4240_v25 }
 0x30b   : > { %v3552_v33 = vpop.f32.mrb[5].mxu1  ;;  %3585 = vmatprep.subr.bf16.mxu1 %v4241_v10 }
 0x30c   : > { %v3553_v16 = vadd.f32 %v3552_v33, %v3551_v15  ;;  %v3554_v24 = vpop.f32.mrb[6].mxu1 }
 0x30d   : > { %v3555_v35 = vpop.f32.mrb[7].mxu1 }
 0x30e   : > { %v1489_v23 = vadd.f32 %v3553_v16, %v4938_v46  ;;  %v3556_v36 = vadd.f32 %v3555_v35, %v3554_v24  ;;  %4100 = vrot.lane.b32.xlu1 %v4099_v13, %s4352_s18  ;;  %3586 = vmatpush3.bf16.msra.mxu1 %v4242_v37 }
 0x30f   : > { %3587 = vmatprep.subr.bf16.mxu1 %v4243_v61 }
 0x310   : > { %v1554_v32 = vadd.f32 %v4917_v41, %v1489_v23  ;;  %v1492_v38 = vadd.f32 %v3556_v36, %v4938_v46 }
 0x312   : > { %v1578_v8 = vmax.f32 %v1554_v32, 0.0  ;;  %v1557_v39 = vadd.f32 %v4919_v43, %v1492_v38  ;;  %3588 = vmatpush3.bf16.msra.mxu1 %v4244_v45 }
 0x313   : > { %3589 = vmatprep.subr.bf16.mxu1 %v4245_v44 }
 0x314   : > { %1586 = vst.msk [vmem:[#allocation2 + $0x31] sm:$0xff] %vm388_vm1, %v1578_v8  ;;  %v1579_v63 = vmax.f32 %v1557_v39, 0.0 }
 0x316   : > { %1587 = vst.msk [vmem:[#allocation2 + $0x41] sm:$0xff] %vm388_vm1, %v1579_v63  ;;  %3590 = vmatpush3.bf16.msra.mxu1 %v4246_v40 }
 0x31a   : > { %v3557_v41 = vpop.f32.mrb[8].mxu1 }
 0x31b   : > { %v3558_v43 = vpop.f32.mrb[9].mxu1  ;;  %v1657_v47 = vld [vmem:[#allocation2 + $0x32] sm:$0xff] }
 0x31c   : > { %v5018_v53 = vld [vmem:[#allocation2 + $0x30] sm:$0xff]  ;;  %v3559_v55 = vadd.f32 %v3558_v43, %v3557_v41  ;;  %v3560_v56 = vpop.f32.mrb[10].mxu1  ;;  %v1906_v58 = vpack.c.bf16 %v1657_v47, %v4969_v20  ;;  %v4119_v1 = vpack.i.bf16 %v1657_v47, %v4969_v20 }
 0x31d   : > { %v5020_v54 = vld [vmem:[#allocation2 + $0x31] sm:$0xff]  ;;  %v4104_v4 = vpack.i.bf16 %v5018_v53, %v4981_v17  ;;  %v3561_v14 = vpop.f32.mrb[11].mxu1  ;;  %v1635_v48 = vld [vmem:[#allocation2 + $0x42] sm:$0xff] }
 0x31e   : > { %v4114_v59 = vpack.i.bf16 %v5020_v54, %v5016_v42  ;;  %v1497_v29 = vadd.f32 %v3559_v55, %v4938_v46  ;;  %v3562_v27 = vadd.f32 %v3561_v14, %v3560_v56  ;;  %3689 = vmatprep.mubr.msk.bf16.mxu0 %vm388_vm1, %v1906_v58  ;;  %v5036_v7 = vld [vmem:[#allocation2 + $0x40] sm:$0xff]  ;;  %v4124_v19 = vpack.i.bf16 %v1635_v48, %v1657_v47 }
 0x31f   : > { %4105 = vrot.lane.b32.xlu0 %v4104_v4, %s5588_s23  ;;  %v4129_v20 = vpack.i.bf16 %v5036_v7, %v5018_v53  ;;  %v5049_v33 = vld [vmem:[#allocation2 + $0x41] sm:$0xff] }
 0x320   : > { %4115 = vrot.lane.b32.xlu1 %v4114_v59, %s4346_s14  ;;  %v1562_v62 = vadd.f32 %v4923_v51, %v1497_v29  ;;  %v1500_v0 = vadd.f32 %v3562_v27, %v4938_v46 }
 0x322   : > { %v1580_v3 = vmax.f32 %v1562_v62, 0.0  ;;  %v1565_v22 = vadd.f32 %v4927_v30, %v1500_v0  ;;  %v3563_v5 = vpop.f32.mrb[12].mxu1 }
 0x323   : > { %4110 = vrot.lane.b32.xlu0 %v4114_v59, %s4352_s18  ;;  %v3564_v11 = vpop.f32.mrb[13].mxu1 }
 0x324   : > { %4120 = vrot.lane.b32.xlu1 %v4119_v1, %s5588_s23  ;;  %1588 = vst.msk [vmem:[#allocation2 + $0x51] sm:$0xff] %vm388_vm1, %v1580_v3  ;;  %v1581_v60 = vmax.f32 %v1565_v22, 0.0  ;;  %v3565_v51 = vadd.f32 %v3564_v11, %v3563_v5  ;;  %v3566_v18 = vpop.f32.mrb[14].mxu1 }
 0x325   : > { %v3567_v49 = vpop.f32.mrb[15].mxu1 }
 0x326   : > { %1589 = vst.msk [vmem:[#allocation2 + $0x61] sm:$0xff] %vm388_vm1, %v1581_v60  ;;  %v1505_v30 = vadd.f32 %v3565_v51, %v4938_v46  ;;  %v3568_v21 = vadd.f32 %v3567_v49, %v3566_v18 }
 0x327   : > { %4125 = vrot.lane.b32.xlu0 %v4124_v19, %s4346_s14 }
 0x328   : > { %4130 = vrot.lane.b32.xlu1 %v4129_v20, %s4352_s18  ;;  %v1570_v2 = vadd.f32 %v4921_v50, %v1505_v30  ;;  %v1508_v28 = vadd.f32 %v3568_v21, %v4938_v46 }
 0x32a   : > { %v1582_v31 = vmax.f32 %v1570_v2, 0.0  ;;  %v1573_v15 = vadd.f32 %v4925_v52, %v1508_v28 }
 0x32b   : > { %v1659_v25 = vld [vmem:[#allocation2 + $0x52] sm:$0xff] }
 0x32c   : > { %v5051_v16 = vld [vmem:[#allocation2 + $0x50] sm:$0xff]  ;;  %1590 = vst.msk [vmem:[#allocation2 + $0x71] sm:$0xff] %vm388_vm1, %v1582_v31  ;;  %v1583_v10 = vmax.f32 %v1573_v15, 0.0  ;;  %v1909_v35 = vpack.c.bf16 %v1659_v25, %v1635_v48  ;;  %v4149_v52 = vpack.i.bf16 %v1659_v25, %v1635_v48 }
 0x32d   : > { %v5053_v24 = vld [vmem:[#allocation2 + $0x51] sm:$0xff]  ;;  %v4134_v13 = vpack.i.bf16 %v5051_v16, %v5036_v7  ;;  %v1660_v46 = vld [vmem:[#allocation2 + $0x62] sm:$0xff] }
 0x32e   : > { %v4144_v50 = vpack.i.bf16 %v5053_v24, %v5049_v33  ;;  %1591 = vst.msk [vmem:[#allocation2 + $0x81] sm:$0xff] %vm388_vm1, %v1583_v10  ;;  %3690 = vmatmul.mubr.msk.bf16.vlgmr.msra.gmra.mrb[16].mxu0 %vm388_vm1, %v1909_v35  ;;  %v5065_v23 = vld [vmem:[#allocation2 + $0x60] sm:$0xff]  ;;  %v4154_v32 = vpack.i.bf16 %v1660_v46, %v1659_v25 }
 0x32f   : > { %4135 = vrot.lane.b32.xlu0 %v4134_v13, %s5588_s23  ;;  %v4159_v38 = vpack.i.bf16 %v5065_v23, %v5051_v16  ;;  %v5081_v44 = vld [vmem:[#allocation2 + $0x61] sm:$0xff] }
 0x330   : > { %4145 = vrot.lane.b32.xlu1 %v4144_v50, %s4346_s14 }
 0x333   : > { %4140 = vrot.lane.b32.xlu0 %v4144_v50, %s4352_s18  ;;  %v1661_v36 = vld [vmem:[#allocation2 + $0x72] sm:$0xff] }
 0x334   : > { %4150 = vrot.lane.b32.xlu1 %v4149_v52, %s5588_s23  ;;  %v1912_v37 = vpack.c.bf16 %v1661_v36, %v1660_v46  ;;  %v5070_v39 = vld [vmem:[#allocation2 + $0x70] sm:$0xff]  ;;  %v4179_v41 = vpack.i.bf16 %v1661_v36, %v1660_v46 }
 0x335   : > { %v1662_v8 = vld [vmem:[#allocation2 + $0x82] sm:$0xff]  ;;  %v5075_v63 = vld [vmem:[#allocation2 + $0x71] sm:$0xff]  ;;  %v4164_v45 = vpack.i.bf16 %v5070_v39, %v5065_v23 }
 0x336   : > { %3693 = vmatprep.mubr.msk.bf16.mxu0 %vm388_vm1, %v1912_v37  ;;  %v1915_v61 = vpack.c.bf16 %v4811_v57, %v1662_v8  ;;  %v4174_v40 = vpack.i.bf16 %v5075_v63, %v5081_v44  ;;  %v1623_v57 = vld [vmem:[#allocation2 + $0x80] sm:$0xff]  ;;  %v4184_v43 = vpack.i.bf16 %v1662_v8, %v1661_v36 }
 0x337   : > { %4155 = vrot.lane.b32.xlu0 %v4154_v32, %s4346_s14  ;;  %v4199_v47 = vpack.i.bf16 %v1623_v57, %v5070_v39  ;;  %v4189_v55 = vpack.i.bf16 %v4838_v6, %v1623_v57  ;;  %v5093_v56 = vld [vmem:[#allocation2 + $0x81] sm:$0xff] }
 0x338   : > { %4160 = vrot.lane.b32.xlu1 %v4159_v38, %s4352_s18  ;;  %3694 = vmatmul.mubr.msk.bf16.gmra.mrb[20].mxu0 %vm388_vm1, %v1915_v61  ;;  %v4194_v58 = vpack.i.bf16 %v4845_v9, %v5093_v56 }
 0x33b   : > { %4165 = vrot.lane.b32.xlu0 %v4164_v45, %s5588_s23 }
 0x33c   : > { %4175 = vrot.lane.b32.xlu1 %v4174_v40, %s4346_s14 }
 0x33f   : > { %4170 = vrot.lane.b32.xlu0 %v4174_v40, %s4352_s18 }
 0x340   : > { %4180 = vrot.lane.b32.xlu1 %v4179_v41, %s5588_s23 }
 0x343   : > { %4185 = vrot.lane.b32.xlu0 %v4184_v43, %s4346_s14  ;;  %s3350_s14 = sshll.u32 %s379_s12, 7 }
 0x344   : > { %4200 = vrot.lane.b32.xlu1 %v4199_v47, %s4352_s18 }
 0x347   : > { %4190 = vrot.lane.b32.xlu0 %v4189_v55, %s5588_s23  ;;  %s5500_s23 = scalar_lea.vmem [#allocation4], %s3350_s14  ;;  %s4285_s14 = scalar_lea.vmem %s4284_s26, 4096 }
 0x348   : > { %s3284_s13 = sshll.u32 %s5500_s23, 4  ;;  %s5523_s13 = int_to_ptr.vmem [resolvable:$true] %s3284_s13 }
 0x349   : > { %s4279_s30 = scalar_lea.vmem %s5523_s13, 2048  ;;  %p4286_p0 = scmp.lt.s32.totalorder %s5523_s13, %s4284_s26 }
 0x34a   : > { %p4280_p11 = scmp.ne.s32.totalorder %s5523_s13, %s4279_s30  ;;  %p4287_p1 = scmp.lt.s32.totalorder %s4285_s14, %s4279_s30 }
 0x34b   : > { %4195 = vrot.lane.b32.xlu0 %v4194_v58, %s4352_s18  ;;  %s3519_s18 = sshll.u32 %s4440_s8, 11  ;;  %s5529_s8 = scalar_lea.sflag [#allocation5], %s379_s12 }
 0x34c   : > { %s5521_s16 = scalar_lea.hbm %s5582_s11, %s3519_s18  ;;  %p4281_p12 = pnand %p4280_p11, %p4457_p5 }
 0x34d   : > { %p4288_p2 = por %p4287_p1, %p4286_p0 }
 0x34e   : > { %p4282_p13 = pneg %p4281_p12 }
 0x350   : > { %p4289_p3 = pnand %p4288_p2, %p4282_p13 }
 0x378   : > { %v4086_v4 = vpop.permute.xlu1 %4085 }
 0x379   : > { %v4088_v27 = vunpack.i.h.bf16 %v4086_v4  ;;  %v4087_v62 = vunpack.i.l.bf16 %v4086_v4 }
 0x37a   : > { %v4096_v14 = vpop.permute.xlu0 %4095 }
 0x37b   : > { %v4098_v0 = vunpack.i.h.bf16 %v4096_v14  ;;  %v4097_v1 = vunpack.i.l.bf16 %v4096_v14  ;;  %v1856_v9 = vsel %vm388_vm1, %v4851_v26, %v4087_v62  ;;  %v1857_v18 = vsel %vm388_vm1, %v4987_v34, %v4088_v27 }
 0x37c   : > { %v4091_v59 = vpop.permute.xlu1 %4090 }
 0x37d   : > { %v4093_v3 = vunpack.i.h.bf16 %v4091_v59  ;;  %v4092_v6 = vunpack.i.l.bf16 %v4091_v59  ;;  %v1881_v19 = vsel %vm388_vm1, %v5016_v42, %v4098_v0  ;;  %v1880_v49 = vsel %vm388_vm1, %v4959_v12, %v4097_v1 }
 0x37f   : > { %v1864_v30 = vsel %vm802_vm9, %v1856_v9, %v4092_v6  ;;  %v1865_v21 = vsel %vm802_vm9, %v1857_v18, %v4093_v3 }
 0x380   : > { %v4101_v29 = vpop.permute.xlu1 %4100 }
 0x381   : > { %v4103_v5 = vunpack.i.h.bf16 %v4101_v29  ;;  %v4102_v11 = vunpack.i.l.bf16 %v4101_v29 }
 0x383   : > { %v1872_v31 = vsel %vm1238_vm11, %v1864_v30, %v4102_v11  ;;  %v1873_v26 = vsel %vm1238_vm11, %v1865_v21, %v4103_v5 }
 0x384   : > { %v1904_v35 = vpack.c.bf16 %v1873_v26, %v1872_v31 }
 0x391   : > { %v4106_v48 = vpop.permute.xlu0 %4105 }
 0x392   : > { %v4116_v22 = vpop.permute.xlu1 %4115  ;;  %v4108_v60 = vunpack.i.h.bf16 %v4106_v48  ;;  %v4107_v51 = vunpack.i.l.bf16 %v4106_v48 }
 0x393   : > { %v4118_v52 = vunpack.i.h.bf16 %v4116_v22  ;;  %v4117_v46 = vunpack.i.l.bf16 %v4116_v22 }
 0x394   : > { %v1888_v15 = vsel %vm802_vm9, %v1880_v49, %v4107_v51  ;;  %v1889_v34 = vsel %vm802_vm9, %v1881_v19, %v4108_v60 }
 0x395   : > { %v4111_v20 = vpop.permute.xlu0 %4110  ;;  %v1859_v43 = vsel %vm388_vm1, %v5018_v53, %v4118_v52  ;;  %v1858_v47 = vsel %vm388_vm1, %v4981_v17, %v4117_v46 }
 0x396   : > { %v4113_v2 = vunpack.i.h.bf16 %v4111_v20  ;;  %v4112_v28 = vunpack.i.l.bf16 %v4111_v20  ;;  %v4121_v25 = vpop.permute.xlu1 %4120 }
 0x397   : > { %v4123_v36 = vunpack.i.h.bf16 %v4121_v25  ;;  %v4122_v37 = vunpack.i.l.bf16 %v4121_v25 }
 0x398   : > { %v1896_v42 = vsel %vm1238_vm11, %v1888_v15, %v4112_v28  ;;  %v1897_v12 = vsel %vm1238_vm11, %v1889_v34, %v4113_v2 }
 0x399   : > { %v1905_v10 = vpack.c.bf16 %v1897_v12, %v1896_v42  ;;  %v4126_v13 = vpop.permute.xlu0 %4125  ;;  %v1866_v55 = vsel %vm802_vm9, %v1858_v47, %v4122_v37  ;;  %v1867_v58 = vsel %vm802_vm9, %v1859_v43, %v4123_v36 }
 0x39a   : > { %v4131_v50 = vpop.permute.xlu1 %4130  ;;  %v4128_v38 = vunpack.i.h.bf16 %v4126_v13  ;;  %v4127_v8 = vunpack.i.l.bf16 %v4126_v13 }
 0x39b   : > { %2111 = vmatprep.mubr.bf16.mxu1 %v1905_v10  ;;  %v4133_v45 = vunpack.i.h.bf16 %v4131_v50  ;;  %v4132_v40 = vunpack.i.l.bf16 %v4131_v50 }
 0x39c   : > { %2112 = vmatmul.mubr.bf16.vlgmr.msra.gmra.mrb[16].mxu1 %v1904_v35  ;;  %v1883_v59 = vsel %vm388_vm1, %v5049_v33, %v4128_v38  ;;  %v1882_v14 = vsel %vm388_vm1, %v5020_v54, %v4127_v8 }
 0x39d   : > { %v1874_v17 = vsel %vm1238_vm11, %v1866_v55, %v4132_v40  ;;  %v1875_v1 = vsel %vm1238_vm11, %v1867_v58, %v4133_v45 }
 0x39e   : > { %v1907_v5 = vpack.c.bf16 %v1875_v1, %v1874_v17 }
 0x3a1   : > { %v4136_v32 = vpop.permute.xlu0 %4135 }
 0x3a2   : > { %v4146_v61 = vpop.permute.xlu1 %4145  ;;  %v4138_v41 = vunpack.i.h.bf16 %v4136_v32  ;;  %v4137_v57 = vunpack.i.l.bf16 %v4136_v32 }
 0x3a3   : > { %v4148_v54 = vunpack.i.h.bf16 %v4146_v61  ;;  %v4147_v11 = vunpack.i.l.bf16 %v4146_v61 }
 0x3a4   : > { %v1890_v0 = vsel %vm802_vm9, %v1882_v14, %v4137_v57  ;;  %v1891_v53 = vsel %vm802_vm9, %v1883_v59, %v4138_v41 }
 0x3a5   : > { %v4141_v4 = vpop.permute.xlu0 %4140  ;;  %v1861_v28 = vsel %vm388_vm1, %v5051_v16, %v4148_v54  ;;  %v1860_v31 = vsel %vm388_vm1, %v5036_v7, %v4147_v11  ;;  %v2280_v54 = vld [vmem:[#allocation2 + $0x1] sm:$0xff] }
 0x3a6   : > { %v4143_v29 = vunpack.i.h.bf16 %v4141_v4  ;;  %v4142_v27 = vunpack.i.l.bf16 %v4141_v4  ;;  %v4151_v62 = vpop.permute.xlu1 %4150  ;;  %v5173_v11 = vld [vmem:[%s5578_s7 + $0x1] ss:$0 sm:$0xff] }
 0x3a7   : > { %v4153_v60 = vunpack.i.h.bf16 %v4151_v62  ;;  %v4152_v51 = vunpack.i.l.bf16 %v4151_v62 }
 0x3a8   : > { %v1898_v48 = vsel %vm1238_vm11, %v1890_v0, %v4142_v27  ;;  %v1899_v3 = vsel %vm1238_vm11, %v1891_v53, %v4143_v29 }
 0x3a9   : > { %v4156_v6 = vpop.permute.xlu0 %4155  ;;  %v1908_v33 = vpack.c.bf16 %v1899_v3, %v1898_v48  ;;  %v1868_v26 = vsel %vm802_vm9, %v1860_v31, %v4152_v51  ;;  %v1869_v15 = vsel %vm802_vm9, %v1861_v28, %v4153_v60  ;;  %v2296_v60 = vmul.f32 %v5173_v11, %v2280_v54  ;;  %v2336_v51 = vld [vmem:[#allocation2 + $0x2] sm:$0xff] }
 0x3aa   : > { %v4161_v22 = vpop.permute.xlu1 %4160  ;;  %v4158_v18 = vunpack.i.h.bf16 %v4156_v6  ;;  %v4157_v19 = vunpack.i.l.bf16 %v4156_v6  ;;  %v5193_v28 = vld [vmem:[%s5578_s7 + $0x7] ss:$0 sm:$0xff] }
 0x3ab   : > { %2119 = vmatprep.mubr.bf16.mxu1 %v1908_v33  ;;  %v4163_v20 = vunpack.i.h.bf16 %v4161_v22  ;;  %v4162_v30 = vunpack.i.l.bf16 %v4161_v22 }
 0x3ac   : > { %2120 = vmatmul.mubr.bf16.gmra.mrb[20].mxu1 %v1907_v5  ;;  %v1885_v25 = vsel %vm388_vm1, %v5081_v44, %v4158_v18  ;;  %v1884_v42 = vsel %vm388_vm1, %v5053_v24, %v4157_v19  ;;  %v2304_v18 = vsel %vm388_vm1, %v2296_v60, 0.0 }
 0x3ad   : > { %v4166_v9 = vpop.permute.xlu0 %4165  ;;  %v1876_v7 = vsel %vm1238_vm11, %v1868_v26, %v4162_v30  ;;  %v1877_v50 = vsel %vm1238_vm11, %v1869_v15, %v4163_v20  ;;  %v2567_v20 = vld [vmem:[#allocation2 + $0x90] sm:$0xff]  ;;  %v5187_v30 = vld [vmem:[%s5578_s7 + $0x6] ss:$0 sm:$0xff] }
 0x3ae   : > { %v4176_v49 = vpop.permute.xlu1 %4175  ;;  %v4168_v21 = vunpack.i.h.bf16 %v4166_v9  ;;  %v4167_v2 = vunpack.i.l.bf16 %v4166_v9  ;;  %v1910_v37 = vpack.c.bf16 %v1877_v50, %v1876_v7  ;;  %v5179_v9 = vld [vmem:[%s5578_s7 + $0x2] ss:$0 sm:$0xff]  ;;  %v5209_v50 = vld [vmem:[%s5577_s6] ss:$0 sm:$0xff] }
 0x3af   : > { %v4178_v24 = vunpack.i.h.bf16 %v4176_v49  ;;  %v4177_v32 = vunpack.i.l.bf16 %v4176_v49  ;;  %v2352_v19 = vmul.f32 %v5179_v9, %v2336_v51  ;;  %v5243_v51 = vld [vmem:[%s5578_s7 + $0x5] ss:$0 sm:$0xff] }
 0x3b0   : > { %v1892_v13 = vsel %vm802_vm9, %v1884_v42, %v4167_v2  ;;  %v1893_v16 = vsel %vm802_vm9, %v1885_v25, %v4168_v21  ;;  %v2623_v21 = vld [vmem:[#allocation2 + $0x91] sm:$0xff]  ;;  %v2583_v2 = vmul.f32 %v5187_v30, %v2567_v20 }
 0x3b1   : > { %v4171_v34 = vpop.permute.xlu0 %4170  ;;  %v1863_v58 = vsel %vm388_vm1, %v5070_v39, %v4178_v24  ;;  %v1862_v4 = vsel %vm388_vm1, %v5065_v23, %v4177_v32  ;;  %v2360_v49 = vsel %vm388_vm1, %v2352_v19, 0.0  ;;  %v2639_v31 = vmul.f32 %v5193_v28, %v2623_v21 }
 0x3b2   : > { %v4173_v12 = vunpack.i.h.bf16 %v4171_v34  ;;  %v4172_v10 = vunpack.i.l.bf16 %v4171_v34  ;;  %v4181_v35 = vpop.permute.xlu1 %4180  ;;  %2361 = vadd.xlane.f32.xlu1 %v2360_v49  ;;  %v2605_v26 = vsel %vm388_vm1, %v2583_v2, 0.0 }
 0x3b3   : > { %v4183_v8 = vunpack.i.h.bf16 %v4181_v35  ;;  %v4182_v61 = vunpack.i.l.bf16 %v4181_v35  ;;  %v2661_v34 = vsel %vm388_vm1, %v2639_v31, 0.0 }
 0x3b4   : > { %v1900_v52 = vsel %vm1238_vm11, %v1892_v13, %v4172_v10  ;;  %v1901_v46 = vsel %vm1238_vm11, %v1893_v16, %v4173_v12 }
 0x3b5   : > { %v4186_v36 = vpop.permute.xlu0 %4185  ;;  %v1911_v44 = vpack.c.bf16 %v1901_v46, %v1900_v52  ;;  %v1870_v59 = vsel %vm802_vm9, %v1862_v4, %v4182_v61  ;;  %v1871_v14 = vsel %vm802_vm9, %v1863_v58, %v4183_v8 }
 0x3b6   : > { %v4201_v38 = vpop.permute.xlu1 %4200  ;;  %v4188_v40 = vunpack.i.h.bf16 %v4186_v36  ;;  %v4187_v41 = vunpack.i.l.bf16 %v4186_v36  ;;  %2662 = vadd.xlane.f32.xlu1 %v2661_v34 }
 0x3b7   : > { %2127 = vmatprep.mubr.bf16.mxu1 %v1911_v44  ;;  %v4203_v57 = vunpack.i.h.bf16 %v4201_v38  ;;  %v4202_v43 = vunpack.i.l.bf16 %v4201_v38 }
 0x3b8   : > { %2128 = vmatmul.mubr.bf16.gmra.mrb[24].mxu1 %v1910_v37  ;;  %v1887_v27 = vsel %vm388_vm1, %v5093_v56, %v4188_v40  ;;  %v1886_v62 = vsel %vm388_vm1, %v5075_v63, %v4187_v41  ;;  %v2225_v56 = vld [vmem:[#allocation2] sm:$0xff] }
 0x3b9   : > { %v4191_v45 = vpop.permute.xlu0 %4190  ;;  %v1878_v1 = vsel %vm1238_vm11, %v1870_v59, %v4202_v43  ;;  %v1879_v23 = vsel %vm1238_vm11, %v1871_v14, %v4203_v57  ;;  %v5166_v63 = vld [vmem:[%s5578_s7] ss:$0 sm:$0xff]  ;;  %v5218_v41 = vld [vmem:[%s5578_s7 + $0x3] ss:$0 sm:$0xff] }
 0x3ba   : > { %v4193_v47 = vunpack.i.h.bf16 %v4191_v45  ;;  %v4192_v55 = vunpack.i.l.bf16 %v4191_v45  ;;  %v1913_v33 = vpack.c.bf16 %v1879_v23, %v1878_v1  ;;  %v2240_v22 = vmul.f32 %v5166_v63, %v2225_v56  ;;  %v5230_v1 = vld [vmem:[%s5578_s7 + $0x4] ss:$0 sm:$0xff] }
 0x3bc   : > { %v1894_v17 = vsel %vm802_vm9, %v1886_v62, %v4192_v55  ;;  %v1895_v39 = vsel %vm802_vm9, %v1887_v27, %v4193_v47  ;;  %v2248_v5 = vsel %vm388_vm1, %v2240_v22, 0.0 }
 0x3bd   : > { %v4196_v29 = vpop.permute.xlu0 %4195  ;;  %2249 = vadd.xlane.f32.xlu0 %v2248_v5 }
 0x3be   : > { %v4198_v0 = vunpack.i.h.bf16 %v4196_v29  ;;  %v4197_v53 = vunpack.i.l.bf16 %v4196_v29 }
 0x3c0   : > { %v1902_v48 = vsel %vm1238_vm11, %v1894_v17, %v4197_v53  ;;  %v1903_v3 = vsel %vm1238_vm11, %v1895_v39, %v4198_v0 }
 0x3c1   : > { %v1914_v6 = vpack.c.bf16 %v1903_v3, %v1902_v48  ;;  %2305 = vadd.xlane.f32.xlu0 %v2304_v18 }
 0x3c3   : > { %2135 = vmatprep.mubr.bf16.mxu1 %v1914_v6 }
 0x3c4   : > { %2136 = vmatmul.mubr.bf16.gmra.mrb[28].mxu1 %v1913_v33 }
 0x3c5   : > { %2606 = vadd.xlane.f32.xlu0 %v2605_v26 }
 0x401   : > { %v3691_v15 = vpop.f32.mrb[16].mxu0 }
 0x402   : > { %v2178_v25 = vpop.f32.mrb[17].mxu0 }
 0x403   : > { %v3692_v42 = vpop.f32.mrb[18].mxu0 }
 0x404   : > { %v2181_v12 = vpop.f32.mrb[19].mxu0 }
 0x40b   : > { %v5198_v10 = vpop.f32.mrb[20].mxu0 }
 0x40c   : > { %v5200_v35 = vpop.f32.mrb[21].mxu0 }
 0x40d   : > { %v5202_v13 = vpop.f32.mrb[22].mxu0 }
 0x40e   : > { %v5204_v16 = vpop.f32.mrb[23].mxu0 }
 0x43f   : > { %v2362_v34 = vpop.xlane.xlu1 %2361 }
 0x44a   : > { %v2250_v6 = vpop.xlane.xlu0 %2249 }
 0x44e   : > { %v2306_v49 = vpop.xlane.xlu0 %2305 }
 0x44f   : > { %v2328_v21 = vadd.f32 %v2306_v49, %v2250_v6 }
 0x46f   : > { %v3591_v7 = vpop.f32.mrb[16].mxu1 }
 0x470   : > { %v3592_v52 = vpop.f32.mrb[17].mxu1 }
 0x471   : > { %v3593_v46 = vadd.f32 %v3592_v52, %v3591_v7  ;;  %v3594_v36 = vpop.f32.mrb[18].mxu1 }
 0x472   : > { %v3595_v44 = vpop.f32.mrb[19].mxu1 }
 0x473   : > { %v2114_v37 = vadd.f32 %v3593_v46, %v5209_v50  ;;  %v3596_v24 = vadd.f32 %v3595_v44, %v3594_v36 }
 0x475   : > { %v2179_v32 = vadd.f32 %v2178_v25, %v2114_v37  ;;  %v2117_v38 = vadd.f32 %v3596_v24, %v5209_v50 }
 0x477   : > { %v2209_v8 = vmax.f32 %v2179_v32, 0.0  ;;  %v2182_v61 = vadd.f32 %v2181_v12, %v2117_v38 }
 0x479   : > { %2217 = vst.msk [vmem:[#allocation2 + $0x11] sm:$0xff] %vm388_vm1, %v2209_v8  ;;  %v2210_v45 = vmax.f32 %v2182_v61, 0.0 }
 0x47b   : > { %2218 = vst.msk [vmem:[#allocation2 + $0x21] sm:$0xff] %vm388_vm1, %v2210_v45 }
 0x47f   : > { %v3597_v40 = vpop.f32.mrb[20].mxu1 }
 0x480   : > { %v3598_v57 = vpop.f32.mrb[21].mxu1  ;;  %v2281_v43 = vld [vmem:[#allocation2 + $0x11] sm:$0xff] }
 0x481   : > { %v2226_v47 = vld [vmem:[#allocation2 + $0x10] sm:$0xff]  ;;  %v3599_v58 = vadd.f32 %v3598_v57, %v3597_v40  ;;  %v3600_v4 = vpop.f32.mrb[22].mxu1  ;;  %v2297_v59 = vmul.f32 %v5173_v11, %v2281_v43  ;;  %v2464_v56 = vmul.f32 %v5230_v1, %v2281_v43 }
 0x482   : > { %v2337_v55 = vld [vmem:[#allocation2 + $0x12] sm:$0xff]  ;;  %v2241_v14 = vmul.f32 %v5166_v63, %v2226_v47  ;;  %v3601_v29 = vpop.f32.mrb[23].mxu1  ;;  %v2408_v62 = vmul.f32 %v5218_v41, %v2226_v47  ;;  %v5232_v23 = vld [vmem:[#allocation2 + $0x21] sm:$0xff] }
 0x483   : > { %v2353_v27 = vmul.f32 %v5179_v9, %v2337_v55  ;;  %v2122_v0 = vadd.f32 %v3599_v58, %v5209_v50  ;;  %v3602_v53 = vadd.f32 %v3601_v29, %v3600_v4  ;;  %v2307_v17 = vsel %vm388_vm1, %v2297_v59, 0.0  ;;  %v2393_v18 = vld [vmem:[#allocation2 + $0x20] sm:$0xff] }
 0x484   : > { %v2251_v39 = vsel %vm388_vm1, %v2241_v14, 0.0  ;;  %2308 = vadd.xlane.f32.xlu0 %v2307_v17  ;;  %v2416_v54 = vsel %vm388_vm1, %v2408_v62, 0.0  ;;  %v2298_v60 = vmul.f32 %v5173_v11, %v5232_v23  ;;  %v2520_v20 = vmul.f32 %v5243_v51, %v2337_v55  ;;  %v2505_v38 = vld [vmem:[#allocation2 + $0x22] sm:$0xff] }
 0x485   : > { %2252 = vadd.xlane.f32.xlu1 %v2251_v39  ;;  %v2187_v48 = vadd.f32 %v3691_v15, %v2122_v0  ;;  %v2125_v3 = vadd.f32 %v3602_v53, %v5209_v50  ;;  %v2363_v33 = vsel %vm388_vm1, %v2353_v27, 0.0  ;;  %v2472_v26 = vsel %vm388_vm1, %v2464_v56, 0.0 }
 0x486   : > { %v2310_v31 = vsel %vm388_vm1, %v2298_v60, 0.0  ;;  %v2409_v15 = vmul.f32 %v5218_v41, %v2393_v18  ;;  %v2528_v46 = vsel %vm388_vm1, %v2520_v20, 0.0  ;;  %v2465_v36 = vmul.f32 %v5230_v1, %v5232_v23 }
 0x487   : > { %v2211_v22 = vmax.f32 %v2187_v48, 0.0  ;;  %v2190_v5 = vadd.f32 %v3692_v42, %v2125_v3  ;;  %v5251_v42 = vadd.f32 %v2362_v34, %v2328_v21  ;;  %v2242_v32 = vmul.f32 %v5166_v63, %v2393_v18 }
 0x488   : > { %2364 = vadd.xlane.f32.xlu0 %v2363_v33  ;;  %v2419_v24 = vsel %vm388_vm1, %v2409_v15, 0.0  ;;  %v2521_v45 = vmul.f32 %v5243_v51, %v2505_v38  ;;  %v2354_v40 = vmul.f32 %v5179_v9, %v2505_v38  ;;  %v2475_v47 = vsel %vm388_vm1, %v2465_v36, 0.0 }
 0x489   : > { %2417 = vadd.xlane.f32.xlu1 %v2416_v54  ;;  %2219 = vst.msk [vmem:[#allocation2 + $0x31] sm:$0xff] %vm388_vm1, %v2211_v22  ;;  %v2212_v19 = vmax.f32 %v2190_v5, 0.0  ;;  %v2254_v55 = vsel %vm388_vm1, %v2242_v32, 0.0  ;;  %v2632_v48 = vmul.f32 %v5193_v28, %v5232_v23  ;;  %v5281_v22 = vld [vmem:[%s5578_s7 + $0x8] ss:$0 sm:$0xff]  ;;  %v4353_v5 = vmov 0  }
 0x48a   : > { %v2531_v14 = vsel %vm388_vm1, %v2521_v45, 0.0  ;;  %v2366_v29 = vsel %vm388_vm1, %v2354_v40, 0.0  ;;  %4204 = vset.pattern.permute.xlu1 %v4353_v5  ;;  %4205 = vset.pattern.permute.xlu0 %v4353_v5 }
 0x48b   : > { %2220 = vst.msk [vmem:[#allocation2 + $0x41] sm:$0xff] %vm388_vm1, %v2212_v19  ;;  %v3603_v2 = vpop.f32.mrb[24].mxu1  ;;  %v2688_v19 = vmul.f32 %v5281_v22, %v2505_v38 }
 0x48c   : > { %v3604_v25 = vpop.f32.mrb[25].mxu1  ;;  %2311 = vadd.xlane.f32.xlu0 %v2310_v31 }
 0x48d   : > { %2473 = vadd.xlane.f32.xlu1 %v2472_v26  ;;  %v3605_v12 = vadd.f32 %v3604_v25, %v3603_v2  ;;  %v3606_v7 = vpop.f32.mrb[26].mxu1 }
 0x48e   : > { %v3607_v52 = vpop.f32.mrb[27].mxu1 }
 0x48f   : > { %v2130_v44 = vadd.f32 %v3605_v12, %v5209_v50  ;;  %v3608_v37 = vadd.f32 %v3607_v52, %v3606_v7 }
 0x490   : > { %2420 = vadd.xlane.f32.xlu0 %v2419_v24  ;;  %v2283_v58 = vld [vmem:[#allocation2 + $0x31] sm:$0xff] }
 0x491   : > { %2529 = vadd.xlane.f32.xlu1 %v2528_v46  ;;  %v2195_v8 = vadd.f32 %v5200_v35, %v2130_v44  ;;  %v2133_v61 = vadd.f32 %v3608_v37, %v5209_v50  ;;  %v2576_v35 = vmul.f32 %v5187_v30, %v2393_v18  ;;  %v2339_v62 = vld [vmem:[#allocation2 + $0x32] sm:$0xff]  ;;  %v2640_v18 = vsel %vm388_vm1, %v2632_v48, 0.0 }
 0x492   : > { %v2355_v56 = vmul.f32 %v5179_v9, %v2339_v62  ;;  %v2394_v54 = vld [vmem:[#allocation2 + $0x30] sm:$0xff]  ;;  %v2633_v25 = vmul.f32 %v5193_v28, %v2283_v58  ;;  %v2466_v12 = vmul.f32 %v5230_v1, %v2283_v58  ;;  %v2689_v46 = vmul.f32 %v5281_v22, %v2339_v62  ;;  %v2284_v44 = vld [vmem:[#allocation2 + $0x41] sm:$0xff] }
 0x493   : > { %v2213_v57 = vmax.f32 %v2195_v8, 0.0  ;;  %v2198_v43 = vadd.f32 %v5204_v16, %v2133_v61  ;;  %v2299_v16 = vmul.f32 %v5173_v11, %v2283_v58  ;;  %v2584_v39 = vsel %vm388_vm1, %v2576_v35, 0.0  ;;  %v2229_v37 = vld [vmem:[#allocation2 + $0x40] sm:$0xff] }
 0x494   : > { %2476 = vadd.xlane.f32.xlu0 %v2475_v47  ;;  %v2369_v21 = vsel %vm388_vm1, %v2355_v56, 0.0  ;;  %v2410_v2 = vmul.f32 %v5218_v41, %v2394_v54  ;;  %v2577_v26 = vmul.f32 %v5187_v30, %v2394_v54  ;;  %v2243_v15 = vmul.f32 %v5166_v63, %v2394_v54  ;;  %v2340_v61 = vld [vmem:[#allocation2 + $0x42] sm:$0xff] }
 0x495   : > { %2255 = vadd.xlane.f32.xlu1 %v2254_v55  ;;  %2221 = vst.msk [vmem:[#allocation2 + $0x51] sm:$0xff] %vm388_vm1, %v2213_v57  ;;  %v2214_v4 = vmax.f32 %v2198_v43, 0.0  ;;  %v2313_v33 = vsel %vm388_vm1, %v2299_v16, 0.0  ;;  %v2643_v7 = vsel %vm388_vm1, %v2633_v25, 0.0  ;;  %v2478_v52 = vsel %vm388_vm1, %v2466_v12, 0.0 }
 0x496   : > { %v2257_v34 = vsel %vm388_vm1, %v2243_v15, 0.0  ;;  %v2522_v36 = vmul.f32 %v5243_v51, %v2339_v62  ;;  %v2699_v24 = vsel %vm388_vm1, %v2689_v46, 0.0  ;;  %v2300_v38 = vmul.f32 %v5173_v11, %v2284_v44 }
 0x497   : > { %2222 = vst.msk [vmem:[#allocation2 + $0x61] sm:$0xff] %vm388_vm1, %v2214_v4  ;;  %v3609_v59 = vpop.f32.mrb[28].mxu1  ;;  %v2244_v8 = vmul.f32 %v5166_v63, %v2229_v37  ;;  %v2411_v57 = vmul.f32 %v5218_v41, %v2229_v37  ;;  %v2356_v43 = vmul.f32 %v5179_v9, %v2340_v61  ;;  %v2467_v58 = vmul.f32 %v5230_v1, %v2284_v44 }
 0x498   : > { %v3610_v27 = vpop.f32.mrb[29].mxu1  ;;  %2532 = vadd.xlane.f32.xlu0 %v2531_v14  ;;  %v2534_v32 = vsel %vm388_vm1, %v2522_v36, 0.0  ;;  %v2316_v45 = vsel %vm388_vm1, %v2300_v38, 0.0  ;;  %v2578_v4 = vmul.f32 %v5187_v30, %v2229_v37  ;;  %v2523_v14 = vmul.f32 %v5243_v51, %v2340_v61 }
 0x499   : > { %2367 = vadd.xlane.f32.xlu1 %v2366_v29  ;;  %v3611_v0 = vadd.f32 %v3610_v27, %v3609_v59  ;;  %v3612_v53 = vpop.f32.mrb[30].mxu1  ;;  %v2260_v40 = vsel %vm388_vm1, %v2244_v8, 0.0  ;;  %v2425_v47 = vsel %vm388_vm1, %v2411_v57, 0.0  ;;  %v2372_v55 = vsel %vm388_vm1, %v2356_v43, 0.0 }
 0x49a   : > { %v3613_v17 = vpop.f32.mrb[31].mxu1  ;;  %v2481_v35 = vsel %vm388_vm1, %v2467_v58, 0.0  ;;  %v2590_v59 = vsel %vm388_vm1, %v2578_v4, 0.0  ;;  %v2634_v29 = vmul.f32 %v5193_v28, %v2284_v44  ;;  %v2537_v27 = vsel %vm388_vm1, %v2523_v14, 0.0 }
 0x49b   : > { %v2138_v3 = vadd.f32 %v3611_v0, %v5209_v50  ;;  %v3614_v6 = vadd.f32 %v3613_v17, %v3612_v53  ;;  %v2690_v53 = vmul.f32 %v5281_v22, %v2340_v61 }
 0x49c   : > { %2314 = vadd.xlane.f32.xlu0 %v2313_v33  ;;  %v2230_v16 = vld [vmem:[#allocation2 + $0x50] sm:$0xff]  ;;  %v2646_v62 = vsel %vm388_vm1, %v2634_v29, 0.0 }
 0x49d   : > { %2585 = vadd.xlane.f32.xlu1 %v2584_v39  ;;  %v2203_v23 = vadd.f32 %v5198_v10, %v2138_v3  ;;  %v2141_v60 = vadd.f32 %v3614_v6, %v5209_v50  ;;  %v2422_v10 = vsel %vm388_vm1, %v2410_v2, 0.0  ;;  %v2696_v50 = vsel %vm388_vm1, %v2688_v19, 0.0  ;;  %v2285_v17 = vld [vmem:[#allocation2 + $0x51] sm:$0xff] }
 0x49e   : > { %v2245_v0 = vmul.f32 %v5166_v63, %v2230_v16  ;;  %v2702_v48 = vsel %vm388_vm1, %v2690_v53, 0.0  ;;  %v2412_v3 = vmul.f32 %v5218_v41, %v2230_v16  ;;  %v2301_v6 = vmul.f32 %v5173_v11, %v2285_v17  ;;  %v2341_v33 = vld [vmem:[#allocation2 + $0x52] sm:$0xff]  ;;  %v2453_v25 = vld [vmem:[#allocation2 + $0x61] sm:$0xff] }
 0x49f   : > { %v2215_v49 = vmax.f32 %v2203_v23, 0.0  ;;  %v2206_v20 = vadd.f32 %v5202_v13, %v2141_v60  ;;  %v2587_v13 = vsel %vm388_vm1, %v2577_v26, 0.0  ;;  %v2468_v54 = vmul.f32 %v5230_v1, %v2285_v17  ;;  %v2231_v60 = vld [vmem:[#allocation2 + $0x60] sm:$0xff] }
 0x4a0   : > { %2370 = vadd.xlane.f32.xlu0 %v2369_v21  ;;  %v2263_v39 = vsel %vm388_vm1, %v2245_v0, 0.0  ;;  %v2428_v56 = vsel %vm388_vm1, %v2412_v3, 0.0  ;;  %v2319_v5 = vsel %vm388_vm1, %v2301_v6, 0.0  ;;  %v2357_v23 = vmul.f32 %v5179_v9, %v2341_v33  ;;  %v2342_v21 = vld [vmem:[#allocation2 + $0x62] sm:$0xff] }
 0x4a1   : > { %2641 = vadd.xlane.f32.xlu1 %v2640_v18  ;;  %2223 = vst.msk [vmem:[#allocation2 + $0x71] sm:$0xff] %vm388_vm1, %v2215_v49  ;;  %v2216_v31 = vmax.f32 %v2206_v20, 0.0  ;;  %v2484_v18 = vsel %vm388_vm1, %v2468_v54, 0.0  ;;  %v2524_v49 = vmul.f32 %v5243_v51, %v2341_v33  ;;  %v2246_v20 = vmul.f32 %v5166_v63, %v2231_v60 }
 0x4a2   : > { %v2375_v19 = vsel %vm388_vm1, %v2357_v23, 0.0  ;;  %v2469_v46 = vmul.f32 %v5230_v1, %v2453_v25  ;;  %v2302_v37 = vmul.f32 %v5173_v11, %v2453_v25  ;;  %v2580_v61 = vmul.f32 %v5187_v30, %v2231_v60 }
 0x4a3   : > { %2224 = vst.msk [vmem:[#allocation2 + $0x81] sm:$0xff] %vm388_vm1, %v2216_v31  ;;  %v2540_v2 = vsel %vm388_vm1, %v2524_v49, 0.0  ;;  %v2266_v31 = vsel %vm388_vm1, %v2246_v20, 0.0  ;;  %v2636_v43 = vmul.f32 %v5193_v28, %v2453_v25  ;;  %v2679_v49 = vld [vmem:[#allocation2 + $0x92] sm:$0xff] }
 0x4a4   : > { %2423 = vadd.xlane.f32.xlu0 %v2422_v10  ;;  %v2579_v10 = vmul.f32 %v5187_v30, %v2230_v16  ;;  %v2487_v44 = vsel %vm388_vm1, %v2469_v46, 0.0  ;;  %v2322_v38 = vsel %vm388_vm1, %v2302_v37, 0.0 }
 0x4a5   : > { %2697 = vadd.xlane.f32.xlu1 %v2696_v50  ;;  %v2358_v50 = vmul.f32 %v5179_v9, %v2342_v21  ;;  %v2652_v58 = vsel %vm388_vm1, %v2636_v43, 0.0 }
 0x4a6   : > { %v2593_v26 = vsel %vm388_vm1, %v2579_v10, 0.0  ;;  %v5392_v10 = vpop.xlane.xlu0 %2606 }
 0x4a7   : > { %v2378_v15 = vsel %vm388_vm1, %v2358_v50, 0.0  ;;  %v5394_v50 = vpop.xlane.xlu1 %2662 }
 0x4a8   : > { %2588 = vadd.xlane.f32.xlu0 %v2587_v13  ;;  %v2635_v13 = vmul.f32 %v5193_v28, %v2285_v17 }
 0x4a9   : > { %2258 = vadd.xlane.f32.xlu1 %v2257_v34  ;;  %v2413_v34 = vmul.f32 %v5218_v41, %v2231_v60 }
 0x4aa   : > { %v2649_v12 = vsel %vm388_vm1, %v2635_v13, 0.0  ;;  %v2511_v23 = vld [vmem:[#allocation2 + $0x82] sm:$0xff] }
 0x4ac   : > { %2644 = vadd.xlane.f32.xlu0 %v2643_v7  ;;  %v2431_v7 = vsel %vm388_vm1, %v2413_v34, 0.0  ;;  %v3473_v34 = vld [vmem:[#allocation3] ss:$0 sm:$0xff] }
 0x4ad   : > { %2479 = vadd.xlane.f32.xlu1 %v2478_v52  ;;  %v2691_v52 = vmul.f32 %v5281_v22, %v2341_v33  ;;  %v2455_v33 = vld [vmem:[#allocation2 + $0x81] sm:$0xff] }
 0x4af   : > { %v2705_v36 = vsel %vm388_vm1, %v2691_v52, 0.0 }
 0x4b0   : > { %2700 = vadd.xlane.f32.xlu0 %v2699_v24  ;;  %v2525_v24 = vmul.f32 %v5243_v51, %v2342_v21 }
 0x4b1   : > { %2535 = vadd.xlane.f32.xlu1 %v2534_v32  ;;  %v2232_v32 = vld [vmem:[#allocation2 + $0x70] sm:$0xff] }
 0x4b2   : > { %v2543_v8 = vsel %vm388_vm1, %v2525_v24, 0.0  ;;  %v2581_v17 = vmul.f32 %v5187_v30, %v2232_v32 }
 0x4b4   : > { %2317 = vadd.xlane.f32.xlu0 %v2316_v45  ;;  %v2247_v45 = vmul.f32 %v5166_v63, %v2232_v32  ;;  %v2599_v3 = vsel %vm388_vm1, %v2581_v17, 0.0 }
 0x4b5   : > { %2261 = vadd.xlane.f32.xlu1 %v2260_v40  ;;  %v2596_v40 = vsel %vm388_vm1, %v2580_v61, 0.0 }
 0x4b6   : > { %v2269_v57 = vsel %vm388_vm1, %v2247_v45, 0.0 }
 0x4b8   : > { %2426 = vadd.xlane.f32.xlu0 %v2425_v47  ;;  %v2414_v47 = vmul.f32 %v5218_v41, %v2232_v32 }
 0x4b9   : > { %2373 = vadd.xlane.f32.xlu1 %v2372_v55  ;;  %v2454_v55 = vld [vmem:[#allocation2 + $0x71] sm:$0xff] }
 0x4ba   : > { %v2434_v4 = vsel %vm388_vm1, %v2414_v47, 0.0  ;;  %v2470_v63 = vmul.f32 %v5230_v1, %v2454_v55  ;;  %v2303_v16 = vmul.f32 %v5173_v11, %v2454_v55  ;;  %v2637_v6 = vmul.f32 %v5193_v28, %v2454_v55 }
 0x4bc   : > { %2482 = vadd.xlane.f32.xlu0 %v2481_v35  ;;  %v2692_v35 = vmul.f32 %v5281_v22, %v2342_v21  ;;  %v2490_v29 = vsel %vm388_vm1, %v2470_v63, 0.0  ;;  %v2694_v21 = vmul.f32 %v5281_v22, %v2511_v23 }
 0x4bd   : > { %2591 = vadd.xlane.f32.xlu1 %v2590_v59  ;;  %v2510_v59 = vld [vmem:[#allocation2 + $0x72] sm:$0xff] }
 0x4be   : > { %v2708_v14 = vsel %vm388_vm1, %v2692_v35, 0.0  ;;  %v2359_v53 = vmul.f32 %v5179_v9, %v2510_v59  ;;  %v2655_v9 = vsel %vm388_vm1, %v2637_v6, 0.0 }
 0x4c0   : > { %2538 = vadd.xlane.f32.xlu0 %v2537_v27  ;;  %v2526_v27 = vmul.f32 %v5243_v51, %v2510_v59 }
 0x4c1   : > { %2647 = vadd.xlane.f32.xlu1 %v2646_v62  ;;  %v2325_v62 = vsel %vm388_vm1, %v2303_v16, 0.0 }
 0x4c2   : > { %v2546_v0 = vsel %vm388_vm1, %v2526_v27, 0.0 }
 0x4c4   : > { %2264 = vadd.xlane.f32.xlu0 %v2263_v39  ;;  %v2399_v39 = vld [vmem:[#allocation2 + $0x80] sm:$0xff] }
 0x4c5   : > { %2703 = vadd.xlane.f32.xlu1 %v2702_v48  ;;  %v2381_v48 = vsel %vm388_vm1, %v2359_v53, 0.0  ;;  %v2415_v11 = vmul.f32 %v5218_v41, %v2399_v39  ;;  %v2582_v54 = vmul.f32 %v5187_v30, %v2399_v39  ;;  %v2693_v30 = vmul.f32 %v5281_v22, %v2510_v59 }
 0x4c7   : > { %v2602_v41 = vsel %vm388_vm1, %v2582_v54, 0.0 }
 0x4c8   : > { %2429 = vadd.xlane.f32.xlu0 %v2428_v56  ;;  %v2437_v56 = vsel %vm388_vm1, %v2415_v11, 0.0 }
 0x4c9   : > { %2320 = vadd.xlane.f32.xlu1 %v2319_v5  ;;  %v2471_v5 = vmul.f32 %v5230_v1, %v2455_v33 }
 0x4cb   : > { %v2493_v60 = vsel %vm388_vm1, %v2471_v5, 0.0 }
 0x4cc   : > { %2485 = vadd.xlane.f32.xlu0 %v2484_v18  ;;  %v2527_v18 = vmul.f32 %v5243_v51, %v2511_v23  ;;  %v2714_v51 = vsel %vm388_vm1, %v2694_v21, 0.0 }
 0x4cd   : > { %2376 = vadd.xlane.f32.xlu1 %v2375_v19  ;;  %v2638_v19 = vmul.f32 %v5193_v28, %v2455_v33 }
 0x4ce   : > { %v2549_v20 = vsel %vm388_vm1, %v2527_v18, 0.0 }
 0x4cf   : > { %v2658_v1 = vsel %vm388_vm1, %v2638_v19, 0.0 }
 0x4d0   : > { %2541 = vadd.xlane.f32.xlu0 %v2540_v2  ;;  %v2695_v2 = vmul.f32 %v5281_v22, %v2679_v49 }
 0x4d1   : > { %2267 = vadd.xlane.f32.xlu1 %v2266_v31  ;;  %v2711_v31 = vsel %vm388_vm1, %v2693_v30, 0.0 }
 0x4d2   : > { %v2717_v28 = vsel %vm388_vm1, %v2695_v2, 0.0  ;;  %vm2862_vm1 = vcmask 1046534  }
 0x4d4   : > { %2594 = vadd.xlane.f32.xlu0 %v2593_v26 }
 0x4d5   : > { %2379 = vadd.xlane.f32.xlu1 %v2378_v15 }
 0x4d8   : > { %2650 = vadd.xlane.f32.xlu0 %v2649_v12 }
 0x4d9   : > { %2432 = vadd.xlane.f32.xlu1 %v2431_v7 }
 0x4dc   : > { %2706 = vadd.xlane.f32.xlu0 %v2705_v36 }
 0x4dd   : > { %2488 = vadd.xlane.f32.xlu1 %v2487_v44 }
 0x4e0   : > { %2323 = vadd.xlane.f32.xlu0 %v2322_v38 }
 0x4e1   : > { %2544 = vadd.xlane.f32.xlu1 %v2543_v8 }
 0x4e4   : > { %2597 = vadd.xlane.f32.xlu0 %v2596_v40 }
 0x4e5   : > { %2270 = vadd.xlane.f32.xlu1 %v2269_v57 }
 0x4e8   : > { %2653 = vadd.xlane.f32.xlu0 %v2652_v58 }
 0x4e9   : > { %2435 = vadd.xlane.f32.xlu1 %v2434_v4 }
 0x4ec   : > { %2709 = vadd.xlane.f32.xlu0 %v2708_v14 }
 0x4ed   : > { %2491 = vadd.xlane.f32.xlu1 %v2490_v29 }
 0x4f0   : > { %2326 = vadd.xlane.f32.xlu0 %v2325_v62 }
 0x4f1   : > { %2547 = vadd.xlane.f32.xlu1 %v2546_v0 }
 0x4f4   : > { %2382 = vadd.xlane.f32.xlu0 %v2381_v48 }
 0x4f5   : > { %2600 = vadd.xlane.f32.xlu1 %v2599_v3 }
 0x4f8   : > { %2438 = vadd.xlane.f32.xlu0 %v2437_v56  ;;  %v2794_v56 = vld [vmem:[%s5580_s9] sm:$0xff] }
 0x4f9   : > { %2656 = vadd.xlane.f32.xlu1 %v2655_v9  ;;  %3699 = vmatprep.mubr.msk.f32.mxu0 %vm740_vm3, %v2794_v56 }
 0x4fc   : > { %2494 = vadd.xlane.f32.xlu0 %v2493_v60 }
 0x4fd   : > { %2603 = vadd.xlane.f32.xlu1 %v2602_v41 }
 0x500   : > { %2550 = vadd.xlane.f32.xlu0 %v2549_v20 }
 0x501   : > { %2659 = vadd.xlane.f32.xlu1 %v2658_v1 }
 0x504   : > { %2712 = vadd.xlane.f32.xlu0 %v2711_v31 }
 0x505   : > { %2715 = vadd.xlane.f32.xlu1 %v2714_v51 }
 0x508   : > { %2718 = vadd.xlane.f32.xlu0 %v2717_v28 }
 0x511   : > { %v2309_v26 = vpop.xlane.xlu0 %2308 }
 0x512   : > { %v2253_v15 = vpop.xlane.xlu1 %2252 }
 0x513   : > { %v2329_v13 = vadd.f32 %v2309_v26, %v2253_v15 }
 0x515   : > { %v2365_v25 = vpop.xlane.xlu0 %2364 }
 0x516   : > { %v2418_v12 = vpop.xlane.xlu1 %2417  ;;  %2735 = vperm.xlu1 %4204, %v3473_v34   ;;  %v2385_v22 = vadd.f32 %v2365_v25, %v2329_v13 }
 0x517   : > { %v2440_v7 = vadd.f32 %v2418_v12, %v5251_v42 }
 0x519   : > { %v2312_v52 = vpop.xlane.xlu0 %2311 }
 0x51a   : > { %v2474_v46 = vpop.xlane.xlu1 %2473 }
 0x51b   : > { %v2496_v36 = vadd.f32 %v2474_v46, %v2440_v7 }
 0x51d   : > { %v2421_v44 = vpop.xlane.xlu0 %2420 }
 0x51e   : > { %v2530_v37 = vpop.xlane.xlu1 %2529  ;;  %v2441_v24 = vadd.f32 %v2421_v44, %v2385_v22  ;;  %v5410_v22 = vld [vmem:[%s5581_s10] sm:$0xff] }
 0x51f   : > { %v2552_v32 = vadd.f32 %v2530_v37, %v2496_v36  ;;  %3749 = vmatprep.subr.mxu1 %v5410_v22 }
 0x520   : > { %3750 = vmatpush3.msra.mxu1 %v5410_v22 }
 0x521   : > { %v2477_v38 = vpop.xlane.xlu0 %2476 }
 0x522   : > { %v2256_v8 = vpop.xlane.xlu1 %2255  ;;  %v2497_v61 = vadd.f32 %v2477_v38, %v2441_v24 }
 0x523   : > { %v2330_v45 = vadd.f32 %v2312_v52, %v2256_v8 }
 0x525   : > { %v2533_v40 = vpop.xlane.xlu0 %2532 }
 0x526   : > { %v2368_v57 = vpop.xlane.xlu1 %2367  ;;  %v2553_v43 = vadd.f32 %v2533_v40, %v2497_v61 }
 0x527   : > { %v2386_v47 = vadd.f32 %v2368_v57, %v2330_v45 }
 0x529   : > { %v2315_v55 = vpop.xlane.xlu0 %2314 }
 0x52a   : > { %v2586_v58 = vpop.xlane.xlu1 %2585 }
 0x52b   : > { %v2608_v4 = vadd.f32 %v2586_v58, %v2552_v32 }
 0x52d   : > { %v2371_v35 = vpop.xlane.xlu0 %2370 }
 0x52e   : > { %v2642_v42 = vpop.xlane.xlu1 %2641 }
 0x52f   : > { %v2664_v63 = vadd.f32 %v2642_v42, %v2608_v4 }
 0x531   : > { %v2424_v59 = vpop.xlane.xlu0 %2423 }
 0x532   : > { %v2698_v14 = vpop.xlane.xlu1 %2697  ;;  %v2442_v29 = vadd.f32 %v2424_v59, %v2386_v47 }
 0x533   : > { %v5397_v16 = vadd.f32 %v2698_v14, %v2664_v63 }
 0x535   : > { %v2589_v27 = vpop.xlane.xlu0 %2588 }
 0x536   : > { %v2259_v62 = vpop.xlane.xlu1 %2258  ;;  %v2609_v0 = vadd.f32 %v2589_v27, %v2553_v43 }
 0x537   : > { %v2331_v53 = vadd.f32 %v2315_v55, %v2259_v62 }
 0x539   : > { %v2387_v17 = vadd.f32 %v2371_v35, %v2331_v53  ;;  %v2645_v39 = vpop.xlane.xlu0 %2644 }
 0x53a   : > { %v2480_v48 = vpop.xlane.xlu1 %2479  ;;  %v2665_v3 = vadd.f32 %v2645_v39, %v2609_v0 }
 0x53b   : > { %v2498_v11 = vadd.f32 %v2480_v48, %v2442_v29 }
 0x53d   : > { %v2701_v6 = vpop.xlane.xlu0 %2700 }
 0x53e   : > { %v2536_v33 = vpop.xlane.xlu1 %2535  ;;  %v5402_v9 = vadd.f32 %v2701_v6, %v2665_v3 }
 0x53f   : > { %v2554_v5 = vadd.f32 %v2536_v33, %v2498_v11 }
 0x541   : > { %v2318_v54 = vpop.xlane.xlu0 %2317 }
 0x542   : > { %v2262_v23 = vpop.xlane.xlu1 %2261 }
 0x543   : > { %v2332_v60 = vadd.f32 %v2318_v54, %v2262_v23 }
 0x545   : > { %v2427_v41 = vpop.xlane.xlu0 %2426 }
 0x546   : > { %v2374_v18 = vpop.xlane.xlu1 %2373  ;;  %v2443_v19 = vadd.f32 %v2427_v41, %v2387_v17 }
 0x547   : > { %v2388_v49 = vadd.f32 %v2374_v18, %v2332_v60 }
 0x549   : > { %v2483_v20 = vpop.xlane.xlu0 %2482 }
 0x54a   : > { %v2592_v1 = vpop.xlane.xlu1 %2591  ;;  %v2499_v30 = vadd.f32 %v2483_v20, %v2443_v19 }
 0x54b   : > { %v2610_v21 = vadd.f32 %v2592_v1, %v2554_v5 }
 0x54d   : > { %v2539_v2 = vpop.xlane.xlu0 %2538 }
 0x54e   : > { %v2648_v31 = vpop.xlane.xlu1 %2647  ;;  %v2555_v41 = vadd.f32 %v2539_v2, %v2499_v30 }
 0x54f   : > { %v2666_v51 = vadd.f32 %v2648_v31, %v2610_v21 }
 0x551   : > { %v2265_v28 = vpop.xlane.xlu0 %2264 }
 0x552   : > { %v2704_v26 = vpop.xlane.xlu1 %2703 }
 0x553   : > { %v5405_v15 = vadd.f32 %v2704_v26, %v2666_v51 }
 0x555   : > { %v2430_v13 = vpop.xlane.xlu0 %2429 }
 0x556   : > { %v2321_v34 = vpop.xlane.xlu1 %2320  ;;  %v2444_v48 = vadd.f32 %v2430_v13, %v2388_v49 }
 0x557   : > { %v2333_v29 = vadd.f32 %v2321_v34, %v2265_v28 }
 0x559   : > { %v2486_v25 = vpop.xlane.xlu0 %2485 }
 0x55a   : > { %v2377_v12 = vpop.xlane.xlu1 %2376  ;;  %v2500_v33 = vadd.f32 %v2486_v25, %v2444_v48 }
 0x55b   : > { %v2389_v62 = vadd.f32 %v2377_v12, %v2333_v29 }
 0x55d   : > { %v2542_v7 = vpop.xlane.xlu0 %2541 }
 0x55e   : > { %v2268_v52 = vpop.xlane.xlu1 %2267  ;;  %v2556_v18 = vadd.f32 %v2542_v7, %v2500_v33 }
 0x561   : > { %v2595_v46 = vpop.xlane.xlu0 %2594 }
 0x562   : > { %v2380_v36 = vpop.xlane.xlu1 %2379  ;;  %v2611_v21 = vadd.f32 %v2595_v46, %v2555_v41 }
 0x565   : > { %v2651_v44 = vpop.xlane.xlu0 %2650 }
 0x566   : > { %v2433_v37 = vpop.xlane.xlu1 %2432  ;;  %v2667_v13 = vadd.f32 %v2651_v44, %v2611_v21 }
 0x567   : > { %v2445_v3 = vadd.f32 %v2433_v37, %v2389_v62 }
 0x569   : > { %v2707_v24 = vpop.xlane.xlu0 %2706 }
 0x56a   : > { %v2489_v32 = vpop.xlane.xlu1 %2488 }
 0x56b   : > { %v2501_v56 = vadd.f32 %v2489_v32, %v2445_v3 }
 0x56d   : > { %v2324_v38 = vpop.xlane.xlu0 %2323 }
 0x56e   : > { %v2545_v8 = vpop.xlane.xlu1 %2544  ;;  %v2334_v42 = vadd.f32 %v2324_v38, %v2268_v52 }
 0x56f   : > { %v2557_v19 = vadd.f32 %v2545_v8, %v2501_v56 }
 0x570   : > { %v2390_v0 = vadd.f32 %v2380_v36, %v2334_v42  ;;  %v2723_v36 = vadd.f32 %v2707_v24, %v2667_v13 }
 0x571   : > { %v2598_v61 = vpop.xlane.xlu0 %2597 }
 0x572   : > { %v2271_v45 = vpop.xlane.xlu1 %2270  ;;  %v2612_v31 = vadd.f32 %v2598_v61, %v2556_v18 }
 0x575   : > { %v2654_v40 = vpop.xlane.xlu0 %2653 }
 0x576   : > { %v2436_v57 = vpop.xlane.xlu1 %2435  ;;  %v2668_v34 = vadd.f32 %v2654_v40, %v2612_v31 }
 0x577   : > { %v2446_v11 = vadd.f32 %v2436_v57, %v2390_v0 }
 0x579   : > { %v2710_v43 = vpop.xlane.xlu0 %2709 }
 0x57a   : > { %v2492_v47 = vpop.xlane.xlu1 %2491  ;;  %v2724_v37 = vadd.f32 %v2710_v43, %v2668_v34 }
 0x57b   : > { %v2502_v5 = vadd.f32 %v2492_v47, %v2446_v11 }
 0x57d   : > { %v2327_v55 = vpop.xlane.xlu0 %2326 }
 0x57e   : > { %v2548_v58 = vpop.xlane.xlu1 %2547  ;;  %v2335_v14 = vadd.f32 %v2327_v55, %v2271_v45 }
 0x57f   : > { %v2558_v20 = vadd.f32 %v2548_v58, %v2502_v5 }
 0x581   : > { %v2383_v4 = vpop.xlane.xlu0 %2382 }
 0x582   : > { %v2601_v35 = vpop.xlane.xlu1 %2600  ;;  %v2391_v27 = vadd.f32 %v2383_v4, %v2335_v14 }
 0x583   : > { %v2613_v51 = vadd.f32 %v2601_v35, %v2557_v19 }
 0x585   : > { %v2439_v63 = vpop.xlane.xlu0 %2438 }
 0x586   : > { %v2657_v59 = vpop.xlane.xlu1 %2656  ;;  %v2447_v39 = vadd.f32 %v2439_v63, %v2391_v27 }
 0x587   : > { %v2669_v25 = vadd.f32 %v2657_v59, %v2613_v51  ;;  %v2818_v59 = vlaneseq }
 0x589   : > { %v2495_v53 = vpop.xlane.xlu0 %2494  ;;  %v2819_v48 = vand.u32 127, %v2818_v59  ;;  %v2821_v3 = vshrl.u32 %v2818_v59, 7 }
 0x58a   : > { %v2604_v17 = vpop.xlane.xlu1 %2603  ;;  %v2503_v6 = vadd.f32 %v2495_v53, %v2447_v39 }
 0x58b   : > { %v2614_v28 = vadd.f32 %v2604_v17, %v2558_v20  ;;  %v2822_v56 = vsub.s32 %v2819_v48, %v2821_v3 }
 0x58d   : > { %v2551_v54 = vpop.xlane.xlu0 %2550 }
 0x58e   : > { %v2660_v23 = vpop.xlane.xlu1 %2659  ;;  %v2559_v60 = vadd.f32 %v2551_v54, %v2503_v6 }
 0x58f   : > { %v2670_v12 = vadd.f32 %v2660_v23, %v2614_v28 }
 0x590   : > { %v2615_v1 = vadd.f32 %v5392_v10, %v2559_v60 }
 0x591   : > { %v2713_v49 = vpop.xlane.xlu0 %2712 }
 0x592   : > { %v2716_v26 = vpop.xlane.xlu1 %2715  ;;  %v2671_v52 = vadd.f32 %v5394_v50, %v2615_v1  ;;  %v2725_v30 = vadd.f32 %v2713_v49, %v2669_v25 }
 0x593   : > { %v2726_v2 = vadd.f32 %v2716_v26, %v2670_v12 }
 0x595   : > { %v2719_v7 = vpop.xlane.xlu0 %2718 }
 0x596   : > { %v2736_v32 = vpop.permute.xlu1 %2735  ;;  %v2727_v38 = vadd.f32 %v2719_v7, %v2671_v52  ;;  %v2796_v7 = vld [vmem:[%s5580_s9 + $0x10] sm:$0xff] }
 0x597   : > { %v2738_v10 = vadd.f32 %v2736_v32, %v5397_v16  ;;  %v2739_v46 = vadd.f32 %v2736_v32, %v5402_v9  ;;  %v2740_v8 = vadd.f32 %v2736_v32, %v5405_v15  ;;  %v2741_v61 = vadd.f32 %v2736_v32, %v2723_v36 }
 0x598   : > { %v2742_v44 = vadd.f32 %v2736_v32, %v2724_v37  ;;  %v2743_v45 = vadd.f32 %v2736_v32, %v2725_v30  ;;  %v2744_v40 = vadd.f32 %v2736_v32, %v2726_v2  ;;  %v2745_v24 = vadd.f32 %v2736_v32, %v2727_v38  ;;  %v2795_v2 = vld [vmem:[%s5580_s9 + $0x8] sm:$0xff]  ;;  %v2797_v32 = vld [vmem:[%s5580_s9 + $0x18] sm:$0xff]  ;;  %v2798_v38 = vld [vmem:[%s5580_s9 + $0x20] sm:$0xff] }
 0x599   : > { %v3474_v57 = vmul.f32 -1.442695, %v2738_v10  ;;  %v3475_v47 = vmul.f32 -1.442695, %v2739_v46  ;;  %v3476_v50 = vmul.f32 -1.442695, %v2740_v8 }
 0x59a   : > { %v3477_v43 = vmul.f32 -1.442695, %v2741_v61  ;;  %v3478_v55 = vmul.f32 -1.442695, %v2742_v44  ;;  %v3479_v58 = vmul.f32 -1.442695, %v2743_v45 }
 0x59b   : > { %4247 = vpow2.f32 %v3474_v57  ;;  %v3480_v4 = vmul.f32 -1.442695, %v2744_v40  ;;  %v3481_v16 = vmul.f32 -1.442695, %v2745_v24  ;;  %v2799_v10 = vld [vmem:[%s5580_s9 + $0x28] sm:$0xff]  ;;  %v2800_v46 = vld [vmem:[%s5580_s9 + $0x30] sm:$0xff] }
 0x59c   : > { %4249 = vpow2.f32 %v3475_v47  ;;  %v2802_v8 = vld [vmem:[%s5580_s9 + $0x40] sm:$0xff]  ;;  %v2803_v61 = vld [vmem:[%s5580_s9 + $0x48] sm:$0xff]  ;;  %v2804_v44 = vld [vmem:[%s5580_s9 + $0x50] sm:$0xff] }
 0x59d   : > { %4251 = vpow2.f32 %v3476_v50  ;;  %v2805_v45 = vld [vmem:[%s5580_s9 + $0x58] sm:$0xff]  ;;  %v2806_v40 = vld [vmem:[%s5580_s9 + $0x60] sm:$0xff]  ;;  %v2807_v57 = vld [vmem:[%s5580_s9 + $0x68] sm:$0xff] }
 0x59e   : > { %4253 = vpow2.f32 %v3477_v43  ;;  %v2808_v47 = vld [vmem:[%s5580_s9 + $0x70] sm:$0xff]  ;;  %v2809_v50 = vld [vmem:[%s5580_s9 + $0x78] sm:$0xff] }
 0x59f   : > { %4255 = vpow2.f32 %v3478_v55 }
 0x5a0   : > { %4257 = vpow2.f32 %v3479_v58 }
 0x5a1   : > { %4259 = vpow2.f32 %v3480_v4 }
 0x5a2   : > { %4261 = vpow2.f32 %v3481_v16 }
 0x5a5   : > { %v4248_v9 = vpop.eup %4247 }
 0x5a6   : > { %v4250_v15 = vpop.eup %4249  ;;  %v2770_v35 = vadd.f32 1.0, %v4248_v9 }
 0x5a7   : > { %v4252_v42 = vpop.eup %4251  ;;  %v2771_v63 = vadd.f32 1.0, %v4250_v15 }
 0x5a8   : > { %v4254_v14 = vpop.eup %4253  ;;  %v2772_v29 = vadd.f32 1.0, %v4252_v42  ;;  %4263 = vrcp.f32 %v2770_v35 }
 0x5a9   : > { %v4256_v27 = vpop.eup %4255  ;;  %v2773_v62 = vadd.f32 1.0, %v4254_v14  ;;  %4265 = vrcp.f32 %v2771_v63 }
 0x5aa   : > { %v4258_v0 = vpop.eup %4257  ;;  %v2774_v53 = vadd.f32 1.0, %v4256_v27  ;;  %4267 = vrcp.f32 %v2772_v29 }
 0x5ab   : > { %v4260_v17 = vpop.eup %4259  ;;  %v2775_v39 = vadd.f32 1.0, %v4258_v0  ;;  %4269 = vrcp.f32 %v2773_v62 }
 0x5ac   : > { %v4262_v11 = vpop.eup %4261  ;;  %v2776_v6 = vadd.f32 1.0, %v4260_v17  ;;  %4271 = vrcp.f32 %v2774_v53 }
 0x5ad   : > { %4273 = vrcp.f32 %v2775_v39  ;;  %v2777_v33 = vadd.f32 1.0, %v4262_v11 }
 0x5ae   : > { %4275 = vrcp.f32 %v2776_v6 }
 0x5af   : > { %4277 = vrcp.f32 %v2777_v33 }
 0x5b2   : > { %v4264_v5 = vpop.eup %4263 }
 0x5b3   : > { %v4266_v54 = vpop.eup %4265  ;;  %v2823_v23 = vrot.slane %v4264_v5, %v2822_v56 }
 0x5b4   : > { %v4268_v60 = vpop.eup %4267  ;;  %v2827_v41 = vrot.slane %v4266_v54, %v2822_v56 }
 0x5b5   : > { %v4270_v18 = vpop.eup %4269  ;;  %v2831_v19 = vrot.slane %v4268_v60, %v2822_v56 }
 0x5b6   : > { %v4272_v20 = vpop.eup %4271  ;;  %v2835_v1 = vrot.slane %v4270_v18, %v2822_v56  ;;  %v2853_v21 = vsel %vm2852_vm12, %v2827_v41, %v2823_v23 }
 0x5b7   : > { %v4274_v31 = vpop.eup %4273  ;;  %v2839_v51 = vrot.slane %v4272_v20, %v2822_v56  ;;  %v2855_v28 = vsel %vm2854_vm13, %v2831_v19, %v2853_v21 }
 0x5b8   : > { %v4276_v49 = vpop.eup %4275  ;;  %v2843_v26 = vrot.slane %v4274_v31, %v2822_v56  ;;  %v2857_v13 = vsel %vm2856_vm14, %v2835_v1, %v2855_v28 }
 0x5b9   : > { %v4278_v34 = vpop.eup %4277  ;;  %v2847_v25 = vrot.slane %v4276_v49, %v2822_v56  ;;  %v2859_v12 = vsel %vm2858_vm15, %v2839_v51, %v2857_v13 }
 0x5ba   : > { %v2851_v52 = vrot.slane %v4278_v34, %v2822_v56  ;;  %v2861_v36 = vsel %vm2860_vm0, %v2843_v26, %v2859_v12 }
 0x5bb   : > { %v2863_v37 = vsel %vm2862_vm1, %v2847_v25, %v2861_v36 }
 0x5bc   : > { %v2865_v30 = vsel %vm2864_vm2, %v2851_v52, %v2863_v37 }
 0x5bd   : > { %3697 = vmatprep.subr.mxu0 %v2865_v30 }
 0x5be   : > { %3698 = vmatpush3.msra.mxu0 %v2865_v30 }
 0x5bf   : > { %3700 = vmatmul.mubr.msk.f32.vlgmr.msra.gmra.mrb[24].mxu0 %vm740_vm3, %v2795_v2  ;;  %3723 = vmatprep.subr.mxu0 %v5410_v22 }
 0x5c0   : > { %3702 = vmatprep.mubr.msk.f32.mxu0 %vm740_vm3, %v2796_v7  ;;  %3724 = vmatpush3.msra.mxu0 %v5410_v22  ;;  %v2801_v22 = vld [vmem:[%s5580_s9 + $0x38] sm:$0xff] }
 0x5c3   : > { %3703 = vmatmul.mubr.msk.f32.gmra.mrb[26].mxu0 %vm740_vm3, %v2797_v32 }
 0x5c4   : > { %3705 = vmatprep.mubr.msk.f32.mxu0 %vm740_vm3, %v2798_v38 }
 0x5c7   : > { %3706 = vmatmul.mubr.msk.f32.gmra.mrb[28].mxu0 %vm740_vm3, %v2799_v10 }
 0x5c8   : > { %3708 = vmatprep.mubr.msk.f32.mxu0 %vm740_vm3, %v2800_v46 }
 0x5cb   : > { %3709 = vmatmul.mubr.msk.f32.gmra.mrb[30].mxu0 %vm740_vm3, %v2801_v22 }
 0x5cc   : > { %3711 = vmatprep.mubr.msk.f32.mxu0 %vm740_vm3, %v2802_v8 }
 0x5cf   : > { %3712 = vmatmul.mubr.msk.f32.gmra.mrb[32].mxu0 %vm740_vm3, %v2803_v61 }
 0x5d0   : > { %3714 = vmatprep.mubr.msk.f32.mxu0 %vm740_vm3, %v2804_v44 }
 0x5d3   : > { %3715 = vmatmul.mubr.msk.f32.gmra.mrb[34].mxu0 %vm740_vm3, %v2805_v45 }
 0x5d4   : > { %3717 = vmatprep.mubr.msk.f32.mxu0 %vm740_vm3, %v2806_v40 }
 0x5d7   : > { %3718 = vmatmul.mubr.msk.f32.gmra.mrb[36].mxu0 %vm740_vm3, %v2807_v57 }
 0x5d8   : > { %3720 = vmatprep.mubr.msk.f32.mxu0 %vm740_vm3, %v2808_v47 }
 0x5db   : > { %3721 = vmatmul.mubr.msk.f32.gmra.mrb[38].mxu0 %vm740_vm3, %v2809_v50 }
 0x692   : > { %v3701_v24 = vpop.f32.mrb[24].mxu0 }
 0x693   : > { %v2981_v43 = vpop.f32.mrb[25].mxu0 }
 0x694   : > { %3725 = vmatprep.mubr.msk.f32.mxu0 %vm740_vm3, %v2981_v43 }
 0x695   : > { %3726 = vmatmul.mubr.msk.f32.vlgmr.msra.gmra.mrb[40].mxu0 %vm740_vm3, %v3701_v24 }
 0x696   : > { %v3704_v55 = vpop.f32.mrb[26].mxu0 }
 0x697   : > { %v2991_v58 = vpop.f32.mrb[27].mxu0 }
 0x698   : > { %3728 = vmatprep.mubr.msk.f32.mxu0 %vm740_vm3, %v2991_v58 }
 0x699   : > { %3729 = vmatmul.mubr.msk.f32.gmra.mrb[42].mxu0 %vm740_vm3, %v3704_v55 }
 0x69a   : > { %v3707_v4 = vpop.f32.mrb[28].mxu0 }
 0x69b   : > { %v3001_v16 = vpop.f32.mrb[29].mxu0 }
 0x69c   : > { %3731 = vmatprep.mubr.msk.f32.mxu0 %vm740_vm3, %v3001_v16 }
 0x69d   : > { %3732 = vmatmul.mubr.msk.f32.gmra.mrb[44].mxu0 %vm740_vm3, %v3707_v4 }
 0x69e   : > { %v3710_v9 = vpop.f32.mrb[30].mxu0 }
 0x69f   : > { %v3011_v15 = vpop.f32.mrb[31].mxu0 }
 0x6a0   : > { %3734 = vmatprep.mubr.msk.f32.mxu1 %vm740_vm3, %v3011_v15 }
 0x6a1   : > { %3735 = vmatmul.mubr.msk.f32.vlgmr.msra.gmra.mrb[32].mxu1 %vm740_vm3, %v3710_v9 }
 0x6a2   : > { %v3713_v35 = vpop.f32.mrb[32].mxu0 }
 0x6a3   : > { %v3021_v42 = vpop.f32.mrb[33].mxu0 }
 0x6a4   : > { %3737 = vmatprep.mubr.msk.f32.mxu1 %vm740_vm3, %v3021_v42 }
 0x6a5   : > { %3738 = vmatmul.mubr.msk.f32.gmra.mrb[34].mxu1 %vm740_vm3, %v3713_v35 }
 0x6a6   : > { %v3716_v63 = vpop.f32.mrb[34].mxu0 }
 0x6a7   : > { %v3031_v59 = vpop.f32.mrb[35].mxu0 }
 0x6a8   : > { %3740 = vmatprep.mubr.msk.f32.mxu1 %vm740_vm3, %v3031_v59 }
 0x6a9   : > { %3741 = vmatmul.mubr.msk.f32.gmra.mrb[36].mxu1 %vm740_vm3, %v3716_v63 }
 0x6aa   : > { %v3719_v14 = vpop.f32.mrb[36].mxu0 }
 0x6ab   : > { %v3041_v29 = vpop.f32.mrb[37].mxu0 }
 0x6ac   : > { %3743 = vmatprep.mubr.msk.f32.mxu1 %vm740_vm3, %v3041_v29 }
 0x6ad   : > { %3744 = vmatmul.mubr.msk.f32.gmra.mrb[38].mxu1 %vm740_vm3, %v3719_v14 }
 0x6ae   : > { %v3722_v27 = vpop.f32.mrb[38].mxu0 }
 0x6af   : > { %v3051_v62 = vpop.f32.mrb[39].mxu0 }
 0x6b0   : > { %3746 = vmatprep.mubr.msk.f32.mxu1 %vm740_vm3, %v3051_v62 }
 0x6b1   : > { %3747 = vmatmul.mubr.msk.f32.gmra.mrb[40].mxu1 %vm740_vm3, %v3722_v27 }
 0x768   : > { %v3727_v0 = vpop.f32.mrb[40].mxu0 }
 0x769   : > { %3255 = vst [vmem:[%s5500_s23 + $0x8] sm:$0xff] %v3727_v0  ;;  %v3175_v53 = vpop.f32.mrb[41].mxu0 }
 0x76a   : > { %3254 = vst [vmem:[%s5500_s23] sm:$0xff] %v3175_v53 }
 0x76c   : > { %v3730_v17 = vpop.f32.mrb[42].mxu0 }
 0x76d   : > { %3257 = vst [vmem:[%s5500_s23 + $0x18] sm:$0xff] %v3730_v17  ;;  %v3185_v39 = vpop.f32.mrb[43].mxu0 }
 0x76e   : > { %3256 = vst [vmem:[%s5500_s23 + $0x10] sm:$0xff] %v3185_v39 }
 0x770   : > { %v3733_v48 = vpop.f32.mrb[44].mxu0 }
 0x771   : > { %3259 = vst [vmem:[%s5500_s23 + $0x28] sm:$0xff] %v3733_v48  ;;  %v3195_v3 = vpop.f32.mrb[45].mxu0 }
 0x772   : > { %3258 = vst [vmem:[%s5500_s23 + $0x20] sm:$0xff] %v3195_v3 }
 0x774   : > { %v3736_v11 = vpop.f32.mrb[32].mxu1 }
 0x775   : > { %3261 = vst [vmem:[%s5500_s23 + $0x38] sm:$0xff] %v3736_v11  ;;  %v3205_v6 = vpop.f32.mrb[33].mxu1 }
 0x776   : > { %3260 = vst [vmem:[%s5500_s23 + $0x30] sm:$0xff] %v3205_v6 }
 0x778   : > { %v3739_v33 = vpop.f32.mrb[34].mxu1 }
 0x779   : > { %3263 = vst [vmem:[%s5500_s23 + $0x48] sm:$0xff] %v3739_v33  ;;  %v3215_v56 = vpop.f32.mrb[35].mxu1 }
 0x77a   : > { %3262 = vst [vmem:[%s5500_s23 + $0x40] sm:$0xff] %v3215_v56 }
 0x77c   : > { %v3742_v5 = vpop.f32.mrb[36].mxu1 }
 0x77d   : > { %3265 = vst [vmem:[%s5500_s23 + $0x58] sm:$0xff] %v3742_v5  ;;  %v3225_v54 = vpop.f32.mrb[37].mxu1 }
 0x77e   : > { %3264 = vst [vmem:[%s5500_s23 + $0x50] sm:$0xff] %v3225_v54 }
 0x780   : > { %v3745_v23 = vpop.f32.mrb[38].mxu1 }
 0x781   : > { %3267 = vst [vmem:[%s5500_s23 + $0x68] sm:$0xff] %v3745_v23  ;;  %v3235_v60 = vpop.f32.mrb[39].mxu1 }
 0x782   : > { %3266 = vst [vmem:[%s5500_s23 + $0x60] sm:$0xff] %v3235_v60 }
 0x784   : > { %v3748_v41 = vpop.f32.mrb[40].mxu1 }
 0x785   : > { %3269 = vst [vmem:[%s5500_s23 + $0x78] sm:$0xff] %v3748_v41  ;;  %v3245_v18 = vpop.f32.mrb[41].mxu1 }
 0x786   : > { %3268 = vst [vmem:[%s5500_s23 + $0x70] sm:$0xff] %v3245_v18 }
 0x787   : > { %4292 = shalt.err (!%p4289_p3)
}
 0x788   : > { %s4293_s12 = scalar_lea.hbm %s5521_s16, 2048  ;;  %s4297_s17 = scalar_lea.hbm %s5582_s11, 4096 }
 0x789   : > { %p4294_p4 = scmp.ne.s32.totalorder %s5521_s16, %s4293_s12  ;;  %p4298_p9 = scmp.lt.u32.totalorder %s5521_s16, %s5582_s11 }
 0x78a   : > { %p4299_p10 = scmp.lt.u32.totalorder %s4297_s17, %s4293_s12  ;;  %p4301_p12 = scmp.lt.u32.totalorder %s4293_s12, %s5521_s16 }
 0x78b   : > { %p4295_p7 = pnand %p4294_p4, %p4457_p5 }
 0x78c   : > { %p4300_p11 = por %p4299_p10, %p4298_p9 }
 0x78d   : > { %p4296_p8 = pneg %p4295_p7 }
 0x78e   : > { %p4302_p13 = por %p4301_p12, %p4300_p11 }
 0x790   : > { %p4303_p0 = pnand %p4302_p13, %p4296_p8 }
 0x792   : > { %4306 = shalt.err (!%p4303_p0)
}
 0x793   : > { %s4355_s30 = smov 128   ;;  %s5589_s26 = smov 8  }
 0x794   : > { %3753 = dma.vmem_to_hbm [thread:$0]  (%p4457_p5), %s5523_s13, 2048, %s5521_s16, %s5529_s8, %s4355_s30, %s4355_s30, %s5589_s26  }
 0x795 PF: > { %p3759_p1 = scmp.ge.s32.totalorder %s4341_s22, 2  ;;  %s3299_s14 = sand.u32 1, %s4329_s19  }
 0x796   : > { %s3300_s12 = scalar_lea.sflag [#allocation5], %s3299_s14 }
 0x797   : > { %p3756_p2 = pnand %p3759_p1, %p4461_p6 }
 0x799   : > { %4324 = dma.done.wait (!%p3756_p2), %s3300_s12, 2048  }
 0x79a   : > { %4326 = vsyncadd (!%p3756_p2), %s3300_s12, 4294965248  ;;  %p23_p3 = scmp.ge.s32.totalorder %s4444_s24, 4   ;;  %s5590_s19 = smov %s4333_s20 }
 0x79b   : > { %s5591_s20 = smov %s4337_s21  ;;  %s5592_s21 = smov %s4455_s27 }
 0x79c   : > { %s5593_s22 = smov %s4444_s24  ;;  %25 = sbr.rel (!%p23_p3) target bundleno = 6 (0x6), region = 111 }
 0x7a3   :  { %3305 = vsyncpa [#allocation5], 1 }
 0x7a4   :  { %3307 = vsyncpa [#allocation5 + $0x1], 1 }

</bundles_post_ra>
